<compile_context>
chip_gen: v6e
topology: v6e:2x2x1
jax: 0.10.0
libtpu: 0.0.40
codegen_flags: <defaults>
</compile_context>

<pallas_src>
import functools

import jax
import jax.numpy as jnp
from jax.experimental import pallas as pl
from jax.experimental.pallas import tpu as pltpu


def _round_up(x, m):
    return ((x + m - 1) // m) * m


# ----------------------------- Pallas kernel ---------------------------------
def _mlp_max_kernel(x_ref, *refs, n_layers, tile_p, nsample):
    """Shared MLP (1x1 conv + folded BN + ReLU) stack followed by max over nsample.

    refs = (w1, b1, w2, b2, ..., o_ref)
    x_ref : (tile_p * nsample, C_in) VMEM tile (bf16), o_ref : (tile_p, C_out) VMEM tile (f32).
    """
    o_ref = refs[-1]
    wb_refs = refs[:-1]

    # One big MXU push per layer over all tile_p*nsample rows of this tile.
    h = x_ref[...]                                     # (tile_p*S, C_in) bf16
    for li in range(n_layers):
        w = wb_refs[2 * li][...]                       # (C_{l-1}, C_l) bf16
        b = wb_refs[2 * li + 1][...]                   # (1, C_l)       f32
        acc = jnp.dot(h, w, preferred_element_type=jnp.float32) + b
        acc = jnp.maximum(acc, 0.0)                    # ReLU in f32 (VPU)
        h = acc if li == n_layers - 1 else acc.astype(w.dtype)

    # == F.max_pool2d(kernel=[1, nsample]): reduce over the S axis.
    c_out = h.shape[-1]
    h = h.reshape(tile_p, nsample, c_out)              # f32, layout-friendly split
    o_ref[...] = jnp.max(h, axis=1).astype(o_ref.dtype)


def mlp_max_pallas(x, weights, biases, *, tile_p=256, compute_dtype=jnp.bfloat16):
    """x: (P, S, C0) -> (P, C_out) f32 via one pallas_call (ragged P handled by padding)."""
    P, S, C0 = x.shape
    C_out = weights[-1].shape[1]
    n_layers = len(weights)

    # Tile sizing: big tiles for pipelining, but never bigger than (padded) P.
    tile_p = min(tile_p, _round_up(P, 8))
    tile_p = max(8, _round_up(tile_p, 8))
    P_pad = _round_up(P, tile_p)
    if P_pad != P:
        x = jnp.pad(x, ((0, P_pad - P), (0, 0), (0, 0)))

    # bf16 at the boundary (memory-bound kernel), flatten (P, S) -> rows.
    x2d = x.astype(compute_dtype).reshape(P_pad * S, C0)

    in_specs = [pl.BlockSpec((tile_p * S, C0), lambda i: (i, 0))]
    wb_inputs = []
    for w, b in zip(weights, biases):
        w = w.astype(compute_dtype)
        b = b.astype(jnp.float32)
        in_specs.append(pl.BlockSpec(w.shape, lambda i: (0, 0)))
        in_specs.append(pl.BlockSpec(b.shape, lambda i: (0, 0)))
        wb_inputs.extend([w, b])

    # Advisory cost estimate (matmul flops + HBM bytes moved).
    dims = [C0] + [w.shape[1] for w in weights]
    flops = sum(2 * P_pad * S * ci * co for ci, co in zip(dims[:-1], dims[1:]))
    bytes_accessed = (x2d.size * x2d.dtype.itemsize
                      + sum(int(a.size) * a.dtype.itemsize for a in wb_inputs)
                      + P_pad * C_out * 4)

    kernel = functools.partial(_mlp_max_kernel,
                               n_layers=n_layers, tile_p=tile_p, nsample=S)

    out = pl.pallas_call(
        kernel,
        out_shape=jax.ShapeDtypeStruct((P_pad, C_out), jnp.float32),
        grid_spec=pltpu.PrefetchScalarGridSpec(
            num_scalar_prefetch=0,
            grid=(P_pad // tile_p,),
            in_specs=in_specs,
            out_specs=pl.BlockSpec((tile_p, C_out), lambda i: (i, 0)),
        ),
        compiler_params=pltpu.CompilerParams(
            dimension_semantics=("parallel",),
            vmem_limit_bytes=48 * 1024 * 1024,
        ),
        cost_estimate=pl.CostEstimate(
            flops=flops, transcendentals=0, bytes_accessed=bytes_accessed),
    )(x2d, *wb_inputs)

    return out[:P]


# ------------------------------- JAX glue -------------------------------------
def ball_query(radius, nsample, xyz, new_xyz):
    """Exact pointnet2 ball_query semantics.

    xyz: (B, N, 3), new_xyz: (B, M, 3)  ->  idx (B, M, nsample) int32.
    Takes the first `nsample` points (in index order) with dist < radius; if fewer
    are found the first found index is repeated; if none, index 0 (zero-init buffer).
    """
    N = xyz.shape[1]
    d2 = jnp.sum((new_xyz[:, :, None, :] - xyz[:, None, :, :]) ** 2, axis=-1)  # (B,M,N)
    valid = d2 < radius * radius
    cand = jnp.where(valid, jnp.arange(N, dtype=jnp.int32), jnp.int32(N))
    cand = jnp.sort(cand, axis=-1)[:, :, :nsample]                 # first valid indices
    first = jnp.where(cand[:, :, :1] < N, cand[:, :, :1], 0)       # zero fallback
    idx = jnp.where(cand < N, cand, first)
    return idx.astype(jnp.int32)


def query_and_group(radius, nsample, xyz, new_xyz, features, use_xyz=True):
    """QueryAndGroup: returns (B, M, nsample, 3 + C) channels-last grouped tensor."""
    B = xyz.shape[0]
    idx = ball_query(radius, nsample, xyz, new_xyz)                # (B, M, S)
    bidx = jnp.arange(B)[:, None, None]
    grouped_xyz = xyz[bidx, idx] - new_xyz[:, :, None, :]          # (B, M, S, 3)
    feats_nl = jnp.transpose(features, (0, 2, 1))                  # (B, N, C)
    grouped_feats = feats_nl[bidx, idx]                            # (B, M, S, C)
    if use_xyz:
        return jnp.concatenate([grouped_xyz, grouped_feats], axis=-1)
    return grouped_feats


def fold_bn(w, gamma, beta, mean, var, eps=1e-5):
    """Fold eval-mode BatchNorm into the (bias-less) 1x1 conv weight."""
    scale = gamma / jnp.sqrt(var + eps)
    w_f = w * scale[None, :]
    b_f = (beta - mean * scale)[None, :]
    return w_f, b_f


def init_sa_params(key, mlps_spec, use_xyz=True):
    """Deterministic synthetic parameters for each shared MLP branch."""
    params = []
    for mlp_param in mlps_spec:
        dims = list(mlp_param)
        if use_xyz:
            dims = [dims[0] + 3] + dims[1:]
        ws, bs = [], []
        for li in range(1, len(dims)):
            key, k1, k2, k3, k4, k5 = jax.random.split(key, 6)
            c_in, c_out = dims[li - 1], dims[li]
            w = jax.random.normal(k1, (c_in, c_out), jnp.float32) / jnp.sqrt(float(c_in))
            gamma = 1.0 + 0.1 * jax.random.normal(k2, (c_out,), jnp.float32)
            beta = 0.1 * jax.random.normal(k3, (c_out,), jnp.float32)
            mean = 0.05 * jax.random.normal(k4, (c_out,), jnp.float32)
            var = jnp.abs(1.0 + 0.1 * jax.random.normal(k5, (c_out,), jnp.float32))
            w_f, b_f = fold_bn(w, gamma, beta, mean, var)
            ws.append(w_f)
            bs.append(b_f)
        params.append((ws, bs))
    return params


def sa_forward(xyz_img, feat_img, params, radii, nsamples, use_xyz=True, use_HHA=0):
    """SA.forward for the use_HHA != -1 (image-grid) path.

    xyz_img : (B, 3, H, W), feat_img : (B, C, H, W)  (NCHW, like PyTorch)
    returns (new_xyz (B,3,H',W'), features (B, sum(C_out), H', W'))
    """
    # TODO(synk): the use_HHA == -1 path (furthest_point_sample + gather_operation) is not implemented.
    B, _, H0, W0 = xyz_img.shape
    C = feat_img.shape[1]

    new_xyz_img = xyz_img
    for _ in range(use_HHA):
        # F.max_pool2d(kernel_size=1, stride=2) == stride-2 subsample
        new_xyz_img = new_xyz_img[:, :, ::2, ::2]
    H, W = new_xyz_img.shape[2], new_xyz_img.shape[3]

    xyz = jnp.transpose(xyz_img.reshape(B, 3, -1), (0, 2, 1))          # (B, N, 3)
    new_xyz = jnp.transpose(new_xyz_img.reshape(B, 3, -1), (0, 2, 1))  # (B, M, 3)
    features = feat_img.reshape(B, C, -1)                              # (B, C, N)
    M = new_xyz.shape[1]

    outs = []
    for i, (r, ns) in enumerate(zip(radii, nsamples)):
        grouped = query_and_group(r, ns, xyz, new_xyz, features, use_xyz)  # (B,M,S,3+C)
        x = grouped.reshape(B * M, ns, grouped.shape[-1])
        ws, bs = params[i]
        y = mlp_max_pallas(x, ws, bs)                                  # (B*M, C_out) f32
        y = jnp.transpose(y.reshape(B, M, -1), (0, 2, 1))              # (B, C_out, M)
        outs.append(y)

    new_xyz_out = jnp.transpose(new_xyz, (0, 2, 1)).reshape(B, 3, H, W)
    feat_out = jnp.concatenate(outs, axis=1).reshape(B, -1, H, W)
    return new_xyz_out, feat_out


# --------------------------------- main ---------------------------------------
if __name__ == "__main__":
    key = jax.random.PRNGKey(0)
    B, C, H, W = 2, 4, 8, 8          # N = H*W = 64 points per cloud, M = 64 (use_HHA=0)
    radii = (0.5, 1.0)
    nsamples = (8, 8)
    mlps = [[C, 16, 32], [C, 16, 32]]   # first entry becomes C+3 because use_xyz=True

    k_xyz, k_feat, k_par = jax.random.split(key, 3)
    xyz_img = jax.random.uniform(k_xyz, (B, 3, H, W), jnp.float32)
    feat_img = jax.random.normal(k_feat, (B, C, H, W), jnp.float32)
    params = init_sa_params(k_par, mlps, use_xyz=True)

    fwd = jax.jit(lambda xz, ft: sa_forward(xz, ft, params, radii, nsamples,
                                            use_xyz=True, use_HHA=0))
    new_xyz_out, feat_out = fwd(xyz_img, feat_img)
    jax.block_until_ready((new_xyz_out, feat_out))

    assert new_xyz_out.shape == (B, 3, H, W)
    assert feat_out.shape == (B, sum(m[-1] for m in mlps), H, W)
    assert bool(jnp.all(jnp.isfinite(feat_out)))
    print("KERNEL_OK")
</pallas_src>

<mosaic_0001>
module attributes {stable_mosaic.version = 11 : i64} {
  func.func @_mlp_max_kernel(%arg0: i32, %arg1: memref<1024x7xbf16, #tpu.memory_space<vmem>>, %arg2: memref<7x16xbf16, #tpu.memory_space<vmem>>, %arg3: memref<1x16xf32, #tpu.memory_space<vmem>>, %arg4: memref<16x32xbf16, #tpu.memory_space<vmem>>, %arg5: memref<1x32xf32, #tpu.memory_space<vmem>>, %arg6: memref<128x32xf32, #tpu.memory_space<vmem>>) attributes {dimension_semantics = [#tpu.dimension_semantics<parallel>], iteration_bounds = array<i64: 1>, scalar_prefetch = 0 : i64, scratch_operands = 0 : i64, tpu.core_type = #tpu.core_type<tc>, window_params = [{transform_indices = @transform_0, window_bounds = array<i64: 1024, 7>}, {pipeline_mode = #tpu.pipeline_mode<synchronous>, transform_indices = @transform_1, window_bounds = array<i64: 7, 16>}, {pipeline_mode = #tpu.pipeline_mode<synchronous>, transform_indices = @transform_2, window_bounds = array<i64: 1, 16>}, {pipeline_mode = #tpu.pipeline_mode<synchronous>, transform_indices = @transform_3, window_bounds = array<i64: 16, 32>}, {pipeline_mode = #tpu.pipeline_mode<synchronous>, transform_indices = @transform_4, window_bounds = array<i64: 1, 32>}, {transform_indices = @transform_5, window_bounds = array<i64: 128, 32>}]} {
    %c0 = arith.constant 0 : index
    %c0_0 = arith.constant 0 : index
    %0 = vector.load %arg1[%c0, %c0_0] : memref<1024x7xbf16, #tpu.memory_space<vmem>>, vector<1024x7xbf16>
    %c0_1 = arith.constant 0 : index
    %c0_2 = arith.constant 0 : index
    %1 = vector.load %arg2[%c0_1, %c0_2] : memref<7x16xbf16, #tpu.memory_space<vmem>>, vector<7x16xbf16>
    %c0_3 = arith.constant 0 : index
    %c0_4 = arith.constant 0 : index
    %2 = vector.load %arg3[%c0_3, %c0_4] : memref<1x16xf32, #tpu.memory_space<vmem>>, vector<1x16xf32>
    %cst = arith.constant dense<0.000000e+00> : vector<1024x16xf32>
    %3 = tpu.matmul %0, %1, %cst {dimension_numbers = #tpu.dot_dimension_numbers<[1], [0], [0], [1], [0, 0, 1, 1], [], []>} : vector<1024x7xbf16>, vector<7x16xbf16>, vector<1024x16xf32> -> vector<1024x16xf32>
    %4 = vector.broadcast %2 : vector<1x16xf32> to vector<1024x16xf32>
    %5 = arith.addf %3, %4 : vector<1024x16xf32>
    %cst_5 = arith.constant 0.000000e+00 : f32
    %6 = vector.broadcast %cst_5 : f32 to vector<1024x16xf32>
    %7 = arith.maximumf %5, %6 : vector<1024x16xf32>
    %8 = arith.truncf %7 : vector<1024x16xf32> to vector<1024x16xbf16>
    %c0_6 = arith.constant 0 : index
    %c0_7 = arith.constant 0 : index
    %9 = vector.load %arg4[%c0_6, %c0_7] : memref<16x32xbf16, #tpu.memory_space<vmem>>, vector<16x32xbf16>
    %c0_8 = arith.constant 0 : index
    %c0_9 = arith.constant 0 : index
    %10 = vector.load %arg5[%c0_8, %c0_9] : memref<1x32xf32, #tpu.memory_space<vmem>>, vector<1x32xf32>
    %cst_10 = arith.constant dense<0.000000e+00> : vector<1024x32xf32>
    %11 = tpu.matmul %8, %9, %cst_10 {dimension_numbers = #tpu.dot_dimension_numbers<[1], [0], [0], [1], [0, 0, 1, 1], [], []>} : vector<1024x16xbf16>, vector<16x32xbf16>, vector<1024x32xf32> -> vector<1024x32xf32>
    %12 = vector.broadcast %10 : vector<1x32xf32> to vector<1024x32xf32>
    %13 = arith.addf %11, %12 : vector<1024x32xf32>
    %cst_11 = arith.constant 0.000000e+00 : f32
    %14 = vector.broadcast %cst_11 : f32 to vector<1024x32xf32>
    %15 = arith.maximumf %13, %14 : vector<1024x32xf32>
    %16 = vector.shape_cast %15 : vector<1024x32xf32> to vector<128x8x32xf32>
    %cst_12 = arith.constant dense<0xFF800000> : vector<128x32xf32>
    %17 = vector.multi_reduction <maximumf>, %16, %cst_12 [1] : vector<128x8x32xf32> to vector<128x32xf32>
    %c0_13 = arith.constant 0 : index
    %c0_14 = arith.constant 0 : index
    %18 = vector.load %arg6[%c0_13, %c0_14] : memref<128x32xf32, #tpu.memory_space<vmem>>, vector<128x32xf32>
    tpu.vector_store %arg6[%c0_13, %c0_14], %17 {strides = array<i32>} : memref<128x32xf32, #tpu.memory_space<vmem>>, vector<128x32xf32>,
    return
  }
  func.func @transform_0(%arg0: i32) -> (i32, i32) {
    %c0_i32 = arith.constant 0 : i32
    %c0_i32_0 = arith.constant 0 : i32
    return %arg0, %c0_i32 : i32, i32
  }
  func.func @transform_1(%arg0: i32) -> (i32, i32) {
    %c0_i32 = arith.constant 0 : i32
    %c0_i32_0 = arith.constant 0 : i32
    %c0_i32_1 = arith.constant 0 : i32
    return %c0_i32, %c0_i32_0 : i32, i32
  }
  func.func @transform_2(%arg0: i32) -> (i32, i32) {
    %c0_i32 = arith.constant 0 : i32
    %c0_i32_0 = arith.constant 0 : i32
    %c0_i32_1 = arith.constant 0 : i32
    return %c0_i32, %c0_i32_0 : i32, i32
  }
  func.func @transform_3(%arg0: i32) -> (i32, i32) {
    %c0_i32 = arith.constant 0 : i32
    %c0_i32_0 = arith.constant 0 : i32
    %c0_i32_1 = arith.constant 0 : i32
    return %c0_i32, %c0_i32_0 : i32, i32
  }
  func.func @transform_4(%arg0: i32) -> (i32, i32) {
    %c0_i32 = arith.constant 0 : i32
    %c0_i32_0 = arith.constant 0 : i32
    %c0_i32_1 = arith.constant 0 : i32
    return %c0_i32, %c0_i32_0 : i32, i32
  }
  func.func @transform_5(%arg0: i32) -> (i32, i32) {
    %c0_i32 = arith.constant 0 : i32
    %c0_i32_0 = arith.constant 0 : i32
    return %arg0, %c0_i32 : i32, i32
  }
}

</mosaic_0001>

<bundles_post_ra>
// kernel: _lambda_.2
= control target key start
LH: loop header
LB: loop body
LE: loop exit
PB: predicated region body
PF: predicated region fallthrough
CT: control target
= control target key end

     0   :  { %vm670_vm0 = vcmask 1042432   ;;  %vm671_vm1 = vcmask 1043456   ;;  %vm477_vm2 = vcmask 56320   ;;  %v4129_v1 = vmov 65535   ;;  %s5410_s1 = inlined_call_operand.vmem [shape: bf16[7,16], index: 1, kind: input, shape index: {}]   ;;  %s5411_s0 = inlined_call_operand.vmem [shape: bf16[1024,7], index: 0, kind: input, shape index: {}]   ;;  %s5412_s3 = inlined_call_operand.vmem [shape: bf16[16,32], index: 3, kind: input, shape index: {}]   ;;  %s5413_s2 = inlined_call_operand.vmem [shape: f32[1,16], index: 2, kind: input, shape index: {}]   ;;  %s5414_s4 = inlined_call_operand.vmem [shape: f32[1,32], index: 4, kind: input, shape index: {}]   ;;  %s5415_s5 = inlined_call_operand.vmem [shape: f32[128,32], index: 5, kind: output, shape index: {}]  }
   0x1   :  { %v149_v0 = vld [vmem:[%s5410_s1] sm:$0xf]  ;;  %v672_v2 = vsel %vm670_vm0, 4294967295, %v4129_v1  ;;  %v4062_v6 = vld [vmem:[%s5411_s0 + $0x8] sm:$0xff]   ;;  %v4063_v7 = vld [vmem:[%s5411_s0 + $0x10] sm:$0xff]   ;;  %vm1429_vm3 = vcmask 130048  }
   0x2   :  { %v4061_v3 = vld [vmem:[%s5411_s0] sm:$0xff]   ;;  %v673_v4 = vsel %vm671_vm1, %v672_v2, 0  ;;  %v4064_v8 = vld [vmem:[%s5411_s0 + $0x18] sm:$0xff]   ;;  %v4066_v10 = vld [vmem:[%s5411_s0 + $0x28] sm:$0xff]   ;;  %vm2295_vm4 = vcmask 261120   ;;  %vm3320_vm5 = vcmask 1041409  }
   0x3   :  { %v675_v5 = vand.u32 %v673_v4, %v149_v0  ;;  %3802 = vmatprep.mubr.msk.bf16.mxu0 %vm477_vm2, %v4061_v3  ;;  %v4065_v9 = vld [vmem:[%s5411_s0 + $0x20] sm:$0xff]   ;;  %v4067_v11 = vld [vmem:[%s5411_s0 + $0x30] sm:$0xff]   ;;  %v4068_v12 = vld [vmem:[%s5411_s0 + $0x38] sm:$0xff]   ;;  %vm3322_vm6 = vcmask 1042434   ;;  %vm3324_vm7 = vcmask 1043459   ;;  %vm3326_vm8 = vcmask 1044484  }
   0x4   :  { %v4069_v13 = vld [vmem:[%s5411_s0 + $0x40] sm:$0xff]   ;;  %v4070_v14 = vld [vmem:[%s5411_s0 + $0x48] sm:$0xff]   ;;  %v4071_v15 = vld [vmem:[%s5411_s0 + $0x50] sm:$0xff]   ;;  %vm3328_vm9 = vcmask 1045509   ;;  %vm3330_vm10 = vcmask 1046534   ;;  %vm3332_vm11 = vcmask 1047559  }
   0x5   :  { %3800 = vmatprep.subr.bf16.mxu0 %v675_v5  ;;  %v4072_v16 = vld [vmem:[%s5411_s0 + $0x58] sm:$0xff]   ;;  %v4073_v17 = vld [vmem:[%s5411_s0 + $0x60] sm:$0xff]   ;;  %v4074_v18 = vld [vmem:[%s5411_s0 + $0x68] sm:$0xff]  }
   0x6   :  { %3801 = vmatpush3.bf16.msra.mxu0 %v675_v5  ;;  %v4075_v19 = vld [vmem:[%s5411_s0 + $0x70] sm:$0xff]   ;;  %v4076_v20 = vld [vmem:[%s5411_s0 + $0x78] sm:$0xff]   ;;  %v4077_v21 = vld [vmem:[%s5411_s0 + $0x80] sm:$0xff]  }
   0x7   :  { %v4078_v22 = vld [vmem:[%s5411_s0 + $0x88] sm:$0xff]   ;;  %v4079_v23 = vld [vmem:[%s5411_s0 + $0x90] sm:$0xff]   ;;  %v4080_v24 = vld [vmem:[%s5411_s0 + $0x98] sm:$0xff]  }
   0x8   :  { %v4081_v25 = vld [vmem:[%s5411_s0 + $0xa0] sm:$0xff]   ;;  %v4082_v27 = vld [vmem:[%s5411_s0 + $0xa8] sm:$0xff]   ;;  %v4083_v28 = vld [vmem:[%s5411_s0 + $0xb0] sm:$0xff]  }
   0x9   :  { %3803 = vmatmul.mubr.msk.bf16.vlgmr.msra.gmra.mxu0 %vm477_vm2, %v4062_v6  ;;  %v4113_v26 = vld [vmem:[%s5412_s3] sm:$0xff]   ;;  %v4084_v29 = vld [vmem:[%s5411_s0 + $0xb8] sm:$0xff]   ;;  %v4086_v31 = vld [vmem:[%s5411_s0 + $0xc8] sm:$0xff]  }
   0xa   :  { %3806 = vmatprep.mubr.msk.bf16.mxu0 %vm477_vm2, %v4063_v7  ;;  %3930 = vmatprep.subr.bf16.mxu1 %v4113_v26  ;;  %v4085_v30 = vld [vmem:[%s5411_s0 + $0xc0] sm:$0xff]   ;;  %v4087_v32 = vld [vmem:[%s5411_s0 + $0xd0] sm:$0xff]   ;;  %v4088_v33 = vld [vmem:[%s5411_s0 + $0xd8] sm:$0xff]  }
   0xb   :  { %3931 = vmatpush3.bf16.msra.mxu1 %v4113_v26  ;;  %v4089_v34 = vld [vmem:[%s5411_s0 + $0xe0] sm:$0xff]   ;;  %v4090_v35 = vld [vmem:[%s5411_s0 + $0xe8] sm:$0xff]   ;;  %v4091_v36 = vld [vmem:[%s5411_s0 + $0xf0] sm:$0xff]  }
   0xc   :  { %v4092_v37 = vld [vmem:[%s5411_s0 + $0xf8] sm:$0xff]   ;;  %v4093_v38 = vld [vmem:[%s5411_s0 + $0x100] sm:$0xff]   ;;  %v4094_v39 = vld [vmem:[%s5411_s0 + $0x108] sm:$0xff]  }
   0xd   :  { %v4095_v40 = vld [vmem:[%s5411_s0 + $0x110] sm:$0xff]   ;;  %v4096_v41 = vld [vmem:[%s5411_s0 + $0x118] sm:$0xff]   ;;  %v4097_v42 = vld [vmem:[%s5411_s0 + $0x120] sm:$0xff]  }
   0xe   :  { %v4098_v43 = vld [vmem:[%s5411_s0 + $0x128] sm:$0xff]   ;;  %v4099_v44 = vld [vmem:[%s5411_s0 + $0x130] sm:$0xff]   ;;  %v4100_v45 = vld [vmem:[%s5411_s0 + $0x138] sm:$0xff]  }
   0xf   :  { %v4101_v46 = vld [vmem:[%s5411_s0 + $0x140] sm:$0xff]   ;;  %v4102_v47 = vld [vmem:[%s5411_s0 + $0x148] sm:$0xff]   ;;  %v4103_v48 = vld [vmem:[%s5411_s0 + $0x150] sm:$0xff]  }
  0x10   :  { %v4104_v49 = vld [vmem:[%s5411_s0 + $0x158] sm:$0xff]   ;;  %v4105_v50 = vld [vmem:[%s5411_s0 + $0x160] sm:$0xff]   ;;  %v4106_v51 = vld [vmem:[%s5411_s0 + $0x168] sm:$0xff]  }
  0x11   :  { %3807 = vmatmul.mubr.msk.bf16.gmra.mxu0 %vm477_vm2, %v4064_v8  ;;  %v4107_v52 = vld [vmem:[%s5411_s0 + $0x170] sm:$0xff]   ;;  %v4108_v53 = vld [vmem:[%s5411_s0 + $0x178] sm:$0xff]   ;;  %v4109_v54 = vld [vmem:[%s5411_s0 + $0x180] sm:$0xff]  }
  0x12   :  { %3810 = vmatprep.mubr.msk.bf16.mxu0 %vm477_vm2, %v4065_v9  ;;  %v4110_v55 = vld [vmem:[%s5411_s0 + $0x188] sm:$0xff]   ;;  %v4111_v56 = vld [vmem:[%s5411_s0 + $0x190] sm:$0xff]   ;;  %v4373_v59 = vld [vmem:[%s5413_s2] ss:$0 sm:$0xff] }
  0x13   :  { %v4112_v61 = vld [vmem:[%s5411_s0 + $0x198] sm:$0xff]   ;;  %v4114_v0 = vld [vmem:[%s5411_s0 + $0x1a0] sm:$0xff]  }
  0x19   :  { %3811 = vmatmul.mubr.msk.bf16.gmra.mxu0 %vm477_vm2, %v4066_v10 }
  0x1a   :  { %3814 = vmatprep.mubr.msk.bf16.mxu0 %vm477_vm2, %v4067_v11 }
  0x21   :  { %3815 = vmatmul.mubr.msk.bf16.gmra.mxu0 %vm477_vm2, %v4068_v12 }
  0x22   :  { %3818 = vmatprep.mubr.msk.bf16.mxu0 %vm477_vm2, %v4069_v13  ;;  %v4115_v13 = vld [vmem:[%s5411_s0 + $0x1a8] sm:$0xff]  }
  0x29   :  { %3819 = vmatmul.mubr.msk.bf16.gmra.mxu0 %vm477_vm2, %v4070_v14 }
  0x2a   :  { %3822 = vmatprep.mubr.msk.bf16.mxu0 %vm477_vm2, %v4071_v15 }
  0x31   :  { %3823 = vmatmul.mubr.msk.bf16.gmra.mxu0 %vm477_vm2, %v4072_v16  ;;  %v4116_v16 = vld [vmem:[%s5411_s0 + $0x1b0] sm:$0xff]  }
  0x32   :  { %3826 = vmatprep.mubr.msk.bf16.mxu0 %vm477_vm2, %v4073_v17 }
  0x39   :  { %3827 = vmatmul.mubr.msk.bf16.gmra.mxu0 %vm477_vm2, %v4074_v18 }
  0x3a   :  { %3830 = vmatprep.mubr.msk.bf16.mxu0 %vm477_vm2, %v4075_v19 }
  0x41   :  { %3831 = vmatmul.mubr.msk.bf16.gmra.mxu0 %vm477_vm2, %v4076_v20 }
  0x42   :  { %3834 = vmatprep.mubr.msk.bf16.mxu0 %vm477_vm2, %v4077_v21 }
  0x49   :  { %3835 = vmatmul.mubr.msk.bf16.gmra.mxu0 %vm477_vm2, %v4078_v22 }
  0x4a   :  { %3838 = vmatprep.mubr.msk.bf16.mxu0 %vm477_vm2, %v4079_v23 }
  0x51   :  { %3839 = vmatmul.mubr.msk.bf16.gmra.mxu0 %vm477_vm2, %v4080_v24 }
  0x52   :  { %3842 = vmatprep.mubr.msk.bf16.mxu0 %vm477_vm2, %v4081_v25 }
  0x59   :  { %3843 = vmatmul.mubr.msk.bf16.gmra.mxu0 %vm477_vm2, %v4082_v27 }
  0x5a   :  { %3846 = vmatprep.mubr.msk.bf16.mxu0 %vm477_vm2, %v4083_v28 }
  0x61   :  { %3847 = vmatmul.mubr.msk.bf16.gmra.mxu0 %vm477_vm2, %v4084_v29  ;;  %v4117_v29 = vld [vmem:[%s5411_s0 + $0x1b8] sm:$0xff]  }
  0x62   :  { %3850 = vmatprep.mubr.msk.bf16.mxu0 %vm477_vm2, %v4085_v30 }
  0x69   :  { %3851 = vmatmul.mubr.msk.bf16.gmra.mxu0 %vm477_vm2, %v4086_v31 }
  0x6a   :  { %3854 = vmatprep.mubr.msk.bf16.mxu0 %vm477_vm2, %v4087_v32  ;;  %v4118_v32 = vld [vmem:[%s5411_s0 + $0x1c0] sm:$0xff]  }
  0x71   :  { %3855 = vmatmul.mubr.msk.bf16.gmra.mxu0 %vm477_vm2, %v4088_v33 }
  0x72   :  { %3858 = vmatprep.mubr.msk.bf16.mxu0 %vm477_vm2, %v4089_v34 }
  0x79   :  { %3859 = vmatmul.mubr.msk.bf16.gmra.mxu0 %vm477_vm2, %v4090_v35 }
  0x7a   :  { %3862 = vmatprep.mubr.msk.bf16.mxu0 %vm477_vm2, %v4091_v36 }
  0x81   :  { %3863 = vmatmul.mubr.msk.bf16.gmra.mxu0 %vm477_vm2, %v4092_v37 }
  0x82   :  { %3866 = vmatprep.mubr.msk.bf16.mxu0 %vm477_vm2, %v4093_v38 }
  0x89   :  { %3867 = vmatmul.mubr.msk.bf16.gmra.mxu0 %vm477_vm2, %v4094_v39 }
  0x8a   :  { %3870 = vmatprep.mubr.msk.bf16.mxu0 %vm477_vm2, %v4095_v40 }
  0x91   :  { %3871 = vmatmul.mubr.msk.bf16.gmra.mxu0 %vm477_vm2, %v4096_v41 }
  0x92   :  { %3874 = vmatprep.mubr.msk.bf16.mxu0 %vm477_vm2, %v4097_v42 }
  0x99   :  { %3875 = vmatmul.mubr.msk.bf16.gmra.mxu0 %vm477_vm2, %v4098_v43 }
  0x9a   :  { %3878 = vmatprep.mubr.msk.bf16.mxu0 %vm477_vm2, %v4099_v44 }
  0xa1   :  { %3879 = vmatmul.mubr.msk.bf16.gmra.mxu0 %vm477_vm2, %v4100_v45  ;;  %v4119_v45 = vld [vmem:[%s5411_s0 + $0x1c8] sm:$0xff]  }
  0xa2   :  { %3882 = vmatprep.mubr.msk.bf16.mxu0 %vm477_vm2, %v4101_v46 }
  0xa9   :  { %3883 = vmatmul.mubr.msk.bf16.gmra.mxu0 %vm477_vm2, %v4102_v47 }
  0xaa   :  { %3886 = vmatprep.mubr.msk.bf16.mxu0 %vm477_vm2, %v4103_v48  ;;  %v4120_v48 = vld [vmem:[%s5411_s0 + $0x1d0] sm:$0xff]  }
  0xb1   :  { %3887 = vmatmul.mubr.msk.bf16.gmra.mxu0 %vm477_vm2, %v4104_v49 }
  0xb2   :  { %3890 = vmatprep.mubr.msk.bf16.mxu0 %vm477_vm2, %v4105_v50 }
  0xb9   :  { %3891 = vmatmul.mubr.msk.bf16.gmra.mxu0 %vm477_vm2, %v4106_v51 }
  0xba   :  { %3894 = vmatprep.mubr.msk.bf16.mxu0 %vm477_vm2, %v4107_v52 }
  0xc1   :  { %3895 = vmatmul.mubr.msk.bf16.gmra.mxu0 %vm477_vm2, %v4108_v53 }
  0xc2   :  { %3898 = vmatprep.mubr.msk.bf16.mxu0 %vm477_vm2, %v4109_v54 }
  0xc9   :  { %v3804_v57 = vpop.f32.mrf.mxu0  ;;  %3899 = vmatmul.mubr.msk.bf16.gmra.mxu0 %vm477_vm2, %v4110_v55 }
  0xca   :  { %3902 = vmatprep.mubr.msk.bf16.mxu0 %vm477_vm2, %v4111_v56  ;;  %v720_v1 = vadd.f32 %v3804_v57, %v4373_v59 }
  0xcb   :  { %v711_v58 = vpop.f32.mrf.mxu0 }
  0xcc   :  { %v712_v62 = vadd.f32 %v4373_v59, %v711_v58  ;;  %v1224_v8 = vmax.f32 %v720_v1, 0.0  ;;  %v4122_v1 = vld [vmem:[%s5411_s0 + $0x1e0] sm:$0xff]  }
  0xcd   :  { %v3805_v60 = vpop.f32.mrf.mxu0 }
  0xce   :  { %v723_v63 = vadd.f32 %v3805_v60, %v4373_v59  ;;  %v1222_v6 = vmax.f32 %v712_v62, 0.0  ;;  %v4121_v62 = vld [vmem:[%s5411_s0 + $0x1d8] sm:$0xff]  }
  0xcf   :  { %v714_v2 = vpop.f32.mrf.mxu0 }
  0xd0   :  { %v715_v3 = vadd.f32 %v4373_v59, %v714_v2  ;;  %v1225_v4 = vmax.f32 %v723_v63, 0.0 }
  0xd1   :  { %v3808_v5 = vpop.f32.mrf.mxu0  ;;  %3903 = vmatmul.mubr.msk.bf16.gmra.mxu0 %vm477_vm2, %v4112_v61 }
  0xd2   :  { %v1223_v7 = vmax.f32 %v715_v3, 0.0  ;;  %3906 = vmatprep.mubr.msk.bf16.mxu0 %vm477_vm2, %v4114_v0  ;;  %v1351_v11 = vpack.c.bf16 %v1225_v4, %v1224_v8  ;;  %v736_v17 = vadd.f32 %v3808_v5, %v4373_v59 }
  0xd3   :  { %v727_v9 = vpop.f32.mrf.mxu0 }
  0xd4   :  { %v1350_v10 = vpack.c.bf16 %v1223_v7, %v1222_v6  ;;  %v728_v14 = vadd.f32 %v4373_v59, %v727_v9  ;;  %v1228_v24 = vmax.f32 %v736_v17, 0.0  ;;  %v4124_v17 = vld [vmem:[%s5411_s0 + $0x1f0] sm:$0xff]  }
  0xd5   :  { %v3809_v12 = vpop.f32.mrf.mxu0 }
  0xd6   :  { %v739_v15 = vadd.f32 %v3809_v12, %v4373_v59  ;;  %3932 = vmatprep.mubr.msk.bf16.mxu1 %vm1429_vm3, %v1350_v10  ;;  %v1226_v22 = vmax.f32 %v728_v14, 0.0  ;;  %v4123_v14 = vld [vmem:[%s5411_s0 + $0x1e8] sm:$0xff]  }
  0xd7   :  { %v730_v18 = vpop.f32.mrf.mxu0  ;;  %3933 = vmatmul.mubr.msk.bf16.vlgmr.msra.gmra.mxu1 %vm1429_vm3, %v1351_v11 }
  0xd8   :  { %v731_v19 = vadd.f32 %v4373_v59, %v730_v18  ;;  %v1229_v20 = vmax.f32 %v739_v15, 0.0 }
  0xd9   :  { %v3812_v21 = vpop.f32.mrf.mxu0  ;;  %3907 = vmatmul.mubr.msk.bf16.gmra.mxu0 %vm477_vm2, %v4115_v13 }
  0xda   :  { %v1227_v23 = vmax.f32 %v731_v19, 0.0  ;;  %3910 = vmatprep.mubr.msk.bf16.mxu0 %vm477_vm2, %v4116_v16  ;;  %v1353_v27 = vpack.c.bf16 %v1229_v20, %v1228_v24  ;;  %v752_v33 = vadd.f32 %v3812_v21, %v4373_v59 }
  0xdb   :  { %v743_v25 = vpop.f32.mrf.mxu0 }
  0xdc   :  { %v1352_v26 = vpack.c.bf16 %v1227_v23, %v1226_v22  ;;  %v744_v30 = vadd.f32 %v4373_v59, %v743_v25  ;;  %v1232_v40 = vmax.f32 %v752_v33, 0.0 }
  0xdd   :  { %v3813_v28 = vpop.f32.mrf.mxu0 }
  0xde   :  { %v755_v31 = vadd.f32 %v3813_v28, %v4373_v59  ;;  %3936 = vmatprep.mubr.msk.bf16.mxu1 %vm1429_vm3, %v1352_v26  ;;  %v1230_v38 = vmax.f32 %v744_v30, 0.0  ;;  %v4125_v30 = vld [vmem:[%s5411_s0 + $0x1f8] sm:$0xff]  }
  0xdf   :  { %v746_v34 = vpop.f32.mrf.mxu0  ;;  %3937 = vmatmul.mubr.msk.bf16.gmra.mxu1 %vm1429_vm3, %v1353_v27 }
  0xe0   :  { %v747_v35 = vadd.f32 %v4373_v59, %v746_v34  ;;  %v1233_v36 = vmax.f32 %v755_v31, 0.0 }
  0xe1   :  { %v3816_v37 = vpop.f32.mrf.mxu0  ;;  %3911 = vmatmul.mubr.msk.bf16.gmra.mxu0 %vm477_vm2, %v4117_v29 }
  0xe2   :  { %v1231_v39 = vmax.f32 %v747_v35, 0.0  ;;  %3914 = vmatprep.mubr.msk.bf16.mxu0 %vm477_vm2, %v4118_v32  ;;  %v1355_v43 = vpack.c.bf16 %v1233_v36, %v1232_v40  ;;  %v768_v49 = vadd.f32 %v3816_v37, %v4373_v59 }
  0xe3   :  { %v759_v41 = vpop.f32.mrf.mxu0 }
  0xe4   :  { %v1354_v42 = vpack.c.bf16 %v1231_v39, %v1230_v38  ;;  %v760_v46 = vadd.f32 %v4373_v59, %v759_v41  ;;  %v1236_v56 = vmax.f32 %v768_v49, 0.0 }
  0xe5   :  { %v3817_v44 = vpop.f32.mrf.mxu0 }
  0xe6   :  { %v771_v47 = vadd.f32 %v3817_v44, %v4373_v59  ;;  %3940 = vmatprep.mubr.msk.bf16.mxu1 %vm1429_vm3, %v1354_v42  ;;  %v1234_v54 = vmax.f32 %v760_v46, 0.0 }
  0xe7   :  { %v762_v50 = vpop.f32.mrf.mxu0  ;;  %3941 = vmatmul.mubr.msk.bf16.gmra.mxu1 %vm1429_vm3, %v1355_v43 }
  0xe8   :  { %v763_v51 = vadd.f32 %v4373_v59, %v762_v50  ;;  %v1237_v52 = vmax.f32 %v771_v47, 0.0 }
  0xe9   :  { %v3820_v53 = vpop.f32.mrf.mxu0  ;;  %3915 = vmatmul.mubr.msk.bf16.gmra.mxu0 %vm477_vm2, %v4119_v45 }
  0xea   :  { %v1235_v55 = vmax.f32 %v763_v51, 0.0  ;;  %3918 = vmatprep.mubr.msk.bf16.mxu0 %vm477_vm2, %v4120_v48  ;;  %v1357_v60 = vpack.c.bf16 %v1237_v52, %v1236_v56  ;;  %v784_v2 = vadd.f32 %v3820_v53, %v4373_v59 }
  0xeb   :  { %v775_v57 = vpop.f32.mrf.mxu0 }
  0xec   :  { %v1356_v58 = vpack.c.bf16 %v1235_v55, %v1234_v54  ;;  %v776_v63 = vadd.f32 %v4373_v59, %v775_v57  ;;  %v1240_v9 = vmax.f32 %v784_v2, 0.0 }
  0xed   :  { %v3821_v61 = vpop.f32.mrf.mxu0 }
  0xee   :  { %v787_v0 = vadd.f32 %v3821_v61, %v4373_v59  ;;  %3944 = vmatprep.mubr.msk.bf16.mxu1 %vm1429_vm3, %v1356_v58  ;;  %v1238_v7 = vmax.f32 %v776_v63, 0.0 }
  0xef   :  { %v778_v3 = vpop.f32.mrf.mxu0  ;;  %3945 = vmatmul.mubr.msk.bf16.gmra.mxu1 %vm1429_vm3, %v1357_v60 }
  0xf0   :  { %v779_v4 = vadd.f32 %v4373_v59, %v778_v3  ;;  %v1241_v5 = vmax.f32 %v787_v0, 0.0 }
  0xf1   :  { %v3824_v6 = vpop.f32.mrf.mxu0  ;;  %3919 = vmatmul.mubr.msk.bf16.gmra.mxu0 %vm477_vm2, %v4121_v62 }
  0xf2   :  { %v1239_v8 = vmax.f32 %v779_v4, 0.0  ;;  %3922 = vmatprep.mubr.msk.bf16.mxu0 %vm477_vm2, %v4122_v1  ;;  %v1359_v12 = vpack.c.bf16 %v1241_v5, %v1240_v9  ;;  %v800_v18 = vadd.f32 %v3824_v6, %v4373_v59 }
  0xf3   :  { %v791_v10 = vpop.f32.mrf.mxu0 }
  0xf4   :  { %v1358_v11 = vpack.c.bf16 %v1239_v8, %v1238_v7  ;;  %v792_v15 = vadd.f32 %v4373_v59, %v791_v10  ;;  %v1244_v25 = vmax.f32 %v800_v18, 0.0 }
  0xf5   :  { %v3825_v13 = vpop.f32.mrf.mxu0 }
  0xf6   :  { %v803_v16 = vadd.f32 %v3825_v13, %v4373_v59  ;;  %3948 = vmatprep.mubr.msk.bf16.mxu1 %vm1429_vm3, %v1358_v11  ;;  %v1242_v23 = vmax.f32 %v792_v15, 0.0 }
  0xf7   :  { %v794_v19 = vpop.f32.mrf.mxu0  ;;  %3949 = vmatmul.mubr.msk.bf16.gmra.mxu1 %vm1429_vm3, %v1359_v12 }
  0xf8   :  { %v795_v20 = vadd.f32 %v4373_v59, %v794_v19  ;;  %v1245_v21 = vmax.f32 %v803_v16, 0.0 }
  0xf9   :  { %v3828_v22 = vpop.f32.mrf.mxu0  ;;  %3923 = vmatmul.mubr.msk.bf16.gmra.mxu0 %vm477_vm2, %v4123_v14 }
  0xfa   :  { %v1243_v24 = vmax.f32 %v795_v20, 0.0  ;;  %3926 = vmatprep.mubr.msk.bf16.mxu0 %vm477_vm2, %v4124_v17  ;;  %v1361_v28 = vpack.c.bf16 %v1245_v21, %v1244_v25  ;;  %v816_v33 = vadd.f32 %v3828_v22, %v4373_v59 }
  0xfb   :  { %v807_v26 = vpop.f32.mrf.mxu0 }
  0xfc   :  { %v1360_v27 = vpack.c.bf16 %v1243_v24, %v1242_v23  ;;  %v808_v31 = vadd.f32 %v4373_v59, %v807_v26  ;;  %v1248_v40 = vmax.f32 %v816_v33, 0.0 }
  0xfd   :  { %v3829_v29 = vpop.f32.mrf.mxu0 }
  0xfe   :  { %v819_v32 = vadd.f32 %v3829_v29, %v4373_v59  ;;  %3952 = vmatprep.mubr.msk.bf16.mxu1 %vm1429_vm3, %v1360_v27  ;;  %v1246_v38 = vmax.f32 %v808_v31, 0.0 }
  0xff   :  { %v810_v34 = vpop.f32.mrf.mxu0  ;;  %3953 = vmatmul.mubr.msk.bf16.gmra.mxu1 %vm1429_vm3, %v1361_v28 }
 0x100   :  { %v811_v35 = vadd.f32 %v4373_v59, %v810_v34  ;;  %v1249_v36 = vmax.f32 %v819_v32, 0.0 }
 0x101   :  { %v3832_v37 = vpop.f32.mrf.mxu0  ;;  %3927 = vmatmul.mubr.msk.bf16.gmra.mxu0 %vm477_vm2, %v4125_v30 }
 0x102   :  { %v1247_v39 = vmax.f32 %v811_v35, 0.0  ;;  %v1363_v43 = vpack.c.bf16 %v1249_v36, %v1248_v40  ;;  %v832_v47 = vadd.f32 %v3832_v37, %v4373_v59 }
 0x103   :  { %v823_v41 = vpop.f32.mrf.mxu0 }
 0x104   :  { %v1362_v42 = vpack.c.bf16 %v1247_v39, %v1246_v38  ;;  %v824_v45 = vadd.f32 %v4373_v59, %v823_v41  ;;  %v1252_v54 = vmax.f32 %v832_v47, 0.0 }
 0x105   :  { %v3833_v44 = vpop.f32.mrf.mxu0 }
 0x106   :  { %v835_v46 = vadd.f32 %v3833_v44, %v4373_v59  ;;  %3956 = vmatprep.mubr.msk.bf16.mxu1 %vm1429_vm3, %v1362_v42  ;;  %v1250_v52 = vmax.f32 %v824_v45, 0.0 }
 0x107   :  { %v826_v48 = vpop.f32.mrf.mxu0  ;;  %3957 = vmatmul.mubr.msk.bf16.gmra.mxu1 %vm1429_vm3, %v1363_v43 }
 0x108   :  { %v827_v49 = vadd.f32 %v4373_v59, %v826_v48  ;;  %v1253_v50 = vmax.f32 %v835_v46, 0.0 }
 0x109   :  { %v3836_v51 = vpop.f32.mrf.mxu0 }
 0x10a   :  { %v1251_v53 = vmax.f32 %v827_v49, 0.0  ;;  %v1365_v57 = vpack.c.bf16 %v1253_v50, %v1252_v54  ;;  %v848_v62 = vadd.f32 %v3836_v51, %v4373_v59 }
 0x10b   :  { %v839_v55 = vpop.f32.mrf.mxu0 }
 0x10c   :  { %v1364_v56 = vpack.c.bf16 %v1251_v53, %v1250_v52  ;;  %v840_v60 = vadd.f32 %v4373_v59, %v839_v55  ;;  %v1256_v5 = vmax.f32 %v848_v62, 0.0 }
 0x10d   :  { %v3837_v58 = vpop.f32.mrf.mxu0 }
 0x10e   :  { %v851_v61 = vadd.f32 %v3837_v58, %v4373_v59  ;;  %3960 = vmatprep.mubr.msk.bf16.mxu1 %vm1429_vm3, %v1364_v56  ;;  %v1254_v3 = vmax.f32 %v840_v60, 0.0 }
 0x10f   :  { %v842_v63 = vpop.f32.mrf.mxu0  ;;  %3961 = vmatmul.mubr.msk.bf16.gmra.mxu1 %vm1429_vm3, %v1365_v57 }
 0x110   :  { %v843_v0 = vadd.f32 %v4373_v59, %v842_v63  ;;  %v1257_v1 = vmax.f32 %v851_v61, 0.0 }
 0x111   :  { %v3840_v2 = vpop.f32.mrf.mxu0 }
 0x112   :  { %v1255_v4 = vmax.f32 %v843_v0, 0.0  ;;  %v1367_v8 = vpack.c.bf16 %v1257_v1, %v1256_v5  ;;  %v864_v12 = vadd.f32 %v3840_v2, %v4373_v59 }
 0x113   :  { %v855_v6 = vpop.f32.mrf.mxu0 }
 0x114   :  { %v1366_v7 = vpack.c.bf16 %v1255_v4, %v1254_v3  ;;  %v856_v10 = vadd.f32 %v4373_v59, %v855_v6  ;;  %v1260_v19 = vmax.f32 %v864_v12, 0.0 }
 0x115   :  { %v3841_v9 = vpop.f32.mrf.mxu0 }
 0x116   :  { %v867_v11 = vadd.f32 %v3841_v9, %v4373_v59  ;;  %3964 = vmatprep.mubr.msk.bf16.mxu1 %vm1429_vm3, %v1366_v7  ;;  %v1258_v17 = vmax.f32 %v856_v10, 0.0 }
 0x117   :  { %v858_v13 = vpop.f32.mrf.mxu0  ;;  %3965 = vmatmul.mubr.msk.bf16.gmra.mxu1 %vm1429_vm3, %v1367_v8 }
 0x118   :  { %v859_v14 = vadd.f32 %v4373_v59, %v858_v13  ;;  %v1261_v15 = vmax.f32 %v867_v11, 0.0 }
 0x119   :  { %v3844_v16 = vpop.f32.mrf.mxu0 }
 0x11a   :  { %v1259_v18 = vmax.f32 %v859_v14, 0.0  ;;  %v1369_v22 = vpack.c.bf16 %v1261_v15, %v1260_v19  ;;  %v880_v26 = vadd.f32 %v3844_v16, %v4373_v59 }
 0x11b   :  { %v871_v20 = vpop.f32.mrf.mxu0 }
 0x11c   :  { %v1368_v21 = vpack.c.bf16 %v1259_v18, %v1258_v17  ;;  %v872_v24 = vadd.f32 %v4373_v59, %v871_v20  ;;  %v1264_v33 = vmax.f32 %v880_v26, 0.0 }
 0x11d   :  { %v3845_v23 = vpop.f32.mrf.mxu0 }
 0x11e   :  { %v883_v25 = vadd.f32 %v3845_v23, %v4373_v59  ;;  %3968 = vmatprep.mubr.msk.bf16.mxu1 %vm1429_vm3, %v1368_v21  ;;  %v1262_v31 = vmax.f32 %v872_v24, 0.0 }
 0x11f   :  { %v874_v27 = vpop.f32.mrf.mxu0  ;;  %3969 = vmatmul.mubr.msk.bf16.gmra.mxu1 %vm1429_vm3, %v1369_v22 }
 0x120   :  { %v875_v28 = vadd.f32 %v4373_v59, %v874_v27  ;;  %v1265_v29 = vmax.f32 %v883_v25, 0.0 }
 0x121   :  { %v3848_v30 = vpop.f32.mrf.mxu0 }
 0x122   :  { %v1263_v32 = vmax.f32 %v875_v28, 0.0  ;;  %v1371_v36 = vpack.c.bf16 %v1265_v29, %v1264_v33  ;;  %v896_v40 = vadd.f32 %v3848_v30, %v4373_v59 }
 0x123   :  { %v887_v34 = vpop.f32.mrf.mxu0 }
 0x124   :  { %v1370_v35 = vpack.c.bf16 %v1263_v32, %v1262_v31  ;;  %v888_v38 = vadd.f32 %v4373_v59, %v887_v34  ;;  %v1268_v47 = vmax.f32 %v896_v40, 0.0 }
 0x125   :  { %v3849_v37 = vpop.f32.mrf.mxu0 }
 0x126   :  { %v899_v39 = vadd.f32 %v3849_v37, %v4373_v59  ;;  %3972 = vmatprep.mubr.msk.bf16.mxu1 %vm1429_vm3, %v1370_v35  ;;  %v1266_v45 = vmax.f32 %v888_v38, 0.0 }
 0x127   :  { %v890_v41 = vpop.f32.mrf.mxu0  ;;  %3973 = vmatmul.mubr.msk.bf16.gmra.mxu1 %vm1429_vm3, %v1371_v36 }
 0x128   :  { %v891_v42 = vadd.f32 %v4373_v59, %v890_v41  ;;  %v1269_v43 = vmax.f32 %v899_v39, 0.0 }
 0x129   :  { %v3852_v44 = vpop.f32.mrf.mxu0 }
 0x12a   :  { %v1267_v46 = vmax.f32 %v891_v42, 0.0  ;;  %v1373_v50 = vpack.c.bf16 %v1269_v43, %v1268_v47  ;;  %v912_v54 = vadd.f32 %v3852_v44, %v4373_v59 }
 0x12b   :  { %v903_v48 = vpop.f32.mrf.mxu0 }
 0x12c   :  { %v1372_v49 = vpack.c.bf16 %v1267_v46, %v1266_v45  ;;  %v904_v52 = vadd.f32 %v4373_v59, %v903_v48  ;;  %v1272_v62 = vmax.f32 %v912_v54, 0.0 }
 0x12d   :  { %v3853_v51 = vpop.f32.mrf.mxu0 }
 0x12e   :  { %v915_v53 = vadd.f32 %v3853_v51, %v4373_v59  ;;  %3976 = vmatprep.mubr.msk.bf16.mxu1 %vm1429_vm3, %v1372_v49  ;;  %v1270_v60 = vmax.f32 %v904_v52, 0.0 }
 0x12f   :  { %v906_v55 = vpop.f32.mrf.mxu0  ;;  %3977 = vmatmul.mubr.msk.bf16.gmra.mxu1 %vm1429_vm3, %v1373_v50 }
 0x130   :  { %v907_v56 = vadd.f32 %v4373_v59, %v906_v55  ;;  %v1273_v57 = vmax.f32 %v915_v53, 0.0 }
 0x131   :  { %v3856_v58 = vpop.f32.mrf.mxu0 }
 0x132   :  { %v1271_v61 = vmax.f32 %v907_v56, 0.0  ;;  %v1375_v1 = vpack.c.bf16 %v1273_v57, %v1272_v62  ;;  %v928_v5 = vadd.f32 %v3856_v58, %v4373_v59 }
 0x133   :  { %v919_v63 = vpop.f32.mrf.mxu0 }
 0x134   :  { %v1374_v0 = vpack.c.bf16 %v1271_v61, %v1270_v60  ;;  %v920_v3 = vadd.f32 %v4373_v59, %v919_v63  ;;  %v1276_v12 = vmax.f32 %v928_v5, 0.0 }
 0x135   :  { %v3857_v2 = vpop.f32.mrf.mxu0 }
 0x136   :  { %v931_v4 = vadd.f32 %v3857_v2, %v4373_v59  ;;  %3980 = vmatprep.mubr.msk.bf16.mxu1 %vm1429_vm3, %v1374_v0  ;;  %v1274_v10 = vmax.f32 %v920_v3, 0.0 }
 0x137   :  { %v922_v6 = vpop.f32.mrf.mxu0  ;;  %3981 = vmatmul.mubr.msk.bf16.gmra.mxu1 %vm1429_vm3, %v1375_v1 }
 0x138   :  { %v923_v7 = vadd.f32 %v4373_v59, %v922_v6  ;;  %v1277_v8 = vmax.f32 %v931_v4, 0.0 }
 0x139   :  { %v3860_v9 = vpop.f32.mrf.mxu0 }
 0x13a   :  { %v1275_v11 = vmax.f32 %v923_v7, 0.0  ;;  %v1377_v15 = vpack.c.bf16 %v1277_v8, %v1276_v12  ;;  %v944_v19 = vadd.f32 %v3860_v9, %v4373_v59 }
 0x13b   :  { %v935_v13 = vpop.f32.mrf.mxu0 }
 0x13c   :  { %v1376_v14 = vpack.c.bf16 %v1275_v11, %v1274_v10  ;;  %v936_v17 = vadd.f32 %v4373_v59, %v935_v13  ;;  %v1280_v26 = vmax.f32 %v944_v19, 0.0 }
 0x13d   :  { %v3861_v16 = vpop.f32.mrf.mxu0 }
 0x13e   :  { %v947_v18 = vadd.f32 %v3861_v16, %v4373_v59  ;;  %3984 = vmatprep.mubr.msk.bf16.mxu1 %vm1429_vm3, %v1376_v14  ;;  %v1278_v24 = vmax.f32 %v936_v17, 0.0 }
 0x13f   :  { %v938_v20 = vpop.f32.mrf.mxu0  ;;  %3985 = vmatmul.mubr.msk.bf16.gmra.mxu1 %vm1429_vm3, %v1377_v15 }
 0x140   :  { %v939_v21 = vadd.f32 %v4373_v59, %v938_v20  ;;  %v1281_v22 = vmax.f32 %v947_v18, 0.0 }
 0x141   :  { %v3864_v23 = vpop.f32.mrf.mxu0 }
 0x142   :  { %v1279_v25 = vmax.f32 %v939_v21, 0.0  ;;  %v1379_v29 = vpack.c.bf16 %v1281_v22, %v1280_v26  ;;  %v960_v33 = vadd.f32 %v3864_v23, %v4373_v59 }
 0x143   :  { %v951_v27 = vpop.f32.mrf.mxu0 }
 0x144   :  { %v1378_v28 = vpack.c.bf16 %v1279_v25, %v1278_v24  ;;  %v952_v31 = vadd.f32 %v4373_v59, %v951_v27  ;;  %v1284_v40 = vmax.f32 %v960_v33, 0.0 }
 0x145   :  { %v3865_v30 = vpop.f32.mrf.mxu0 }
 0x146   :  { %v963_v32 = vadd.f32 %v3865_v30, %v4373_v59  ;;  %3988 = vmatprep.mubr.msk.bf16.mxu1 %vm1429_vm3, %v1378_v28  ;;  %v1282_v38 = vmax.f32 %v952_v31, 0.0 }
 0x147   :  { %v954_v34 = vpop.f32.mrf.mxu0  ;;  %3989 = vmatmul.mubr.msk.bf16.gmra.mxu1 %vm1429_vm3, %v1379_v29 }
 0x148   :  { %v955_v35 = vadd.f32 %v4373_v59, %v954_v34  ;;  %v1285_v36 = vmax.f32 %v963_v32, 0.0 }
 0x149   :  { %v3868_v37 = vpop.f32.mrf.mxu0 }
 0x14a   :  { %v1283_v39 = vmax.f32 %v955_v35, 0.0  ;;  %v1381_v43 = vpack.c.bf16 %v1285_v36, %v1284_v40  ;;  %v976_v47 = vadd.f32 %v3868_v37, %v4373_v59 }
 0x14b   :  { %v967_v41 = vpop.f32.mrf.mxu0 }
 0x14c   :  { %v1380_v42 = vpack.c.bf16 %v1283_v39, %v1282_v38  ;;  %v968_v45 = vadd.f32 %v4373_v59, %v967_v41  ;;  %v1288_v54 = vmax.f32 %v976_v47, 0.0 }
 0x14d   :  { %v3869_v44 = vpop.f32.mrf.mxu0 }
 0x14e   :  { %v979_v46 = vadd.f32 %v3869_v44, %v4373_v59  ;;  %3992 = vmatprep.mubr.msk.bf16.mxu1 %vm1429_vm3, %v1380_v42  ;;  %v1286_v52 = vmax.f32 %v968_v45, 0.0 }
 0x14f   :  { %v970_v48 = vpop.f32.mrf.mxu0  ;;  %3993 = vmatmul.mubr.msk.bf16.gmra.mxu1 %vm1429_vm3, %v1381_v43 }
 0x150   :  { %v971_v49 = vadd.f32 %v4373_v59, %v970_v48  ;;  %v1289_v50 = vmax.f32 %v979_v46, 0.0 }
 0x151   :  { %v3872_v51 = vpop.f32.mrf.mxu0 }
 0x152   :  { %v1287_v53 = vmax.f32 %v971_v49, 0.0  ;;  %v1383_v57 = vpack.c.bf16 %v1289_v50, %v1288_v54  ;;  %v992_v62 = vadd.f32 %v3872_v51, %v4373_v59 }
 0x153   :  { %v983_v55 = vpop.f32.mrf.mxu0 }
 0x154   :  { %v1382_v56 = vpack.c.bf16 %v1287_v53, %v1286_v52  ;;  %v984_v60 = vadd.f32 %v4373_v59, %v983_v55  ;;  %v1292_v5 = vmax.f32 %v992_v62, 0.0 }
 0x155   :  { %v3873_v58 = vpop.f32.mrf.mxu0 }
 0x156   :  { %v995_v61 = vadd.f32 %v3873_v58, %v4373_v59  ;;  %3996 = vmatprep.mubr.msk.bf16.mxu1 %vm1429_vm3, %v1382_v56  ;;  %v1290_v3 = vmax.f32 %v984_v60, 0.0 }
 0x157   :  { %v986_v63 = vpop.f32.mrf.mxu0  ;;  %3997 = vmatmul.mubr.msk.bf16.gmra.mxu1 %vm1429_vm3, %v1383_v57 }
 0x158   :  { %v987_v0 = vadd.f32 %v4373_v59, %v986_v63  ;;  %v1293_v1 = vmax.f32 %v995_v61, 0.0 }
 0x159   :  { %v3876_v2 = vpop.f32.mrf.mxu0 }
 0x15a   :  { %v1291_v4 = vmax.f32 %v987_v0, 0.0  ;;  %v1385_v8 = vpack.c.bf16 %v1293_v1, %v1292_v5  ;;  %v1008_v12 = vadd.f32 %v3876_v2, %v4373_v59 }
 0x15b   :  { %v999_v6 = vpop.f32.mrf.mxu0 }
 0x15c   :  { %v1384_v7 = vpack.c.bf16 %v1291_v4, %v1290_v3  ;;  %v1000_v10 = vadd.f32 %v4373_v59, %v999_v6  ;;  %v1296_v19 = vmax.f32 %v1008_v12, 0.0 }
 0x15d   :  { %v3877_v9 = vpop.f32.mrf.mxu0 }
 0x15e   :  { %v1011_v11 = vadd.f32 %v3877_v9, %v4373_v59  ;;  %4000 = vmatprep.mubr.msk.bf16.mxu1 %vm1429_vm3, %v1384_v7  ;;  %v1294_v17 = vmax.f32 %v1000_v10, 0.0 }
 0x15f   :  { %v1002_v13 = vpop.f32.mrf.mxu0  ;;  %4001 = vmatmul.mubr.msk.bf16.gmra.mxu1 %vm1429_vm3, %v1385_v8 }
 0x160   :  { %v1003_v14 = vadd.f32 %v4373_v59, %v1002_v13  ;;  %v1297_v15 = vmax.f32 %v1011_v11, 0.0 }
 0x161   :  { %v3880_v16 = vpop.f32.mrf.mxu0 }
 0x162   :  { %v1295_v18 = vmax.f32 %v1003_v14, 0.0  ;;  %v1387_v22 = vpack.c.bf16 %v1297_v15, %v1296_v19  ;;  %v1024_v26 = vadd.f32 %v3880_v16, %v4373_v59 }
 0x163   :  { %v1015_v20 = vpop.f32.mrf.mxu0 }
 0x164   :  { %v1386_v21 = vpack.c.bf16 %v1295_v18, %v1294_v17  ;;  %v1016_v24 = vadd.f32 %v4373_v59, %v1015_v20  ;;  %v1300_v33 = vmax.f32 %v1024_v26, 0.0 }
 0x165   :  { %v3881_v23 = vpop.f32.mrf.mxu0 }
 0x166   :  { %v1027_v25 = vadd.f32 %v3881_v23, %v4373_v59  ;;  %4004 = vmatprep.mubr.msk.bf16.mxu1 %vm1429_vm3, %v1386_v21  ;;  %v1298_v31 = vmax.f32 %v1016_v24, 0.0 }
 0x167   :  { %v1018_v27 = vpop.f32.mrf.mxu0  ;;  %4005 = vmatmul.mubr.msk.bf16.gmra.mxu1 %vm1429_vm3, %v1387_v22 }
 0x168   :  { %v1019_v28 = vadd.f32 %v4373_v59, %v1018_v27  ;;  %v1301_v29 = vmax.f32 %v1027_v25, 0.0 }
 0x169   :  { %v3884_v30 = vpop.f32.mrf.mxu0 }
 0x16a   :  { %v1299_v32 = vmax.f32 %v1019_v28, 0.0  ;;  %v1389_v36 = vpack.c.bf16 %v1301_v29, %v1300_v33  ;;  %v1040_v40 = vadd.f32 %v3884_v30, %v4373_v59 }
 0x16b   :  { %v1031_v34 = vpop.f32.mrf.mxu0 }
 0x16c   :  { %v1388_v35 = vpack.c.bf16 %v1299_v32, %v1298_v31  ;;  %v1032_v38 = vadd.f32 %v4373_v59, %v1031_v34  ;;  %v1304_v47 = vmax.f32 %v1040_v40, 0.0 }
 0x16d   :  { %v3885_v37 = vpop.f32.mrf.mxu0 }
 0x16e   :  { %v1043_v39 = vadd.f32 %v3885_v37, %v4373_v59  ;;  %4008 = vmatprep.mubr.msk.bf16.mxu1 %vm1429_vm3, %v1388_v35  ;;  %v1302_v45 = vmax.f32 %v1032_v38, 0.0 }
 0x16f   :  { %v1034_v41 = vpop.f32.mrf.mxu0  ;;  %4009 = vmatmul.mubr.msk.bf16.gmra.mxu1 %vm1429_vm3, %v1389_v36 }
 0x170   :  { %v1035_v42 = vadd.f32 %v4373_v59, %v1034_v41  ;;  %v1305_v43 = vmax.f32 %v1043_v39, 0.0 }
 0x171   :  { %v3888_v44 = vpop.f32.mrf.mxu0 }
 0x172   :  { %v1303_v46 = vmax.f32 %v1035_v42, 0.0  ;;  %v1391_v50 = vpack.c.bf16 %v1305_v43, %v1304_v47  ;;  %v1056_v54 = vadd.f32 %v3888_v44, %v4373_v59 }
 0x173   :  { %v1047_v48 = vpop.f32.mrf.mxu0 }
 0x174   :  { %v1390_v49 = vpack.c.bf16 %v1303_v46, %v1302_v45  ;;  %v1048_v52 = vadd.f32 %v4373_v59, %v1047_v48  ;;  %v1308_v62 = vmax.f32 %v1056_v54, 0.0  ;;  %v4578_v45 = vld [vmem:[%s5414_s4] ss:$0 sm:$0xff] }
 0x175   :  { %v3889_v51 = vpop.f32.mrf.mxu0 }
 0x176   :  { %v1059_v53 = vadd.f32 %v3889_v51, %v4373_v59  ;;  %4012 = vmatprep.mubr.msk.bf16.mxu1 %vm1429_vm3, %v1390_v49  ;;  %v1306_v60 = vmax.f32 %v1048_v52, 0.0 }
 0x177   :  { %v1050_v55 = vpop.f32.mrf.mxu0  ;;  %4013 = vmatmul.mubr.msk.bf16.gmra.mxu1 %vm1429_vm3, %v1391_v50 }
 0x178   :  { %v1051_v56 = vadd.f32 %v4373_v59, %v1050_v55  ;;  %v1309_v57 = vmax.f32 %v1059_v53, 0.0 }
 0x179   :  { %v3892_v58 = vpop.f32.mrf.mxu0 }
 0x17a   :  { %v1307_v61 = vmax.f32 %v1051_v56, 0.0  ;;  %v1393_v1 = vpack.c.bf16 %v1309_v57, %v1308_v62  ;;  %v1072_v5 = vadd.f32 %v3892_v58, %v4373_v59 }
 0x17b   :  { %v1063_v63 = vpop.f32.mrf.mxu0 }
 0x17c   :  { %v1392_v0 = vpack.c.bf16 %v1307_v61, %v1306_v60  ;;  %v1064_v3 = vadd.f32 %v4373_v59, %v1063_v63  ;;  %v1312_v12 = vmax.f32 %v1072_v5, 0.0 }
 0x17d   :  { %v3893_v2 = vpop.f32.mrf.mxu0 }
 0x17e   :  { %v1075_v4 = vadd.f32 %v3893_v2, %v4373_v59  ;;  %4016 = vmatprep.mubr.msk.bf16.mxu1 %vm1429_vm3, %v1392_v0  ;;  %v1310_v10 = vmax.f32 %v1064_v3, 0.0 }
 0x17f   :  { %v1066_v6 = vpop.f32.mrf.mxu0  ;;  %4017 = vmatmul.mubr.msk.bf16.gmra.mxu1 %vm1429_vm3, %v1393_v1 }
 0x180   :  { %v1067_v7 = vadd.f32 %v4373_v59, %v1066_v6  ;;  %v1313_v8 = vmax.f32 %v1075_v4, 0.0 }
 0x181   :  { %v3896_v9 = vpop.f32.mrf.mxu0 }
 0x182   :  { %v1311_v11 = vmax.f32 %v1067_v7, 0.0  ;;  %v1395_v15 = vpack.c.bf16 %v1313_v8, %v1312_v12  ;;  %v1088_v19 = vadd.f32 %v3896_v9, %v4373_v59 }
 0x183   :  { %v1079_v13 = vpop.f32.mrf.mxu0 }
 0x184   :  { %v1394_v14 = vpack.c.bf16 %v1311_v11, %v1310_v10  ;;  %v1080_v17 = vadd.f32 %v4373_v59, %v1079_v13  ;;  %v1316_v26 = vmax.f32 %v1088_v19, 0.0 }
 0x185   :  { %v3897_v16 = vpop.f32.mrf.mxu0 }
 0x186   :  { %v1091_v18 = vadd.f32 %v3897_v16, %v4373_v59  ;;  %4020 = vmatprep.mubr.msk.bf16.mxu1 %vm1429_vm3, %v1394_v14  ;;  %v1314_v24 = vmax.f32 %v1080_v17, 0.0 }
 0x187   :  { %v1082_v20 = vpop.f32.mrf.mxu0  ;;  %4021 = vmatmul.mubr.msk.bf16.gmra.mxu1 %vm1429_vm3, %v1395_v15 }
 0x188   :  { %v1083_v21 = vadd.f32 %v4373_v59, %v1082_v20  ;;  %v1317_v22 = vmax.f32 %v1091_v18, 0.0 }
 0x189   :  { %v3900_v23 = vpop.f32.mrf.mxu0 }
 0x18a   :  { %v1315_v25 = vmax.f32 %v1083_v21, 0.0  ;;  %v1397_v29 = vpack.c.bf16 %v1317_v22, %v1316_v26  ;;  %v1104_v33 = vadd.f32 %v3900_v23, %v4373_v59 }
 0x18b   :  { %v1095_v27 = vpop.f32.mrf.mxu0 }
 0x18c   :  { %v1396_v28 = vpack.c.bf16 %v1315_v25, %v1314_v24  ;;  %v1096_v31 = vadd.f32 %v4373_v59, %v1095_v27  ;;  %v1320_v40 = vmax.f32 %v1104_v33, 0.0 }
 0x18d   :  { %v3901_v30 = vpop.f32.mrf.mxu0 }
 0x18e   :  { %v1107_v32 = vadd.f32 %v3901_v30, %v4373_v59  ;;  %4024 = vmatprep.mubr.msk.bf16.mxu1 %vm1429_vm3, %v1396_v28  ;;  %v1318_v38 = vmax.f32 %v1096_v31, 0.0 }
 0x18f   :  { %v1098_v34 = vpop.f32.mrf.mxu0  ;;  %4025 = vmatmul.mubr.msk.bf16.gmra.mxu1 %vm1429_vm3, %v1397_v29 }
 0x190   :  { %v1099_v35 = vadd.f32 %v4373_v59, %v1098_v34  ;;  %v1321_v36 = vmax.f32 %v1107_v32, 0.0 }
 0x191   :  { %v3904_v37 = vpop.f32.mrf.mxu0 }
 0x192   :  { %v1319_v39 = vmax.f32 %v1099_v35, 0.0  ;;  %v1399_v43 = vpack.c.bf16 %v1321_v36, %v1320_v40  ;;  %v1120_v46 = vadd.f32 %v3904_v37, %v4373_v59 }
 0x193   :  { %v1111_v41 = vpop.f32.mrf.mxu0 }
 0x194   :  { %v1398_v42 = vpack.c.bf16 %v1319_v39, %v1318_v38  ;;  %v1112_v47 = vadd.f32 %v4373_v59, %v1111_v41  ;;  %v1324_v56 = vmax.f32 %v1120_v46, 0.0 }
 0x195   :  { %v3905_v44 = vpop.f32.mrf.mxu0 }
 0x196   :  { %v1123_v48 = vadd.f32 %v3905_v44, %v4373_v59  ;;  %4028 = vmatprep.mubr.msk.bf16.mxu1 %vm1429_vm3, %v1398_v42  ;;  %v1322_v57 = vmax.f32 %v1112_v47, 0.0 }
 0x197   :  { %v1114_v49 = vpop.f32.mrf.mxu0  ;;  %v3934_v50 = vpop.f32.mrf.mxu1  ;;  %4029 = vmatmul.mubr.msk.bf16.gmra.mxu1 %vm1429_vm3, %v1399_v43 }
 0x198   :  { %v1325_v51 = vmax.f32 %v1123_v48, 0.0  ;;  %v1115_v52 = vadd.f32 %v4373_v59, %v1114_v49  ;;  %v1665_v53 = vadd.f32 %v3934_v50, %v4578_v45 }
 0x199   :  { %v3908_v54 = vpop.f32.mrf.mxu0  ;;  %v1656_v55 = vpop.f32.mrf.mxu1 }
 0x19a   :  { %v1323_v58 = vmax.f32 %v1115_v52, 0.0  ;;  %v2169_v60 = vmax.f32 %v1665_v53, 0.0  ;;  %v1136_v61 = vadd.f32 %v3908_v54, %v4373_v59  ;;  %v1657_v62 = vadd.f32 %v4578_v45, %v1656_v55 }
 0x19b   :  { %v1127_v63 = vpop.f32.mrf.mxu0  ;;  %v3935_v0 = vpop.f32.mrf.mxu1  ;;  %v1401_v1 = vpack.c.bf16 %v1325_v51, %v1324_v56 }
 0x19c   :  { %v1400_v2 = vpack.c.bf16 %v1323_v58, %v1322_v57  ;;  %v2310_v3 = vsel %vm2295_vm4, %v2169_v60, -inf  ;;  %v2167_v5 = vmax.f32 %v1657_v62, 0.0  ;;  %v1128_v6 = vadd.f32 %v4373_v59, %v1127_v63 }
 0x19d   :  { %v2311_v4 = vrot.slane %v2310_v3, 4  ;;  %v1668_v7 = vadd.f32 %v3935_v0, %v4578_v45  ;;  %v3909_v8 = vpop.f32.mrf.mxu0  ;;  %v1659_v9 = vpop.f32.mrf.mxu1  ;;  %v1328_v13 = vmax.f32 %v1136_v61, 0.0 }
 0x19e   :  { %v1139_v10 = vadd.f32 %v3909_v8, %v4373_v59  ;;  %v1660_v11 = vadd.f32 %v4578_v45, %v1659_v9  ;;  %4032 = vmatprep.mubr.msk.bf16.mxu1 %vm1429_vm3, %v1400_v2  ;;  %v2296_v14 = vsel %vm2295_vm4, %v2167_v5, -inf  ;;  %v1326_v23 = vmax.f32 %v1128_v6, 0.0 }
 0x19f   :  { %v2312_v12 = vmax.f32 %v2310_v3, %v2311_v4  ;;  %v2170_v15 = vmax.f32 %v1668_v7, 0.0  ;;  %v1130_v16 = vpop.f32.mrf.mxu0  ;;  %v3938_v17 = vpop.f32.mrf.mxu1  ;;  %4033 = vmatmul.mubr.msk.bf16.gmra.mxu1 %vm1429_vm3, %v1401_v1  ;;  %v2297_v18 = vrot.slane %v2296_v14, 4  ;;  %v4612_v3 = vld [vmem:[%s5413_s2] ss:$0 sm:$0xff] }
 0x1a0   :  { %v1329_v19 = vmax.f32 %v1139_v10, 0.0  ;;  %v2168_v20 = vmax.f32 %v1660_v11, 0.0  ;;  %v1131_v21 = vadd.f32 %v4373_v59, %v1130_v16  ;;  %v1681_v25 = vadd.f32 %v3938_v17, %v4578_v45 }
 0x1a1   :  { %v2313_v22 = vrot.slane %v2312_v12, 2  ;;  %v2317_v24 = vsel %vm2295_vm4, %v2170_v15, -inf  ;;  %v3912_v26 = vpop.f32.mrf.mxu0  ;;  %v1672_v27 = vpop.f32.mrf.mxu1  ;;  %v2298_v28 = vmax.f32 %v2296_v14, %v2297_v18 }
 0x1a2   :  { %v2318_v29 = vrot.slane %v2317_v24, 4  ;;  %v1403_v30 = vpack.c.bf16 %v1329_v19, %v1328_v13  ;;  %v2303_v31 = vsel %vm2295_vm4, %v2168_v20, -inf  ;;  %v1327_v34 = vmax.f32 %v1131_v21, 0.0 }
 0x1a3   :  { %v2314_v32 = vmax.f32 %v2312_v12, %v2313_v22  ;;  %v2304_v33 = vrot.slane %v2303_v31, 4  ;;  %v2173_v35 = vmax.f32 %v1681_v25, 0.0  ;;  %v1143_v36 = vpop.f32.mrf.mxu0  ;;  %v3939_v37 = vpop.f32.mrf.mxu1  ;;  %v2299_v38 = vrot.slane %v2298_v28, 2 }
 0x1a4   :  { %v2319_v39 = vmax.f32 %v2317_v24, %v2318_v29  ;;  %v1152_v40 = vadd.f32 %v3912_v26, %v4373_v59  ;;  %v1673_v41 = vadd.f32 %v4578_v45, %v1672_v27  ;;  %v1402_v44 = vpack.c.bf16 %v1327_v34, %v1326_v23 }
 0x1a5   :  { %v2315_v42 = vrot.slane %v2314_v32, 1  ;;  %v2305_v43 = vmax.f32 %v2303_v31, %v2304_v33  ;;  %v2338_v46 = vsel %vm2295_vm4, %v2173_v35, -inf  ;;  %v3913_v47 = vpop.f32.mrf.mxu0  ;;  %v1675_v48 = vpop.f32.mrf.mxu1  ;;  %v2300_v49 = vmax.f32 %v2298_v28, %v2299_v38 }
 0x1a6   :  { %v2320_v50 = vrot.slane %v2319_v39, 2  ;;  %v2339_v51 = vrot.slane %v2338_v46, 4  ;;  %v1332_v52 = vmax.f32 %v1152_v40, 0.0  ;;  %v2171_v55 = vmax.f32 %v1673_v41, 0.0  ;;  %4036 = vmatprep.mubr.msk.bf16.mxu1 %vm1429_vm3, %v1402_v44 }
 0x1a7   :  { %v2316_v53 = vmax.f32 %v2314_v32, %v2315_v42  ;;  %v2306_v54 = vrot.slane %v2305_v43, 2  ;;  %v1144_v56 = vadd.f32 %v4373_v59, %v1143_v36  ;;  %v1146_v57 = vpop.f32.mrf.mxu0  ;;  %v3942_v58 = vpop.f32.mrf.mxu1  ;;  %v2301_v60 = vrot.slane %v2300_v49, 1  ;;  %4037 = vmatmul.mubr.msk.bf16.gmra.mxu1 %vm1429_vm3, %v1403_v30 }
 0x1a8   :  { %v2321_v61 = vmax.f32 %v2319_v39, %v2320_v50  ;;  %v2340_v62 = vmax.f32 %v2338_v46, %v2339_v51  ;;  %v1684_v63 = vadd.f32 %v3939_v37, %v4578_v45  ;;  %v2324_v1 = vsel %vm2295_vm4, %v2171_v55, -inf }
 0x1a9   :  { %v2307_v0 = vmax.f32 %v2305_v43, %v2306_v54  ;;  %v1330_v2 = vmax.f32 %v1144_v56, 0.0  ;;  %v1155_v59 = vadd.f32 %v4612_v3, %v3913_v47  ;;  %v3916_v4 = vpop.f32.mrf.mxu0  ;;  %v1688_v5 = vpop.f32.mrf.mxu1  ;;  %v2302_v6 = vmax.f32 %v2300_v49, %v2301_v60 }
 0x1aa   :  { %v2322_v7 = vrot.slane %v2321_v61, 1  ;;  %v2341_v8 = vrot.slane %v2340_v62, 2  ;;  %v2325_v9 = vrot.slane %v2324_v1, 4  ;;  %v2174_v11 = vmax.f32 %v1684_v63, 0.0 }
 0x1ab   :  { %v2308_v10 = vrot.slane %v2307_v0, 1  ;;  %v1333_v12 = vmax.f32 %v1155_v59, 0.0  ;;  %v1676_v13 = vadd.f32 %v4578_v45, %v1675_v48  ;;  %v1159_v14 = vpop.f32.mrf.mxu0  ;;  %v3943_v15 = vpop.f32.mrf.mxu1  ;;  %v1147_v19 = vadd.f32 %v4612_v3, %v1146_v57 }
 0x1ac   :  { %v2323_v16 = vmax.f32 %v2321_v61, %v2322_v7  ;;  %v2342_v17 = vmax.f32 %v2340_v62, %v2341_v8  ;;  %v2326_v18 = vmax.f32 %v2324_v1, %v2325_v9  ;;  %v2345_v21 = vsel %vm2295_vm4, %v2174_v11, -inf }
 0x1ad   :  { %v2309_v20 = vmax.f32 %v2307_v0, %v2308_v10  ;;  %v1405_v22 = vpack.c.bf16 %v1333_v12, %v1332_v52  ;;  %v2172_v23 = vmax.f32 %v1676_v13, 0.0  ;;  %v3917_v24 = vpop.f32.mrf.mxu0  ;;  %v1691_v25 = vpop.f32.mrf.mxu1  ;;  %v2346_v28 = vrot.slane %v2345_v21, 4 }
 0x1ae   :  { %v2343_v26 = vrot.slane %v2342_v17, 1  ;;  %v2327_v27 = vrot.slane %v2326_v18, 2  ;;  %v1331_v29 = vmax.f32 %v1147_v19, 0.0  ;;  %v1697_v32 = vadd.f32 %v3942_v58, %v4578_v45 }
 0x1af   :  { %v3321_v30 = vsel %vm3320_vm5, %v2309_v20, %v2302_v6  ;;  %v2331_v31 = vsel %vm2295_vm4, %v2172_v23, -inf  ;;  %v1168_v33 = vadd.f32 %v4612_v3, %v3916_v4  ;;  %v1162_v34 = vpop.f32.mrf.mxu0  ;;  %v3946_v35 = vpop.f32.mrf.mxu1  ;;  %v2347_v39 = vmax.f32 %v2345_v21, %v2346_v28 }
 0x1b0   :  { %v3323_v36 = vsel %vm3322_vm6, %v2316_v53, %v3321_v30  ;;  %v4623_v37 = vmax.f32 %v2342_v17, %v2343_v26  ;;  %v2328_v38 = vmax.f32 %v2326_v18, %v2327_v27  ;;  %v2332_v41 = vrot.slane %v2331_v31, 4 }
 0x1b1   :  { %v3325_v40 = vsel %vm3324_vm7, %v2323_v16, %v3323_v36  ;;  %v1404_v42 = vpack.c.bf16 %v1331_v29, %v1330_v2  ;;  %v2177_v43 = vmax.f32 %v1697_v32, 0.0  ;;  %v3920_v44 = vpop.f32.mrf.mxu0  ;;  %v4626_v46 = vpop.f32.mrf.mxu1  ;;  %v2348_v48 = vrot.slane %v2347_v39, 2 }
 0x1b2   :  { %v2329_v47 = vrot.slane %v2328_v38, 1  ;;  %v1336_v49 = vmax.f32 %v1168_v33, 0.0  ;;  %v1689_v50 = vadd.f32 %v4578_v45, %v1688_v5  ;;  %v2333_v51 = vmax.f32 %v2331_v31, %v2332_v41 }
 0x1b3   :  { %v2366_v52 = vsel %vm2295_vm4, %v2177_v43, -inf  ;;  %v1160_v53 = vadd.f32 %v4612_v3, %v1159_v14  ;;  %v1700_v54 = vadd.f32 %v3943_v15, %v4578_v45  ;;  %4040 = vmatprep.mubr.msk.bf16.mxu1 %vm1429_vm3, %v1404_v42  ;;  %v4633_v55 = vpop.f32.mrf.mxu0  ;;  %v4635_v56 = vpop.f32.mrf.mxu1  ;;  %v2349_v58 = vmax.f32 %v2347_v39, %v2348_v48 }
 0x1b4   :  { %v2330_v57 = vmax.f32 %v2328_v38, %v2329_v47  ;;  %v2367_v60 = vrot.slane %v2366_v52, 4  ;;  %v2175_v61 = vmax.f32 %v1689_v50, 0.0  ;;  %4041 = vmatmul.mubr.msk.bf16.gmra.mxu1 %vm1429_vm3, %v1405_v22  ;;  %v2334_v62 = vrot.slane %v2333_v51, 2 }
 0x1b5   :  { %v1334_v63 = vmax.f32 %v1160_v53, 0.0  ;;  %v2178_v0 = vmax.f32 %v1700_v54, 0.0  ;;  %v1171_v1 = vadd.f32 %v4612_v3, %v3917_v24  ;;  %v4639_v2 = vpop.f32.mrf.mxu1  ;;  %v2350_v4 = vrot.slane %v2349_v58, 1  ;;  %v3921_v11 = vpop.f32.mrf.mxu0 }
 0x1b6   :  { %v3327_v59 = vsel %vm3326_vm8, %v2330_v57, %v3325_v40  ;;  %v2368_v5 = vmax.f32 %v2366_v52, %v2367_v60  ;;  %v2352_v6 = vsel %vm2295_vm4, %v2175_v61, -inf  ;;  %v2335_v7 = vmax.f32 %v2333_v51, %v2334_v62 }
 0x1b7   :  { %v2353_v8 = vrot.slane %v2352_v6, 4  ;;  %v2373_v9 = vsel %vm2295_vm4, %v2178_v0, -inf  ;;  %v1337_v10 = vmax.f32 %v1171_v1, 0.0  ;;  %v4644_v12 = vpop.f32.mrf.mxu1  ;;  %v2351_v13 = vmax.f32 %v2349_v58, %v2350_v4  ;;  %v1178_v31 = vpop.f32.mrf.mxu0 }
 0x1b8   :  { %v2369_v14 = vrot.slane %v2368_v5, 2  ;;  %v2374_v15 = vrot.slane %v2373_v9, 4  ;;  %v1692_v16 = vadd.f32 %v4578_v45, %v1691_v25  ;;  %v2336_v17 = vrot.slane %v2335_v7, 1 }
 0x1b9   :  { %v2354_v18 = vmax.f32 %v2352_v6, %v2353_v8  ;;  %v1407_v19 = vpack.c.bf16 %v1337_v10, %v1336_v49  ;;  %v1163_v20 = vadd.f32 %v4612_v3, %v1162_v34  ;;  %v4648_v21 = vpop.f32.mrf.mxu1  ;;  %v1713_v26 = vadd.f32 %v3946_v35, %v4578_v45  ;;  %v3924_v52 = vpop.f32.mrf.mxu0 }
 0x1ba   :  { %v2370_v22 = vmax.f32 %v2368_v5, %v2369_v14  ;;  %v2375_v23 = vmax.f32 %v2373_v9, %v2374_v15  ;;  %v2176_v24 = vmax.f32 %v1692_v16, 0.0  ;;  %v2337_v27 = vmax.f32 %v2335_v7, %v2336_v17 }
 0x1bb   :  { %v2355_v28 = vrot.slane %v2354_v18, 2  ;;  %v1335_v29 = vmax.f32 %v1163_v20, 0.0  ;;  %v1184_v30 = vadd.f32 %v4612_v3, %v3920_v44  ;;  %v4652_v32 = vpop.f32.mrf.mxu1  ;;  %v2181_v34 = vmax.f32 %v1713_v26, 0.0  ;;  %v1191_v8 = vpop.f32.mrf.mxu0 }
 0x1bc   :  { %v2371_v25 = vrot.slane %v2370_v22, 1  ;;  %v2376_v33 = vrot.slane %v2375_v23, 2  ;;  %v2359_v36 = vsel %vm2295_vm4, %v2176_v24, -inf  ;;  %v3329_v38 = vsel %vm3328_vm9, %v2337_v27, %v3327_v59 }
 0x1bd   :  { %v2356_v39 = vmax.f32 %v2354_v18, %v2355_v28  ;;  %v2360_v40 = vrot.slane %v2359_v36, 4  ;;  %v1406_v41 = vpack.c.bf16 %v1335_v29, %v1334_v63  ;;  %v4656_v42 = vpop.f32.mrf.mxu1  ;;  %v3331_v35 = vsel %vm3330_vm10, %v4623_v37, %v3329_v38  ;;  %v3925_v28 = vpop.f32.mrf.mxu0 }
 0x1be   :  { %v2372_v43 = vmax.f32 %v2370_v22, %v2371_v25  ;;  %v2377_v44 = vmax.f32 %v2375_v23, %v2376_v33  ;;  %v2394_v47 = vsel %vm2295_vm4, %v2181_v34, -inf  ;;  %v3333_v48 = vsel %vm3332_vm11, %v2351_v13, %v3331_v35 }
 0x1bf   :  { %v2357_v49 = vrot.slane %v2356_v39, 1  ;;  %v2361_v50 = vmax.f32 %v2359_v36, %v2360_v40  ;;  %v2395_v51 = vrot.slane %v2394_v47, 4  ;;  %4044 = vmatprep.mubr.msk.bf16.mxu1 %vm1429_vm3, %v1406_v41  ;;  %v4663_v53 = vpop.f32.mrf.mxu1  ;;  %3455 = vst.msk [vmem:[%s5415_s5] sm:$0xff] %vm2295_vm4, %v3333_v48  ;;  %v1340_v54 = vmax.f32 %v1184_v30, 0.0 }
 0x1c0   :  { %v2378_v37 = vrot.slane %v2377_v44, 1  ;;  %v1705_v57 = vadd.f32 %v4578_v45, %v4626_v46  ;;  %v1176_v58 = vadd.f32 %v4612_v3, %v4633_v55  ;;  %4045 = vmatmul.mubr.msk.bf16.gmra.mxu1 %vm1429_vm3, %v1407_v19  ;;  %v1716_v63 = vadd.f32 %v4635_v56, %v4578_v45 }
 0x1c1   :  { %v2358_v60 = vmax.f32 %v2356_v39, %v2357_v49  ;;  %v2362_v61 = vrot.slane %v2361_v50, 2  ;;  %v2396_v62 = vmax.f32 %v2394_v47, %v2395_v51  ;;  %v4676_v0 = vpop.f32.mrf.mxu1  ;;  %v1187_v5 = vadd.f32 %v4612_v3, %v3921_v11  ;;  %v1194_v51 = vpop.f32.mrf.mxu0 }
 0x1c2   :  { %v2379_v1 = vmax.f32 %v2377_v44, %v2378_v37  ;;  %v2179_v59 = vmax.f32 %v1705_v57, 0.0  ;;  %v1338_v4 = vmax.f32 %v1176_v58, 0.0  ;;  %v2182_v7 = vmax.f32 %v1716_v63, 0.0 }
 0x1c3   :  { %v2363_v6 = vmax.f32 %v2361_v50, %v2362_v61  ;;  %v2397_v46 = vrot.slane %v2396_v62, 2  ;;  %v1708_v55 = vadd.f32 %v4578_v45, %v4639_v2  ;;  %v4681_v9 = vpop.f32.mrf.mxu1  ;;  %v1341_v13 = vmax.f32 %v1187_v5, 0.0 }
 0x1c4   :  { %v2380_v10 = vsel %vm2295_vm4, %v2179_v59, -inf  ;;  %v1179_v56 = vadd.f32 %v4612_v3, %v1178_v31  ;;  %v1729_v14 = vadd.f32 %v4644_v12, %v4578_v45  ;;  %v2401_v17 = vsel %vm2295_vm4, %v2182_v7, -inf }
 0x1c5   :  { %v2364_v15 = vrot.slane %v2363_v6, 1  ;;  %v2398_v16 = vmax.f32 %v2396_v62, %v2397_v46  ;;  %v2381_v11 = vrot.slane %v2380_v10, 4  ;;  %v4688_v18 = vpop.f32.mrf.mxu1  ;;  %v2402_v19 = vrot.slane %v2401_v17, 4 }
 0x1c6   :  { %v1409_v2 = vpack.c.bf16 %v1341_v13, %v1340_v54  ;;  %v2180_v20 = vmax.f32 %v1708_v55, 0.0  ;;  %v1339_v22 = vmax.f32 %v1179_v56, 0.0  ;;  %v2185_v27 = vmax.f32 %v1729_v14, 0.0  ;;  %v3928_v55 = vpop.f32.mrf.mxu0 }
 0x1c7   :  { %v2365_v23 = vmax.f32 %v2363_v6, %v2364_v15  ;;  %v2399_v24 = vrot.slane %v2398_v16, 1  ;;  %v2382_v26 = vmax.f32 %v2380_v10, %v2381_v11  ;;  %v4690_v29 = vpop.f32.mrf.mxu1  ;;  %v2403_v30 = vmax.f32 %v2401_v17, %v2402_v19 }
 0x1c8   :  { %v2387_v12 = vsel %vm2295_vm4, %v2180_v20, -inf  ;;  %v1408_v31 = vpack.c.bf16 %v1339_v22, %v1338_v4  ;;  %v1200_v25 = vadd.f32 %v4612_v3, %v3924_v52  ;;  %v2422_v35 = vsel %vm2295_vm4, %v2185_v27, -inf }
 0x1c9   :  { %v3334_v33 = vsel %vm3320_vm5, %v2365_v23, %v2358_v60  ;;  %v4695_v36 = vmax.f32 %v2398_v16, %v2399_v24  ;;  %v2383_v34 = vrot.slane %v2382_v26, 2  ;;  %v2388_v38 = vrot.slane %v2387_v12, 4  ;;  %v4697_v39 = vpop.f32.mrf.mxu1 }
 0x1ca   :  { %v3335_v40 = vsel %vm3322_vm6, %v2372_v43, %v3334_v33  ;;  %v2404_v41 = vrot.slane %v2403_v30, 2  ;;  %v1344_v44 = vmax.f32 %v1200_v25, 0.0  ;;  %4048 = vmatprep.mubr.msk.bf16.mxu1 %vm1429_vm3, %v1408_v31  ;;  %v2423_v50 = vrot.slane %v2422_v35, 4 }
 0x1cb   :  { %v2384_v47 = vmax.f32 %v2382_v26, %v2383_v34  ;;  %v3336_v48 = vsel %vm3324_vm7, %v2379_v1, %v3335_v40  ;;  %v2389_v49 = vmax.f32 %v2387_v12, %v2388_v38  ;;  %4049 = vmatmul.mubr.msk.bf16.gmra.mxu1 %vm1429_vm3, %v1409_v2  ;;  %v4704_v52 = vpop.f32.mrf.mxu1  ;;  %v1721_v43 = vadd.f32 %v4578_v45, %v4648_v21 }
 0x1cc   :  { %v2405_v37 = vmax.f32 %v2403_v30, %v2404_v41  ;;  %v1192_v54 = vadd.f32 %v4612_v3, %v1191_v8  ;;  %v1732_v57 = vadd.f32 %v4652_v32, %v4578_v45  ;;  %v2424_v61 = vmax.f32 %v2422_v35, %v2423_v50 }
 0x1cd   :  { %v2385_v58 = vrot.slane %v2384_v47, 1  ;;  %v2390_v60 = vrot.slane %v2389_v49, 2  ;;  %v1203_v62 = vadd.f32 %v4612_v3, %v3925_v28  ;;  %v4712_v63 = vpop.f32.mrf.mxu1  ;;  %v2183_v59 = vmax.f32 %v1721_v43, 0.0  ;;  %v1207_v28 = vpop.f32.mrf.mxu0 }
 0x1ce   :  { %v2406_v1 = vrot.slane %v2405_v37, 1  ;;  %v1342_v4 = vmax.f32 %v1192_v54, 0.0  ;;  %v2186_v5 = vmax.f32 %v1732_v57, 0.0  ;;  %v2425_v7 = vrot.slane %v2424_v61, 2 }
 0x1cf   :  { %v2386_v6 = vmax.f32 %v2384_v47, %v2385_v58  ;;  %v2391_v46 = vmax.f32 %v2389_v49, %v2390_v60  ;;  %v1345_v21 = vmax.f32 %v1203_v62, 0.0  ;;  %v4714_v8 = vpop.f32.mrf.mxu1  ;;  %v2408_v32 = vsel %vm2295_vm4, %v2183_v59, -inf }
 0x1d0   :  { %v2407_v10 = vmax.f32 %v2405_v37, %v2406_v1  ;;  %v2429_v13 = vsel %vm2295_vm4, %v2186_v5, -inf  ;;  %v1724_v56 = vadd.f32 %v4578_v45, %v4656_v42  ;;  %v2426_v16 = vmax.f32 %v2424_v61, %v2425_v7  ;;  %v3929_v37 = vpop.f32.mrf.mxu0 }
 0x1d1   :  { %v3337_v14 = vsel %vm3326_vm8, %v2386_v6, %v3336_v48  ;;  %v2392_v15 = vrot.slane %v2391_v46, 1  ;;  %v2409_v11 = vrot.slane %v2408_v32, 4  ;;  %v4721_v17 = vpop.f32.mrf.mxu1  ;;  %v2430_v19 = vrot.slane %v2429_v13, 4 }
 0x1d2   :  { %v1411_v2 = vpack.c.bf16 %v1345_v21, %v1344_v44  ;;  %v2184_v20 = vmax.f32 %v1724_v56, 0.0  ;;  %v1195_v22 = vadd.f32 %v4612_v3, %v1194_v51  ;;  %v2427_v24 = vrot.slane %v2426_v16, 1 }
 0x1d3   :  { %v2393_v23 = vmax.f32 %v2391_v46, %v2392_v15  ;;  %v2410_v26 = vmax.f32 %v2408_v32, %v2409_v11  ;;  %v1745_v27 = vadd.f32 %v4663_v53, %v4578_v45  ;;  %v4726_v42 = vpop.f32.mrf.mxu1  ;;  %v2431_v30 = vmax.f32 %v2429_v13, %v2430_v19 }
 0x1d4   :  { %v2415_v12 = vsel %vm2295_vm4, %v2184_v20, -inf  ;;  %v1343_v31 = vmax.f32 %v1195_v22, 0.0  ;;  %v1216_v25 = vadd.f32 %v4612_v3, %v3928_v55  ;;  %v4731_v34 = vmax.f32 %v2426_v16, %v2427_v24 }
 0x1d5   :  { %v3338_v33 = vsel %vm3328_vm9, %v2393_v23, %v3337_v14  ;;  %v2411_v38 = vrot.slane %v2410_v26, 2  ;;  %v2416_v40 = vrot.slane %v2415_v12, 4  ;;  %v4733_v41 = vpop.f32.mrf.mxu1  ;;  %v2432_v35 = vrot.slane %v2431_v30, 2 }
 0x1d6   :  { %v3339_v53 = vsel %vm3330_vm10, %v4695_v36, %v3338_v33  ;;  %v1410_v44 = vpack.c.bf16 %v1343_v31, %v1342_v4  ;;  %v2189_v47 = vmax.f32 %v1745_v27, 0.0  ;;  %v1348_v51 = vmax.f32 %v1216_v25, 0.0 }
 0x1d7   :  { %v3340_v48 = vsel %vm3332_vm11, %v2407_v10, %v3339_v53  ;;  %v2412_v49 = vmax.f32 %v2410_v26, %v2411_v38  ;;  %v2417_v50 = vmax.f32 %v2415_v12, %v2416_v40  ;;  %v4738_v43 = vpop.f32.mrf.mxu1  ;;  %v2433_v54 = vmax.f32 %v2431_v30, %v2432_v35  ;;  %v1210_v10 = vpop.f32.mrf.mxu0 }
 0x1d8   :  { %3456 = vst.msk [vmem:[%s5415_s5 + $0x8] sm:$0xff] %vm2295_vm4, %v3340_v48  ;;  %v2450_v57 = vsel %vm2295_vm4, %v2189_v47, -inf  ;;  %v1737_v36 = vadd.f32 %v4578_v45, %v4676_v0  ;;  %v1208_v58 = vadd.f32 %v4612_v3, %v1207_v28  ;;  %4052 = vmatprep.mubr.msk.bf16.mxu1 %vm1429_vm3, %v1410_v44  ;;  %v1748_v1 = vadd.f32 %v4681_v9, %v4578_v45 }
 0x1d9   :  { %v2413_v60 = vrot.slane %v2412_v49, 1  ;;  %v2418_v61 = vrot.slane %v2417_v50, 2  ;;  %v2451_v62 = vrot.slane %v2450_v57, 4  ;;  %4053 = vmatmul.mubr.msk.bf16.gmra.mxu1 %vm1429_vm3, %v1411_v2  ;;  %v4752_v59 = vpop.f32.mrf.mxu1  ;;  %v2434_v4 = vrot.slane %v2433_v54, 1 }
 0x1da   :  { %v2187_v5 = vmax.f32 %v1737_v36, 0.0  ;;  %v1346_v6 = vmax.f32 %v1208_v58, 0.0  ;;  %v1219_v46 = vadd.f32 %v4612_v3, %v3929_v37  ;;  %v2190_v55 = vmax.f32 %v1748_v1, 0.0 }
 0x1db   :  { %v2414_v0 = vmax.f32 %v2412_v49, %v2413_v60  ;;  %v2419_v7 = vmax.f32 %v2417_v50, %v2418_v61  ;;  %v2452_v21 = vmax.f32 %v2450_v57, %v2451_v62  ;;  %v4755_v32 = vpop.f32.mrf.mxu1  ;;  %v2435_v13 = vmax.f32 %v2433_v54, %v2434_v4 }
 0x1dc   :  { %v2436_v56 = vsel %vm2295_vm4, %v2187_v5, -inf  ;;  %v1349_v9 = vmax.f32 %v1219_v46, 0.0  ;;  %v1740_v14 = vadd.f32 %v4578_v45, %v4688_v18  ;;  %v2457_v19 = vsel %vm2295_vm4, %v2190_v55, -inf }
 0x1dd   :  { %v2420_v15 = vrot.slane %v2419_v7, 1  ;;  %v2453_v16 = vrot.slane %v2452_v21, 2  ;;  %v2437_v11 = vrot.slane %v2436_v56, 4  ;;  %v4761_v2 = vpop.f32.mrf.mxu1  ;;  %v2458_v20 = vrot.slane %v2457_v19, 4 }
 0x1de   :  { %v1413_v22 = vpack.c.bf16 %v1349_v9, %v1348_v51  ;;  %v2188_v23 = vmax.f32 %v1740_v14, 0.0  ;;  %v1211_v24 = vadd.f32 %v4612_v3, %v1210_v10  ;;  %v1761_v30 = vadd.f32 %v4690_v29, %v4578_v45 }
 0x1df   :  { %v2421_v26 = vmax.f32 %v2419_v7, %v2420_v15  ;;  %v2454_v27 = vmax.f32 %v2452_v21, %v2453_v16  ;;  %v2438_v28 = vmax.f32 %v2436_v56, %v2437_v11  ;;  %v4766_v12 = vpop.f32.mrf.mxu1  ;;  %v2459_v18 = vmax.f32 %v2457_v19, %v2458_v20 }
 0x1e0   :  { %v2443_v31 = vsel %vm2295_vm4, %v2188_v23, -inf  ;;  %v1347_v25 = vmax.f32 %v1211_v24, 0.0  ;;  %v1753_v33 = vadd.f32 %v4578_v45, %v4697_v39  ;;  %v2193_v48 = vmax.f32 %v1761_v30, 0.0 }
 0x1e1   :  { %v3341_v38 = vsel %vm3320_vm5, %v2421_v26, %v2414_v0  ;;  %v2455_v40 = vrot.slane %v2454_v27, 1  ;;  %v2439_v53 = vrot.slane %v2438_v28, 2  ;;  %v2444_v3 = vrot.slane %v2443_v31, 4  ;;  %v4772_v35 = vpop.f32.mrf.mxu1 }
 0x1e2   :  { %v3342_v44 = vsel %vm3322_vm6, %v4731_v34, %v3341_v38  ;;  %v2460_v29 = vrot.slane %v2459_v18, 2  ;;  %v1412_v47 = vpack.c.bf16 %v1347_v25, %v1346_v6  ;;  %v2478_v57 = vsel %vm2295_vm4, %v2193_v48, -inf }
 0x1e3   :  { %v2456_v49 = vmax.f32 %v2454_v27, %v2455_v40  ;;  %v2440_v50 = vmax.f32 %v2438_v28, %v2439_v53  ;;  %v3343_v51 = vsel %vm3324_vm7, %v2435_v13, %v3342_v44  ;;  %v2445_v37 = vmax.f32 %v2443_v31, %v2444_v3  ;;  %v4777_v54 = vpop.f32.mrf.mxu1 }
 0x1e4   :  { %v2461_v39 = vmax.f32 %v2459_v18, %v2460_v29  ;;  %v2191_v36 = vmax.f32 %v1753_v33, 0.0  ;;  %v1764_v58 = vadd.f32 %v4704_v52, %v4578_v45  ;;  %4056 = vmatprep.mubr.msk.bf16.mxu1 %vm1429_vm3, %v1412_v47  ;;  %v2479_v61 = vrot.slane %v2478_v57, 4 }
 0x1e5   :  { %v2441_v34 = vrot.slane %v2440_v50, 1  ;;  %v2446_v60 = vrot.slane %v2445_v37, 2  ;;  %v1756_v62 = vadd.f32 %v4578_v45, %v4712_v63  ;;  %4057 = vmatmul.mubr.msk.bf16.gmra.mxu1 %vm1429_vm3, %v1413_v22  ;;  %v4786_v1 = vpop.f32.mrf.mxu1  ;;  %v1777_v46 = vadd.f32 %v4714_v8, %v4578_v45 }
 0x1e6   :  { %v2462_v4 = vrot.slane %v2461_v39, 1  ;;  %v2464_v5 = vsel %vm2295_vm4, %v2191_v36, -inf  ;;  %v2194_v6 = vmax.f32 %v1764_v58, 0.0  ;;  %v2480_v7 = vmax.f32 %v2478_v57, %v2479_v61 }
 0x1e7   :  { %v2442_v52 = vmax.f32 %v2440_v50, %v2441_v34  ;;  %v2447_v0 = vmax.f32 %v2445_v37, %v2446_v60  ;;  %v2465_v21 = vrot.slane %v2464_v5, 4  ;;  %v4791_v55 = vpop.f32.mrf.mxu1  ;;  %v2192_v13 = vmax.f32 %v1756_v62, 0.0 }
 0x1e8   :  { %v2463_v10 = vmax.f32 %v2461_v39, %v2462_v4  ;;  %v2485_v63 = vsel %vm2295_vm4, %v2194_v6, -inf  ;;  %v2197_v56 = vmax.f32 %v1777_v46, 0.0  ;;  %v2481_v15 = vrot.slane %v2480_v7, 2 }
 0x1e9   :  { %v3344_v9 = vsel %vm3326_vm8, %v2442_v52, %v3343_v51  ;;  %v2448_v14 = vrot.slane %v2447_v0, 1  ;;  %v2466_v16 = vmax.f32 %v2464_v5, %v2465_v21  ;;  %v4795_v11 = vpop.f32.mrf.mxu1  ;;  %v2486_v19 = vrot.slane %v2485_v63, 4 }
 0x1ea   :  { %v2471_v8 = vsel %vm2295_vm4, %v2192_v13, -inf  ;;  %v2506_v20 = vsel %vm2295_vm4, %v2197_v56, -inf  ;;  %v1769_v22 = vadd.f32 %v4578_v45, %v4721_v17  ;;  %v2482_v24 = vmax.f32 %v2480_v7, %v2481_v15 }
 0x1eb   :  { %v2449_v23 = vmax.f32 %v2447_v0, %v2448_v14  ;;  %v2467_v26 = vrot.slane %v2466_v16, 2  ;;  %v2472_v27 = vrot.slane %v2471_v8, 4  ;;  %v4801_v28 = vpop.f32.mrf.mxu1  ;;  %v2487_v30 = vmax.f32 %v2485_v63, %v2486_v19 }
 0x1ec   :  { %v2507_v18 = vrot.slane %v2506_v20, 4  ;;  %v2195_v31 = vmax.f32 %v1769_v22, 0.0  ;;  %v1780_v25 = vadd.f32 %v4726_v42, %v4578_v45  ;;  %v2483_v38 = vrot.slane %v2482_v24, 1 }
 0x1ed   :  { %v3345_v33 = vsel %vm3328_vm9, %v2449_v23, %v3344_v9  ;;  %v2468_v40 = vmax.f32 %v2466_v16, %v2467_v26  ;;  %v2473_v53 = vmax.f32 %v2471_v8, %v2472_v27  ;;  %v4806_v3 = vpop.f32.mrf.mxu1  ;;  %v2488_v44 = vrot.slane %v2487_v30, 2 }
 0x1ee   :  { %v3346_v17 = vsel %vm3330_vm10, %v2456_v49, %v3345_v33  ;;  %v2508_v29 = vmax.f32 %v2506_v20, %v2507_v18  ;;  %v2492_v47 = vsel %vm2295_vm4, %v2195_v31, -inf  ;;  %v2484_v50 = vmax.f32 %v2482_v24, %v2483_v38 }
 0x1ef   :  { %v3347_v48 = vsel %vm3332_vm11, %v2463_v10, %v3346_v17  ;;  %v2469_v51 = vrot.slane %v2468_v40, 1  ;;  %v2474_v37 = vrot.slane %v2473_v53, 2  ;;  %v4811_v39 = vpop.f32.mrf.mxu1  ;;  %v2489_v42 = vmax.f32 %v2487_v30, %v2488_v44 }
 0x1f0   :  { %3457 = vst.msk [vmem:[%s5415_s5 + $0x10] sm:$0xff] %vm2295_vm4, %v3347_v48  ;;  %v2509_v57 = vrot.slane %v2508_v29, 2  ;;  %v2493_v36 = vrot.slane %v2492_v47, 4  ;;  %v2198_v49 = vmax.f32 %v1780_v25, 0.0  ;;  %v1772_v60 = vadd.f32 %v4578_v45, %v4733_v41 }
 0x1f1   :  { %v2470_v58 = vmax.f32 %v2468_v40, %v2469_v51  ;;  %v2475_v34 = vmax.f32 %v2473_v53, %v2474_v37  ;;  %v1793_v61 = vadd.f32 %v4738_v43, %v4578_v45  ;;  %v4821_v62 = vpop.f32.mrf.mxu1  ;;  %v2490_v4 = vrot.slane %v2489_v42, 1 }
 0x1f2   :  { %v2510_v5 = vmax.f32 %v2508_v29, %v2509_v57  ;;  %v2494_v6 = vmax.f32 %v2492_v47, %v2493_v36  ;;  %v2513_v46 = vsel %vm2295_vm4, %v2198_v49, -inf  ;;  %v2196_v7 = vmax.f32 %v1772_v60, 0.0 }
 0x1f3   :  { %v2476_v52 = vrot.slane %v2475_v34, 1  ;;  %v2514_v0 = vrot.slane %v2513_v46, 4  ;;  %v2201_v21 = vmax.f32 %v1793_v61, 0.0  ;;  %v4824_v10 = vpop.f32.mrf.mxu1  ;;  %v2491_v63 = vmax.f32 %v2489_v42, %v2490_v4 }
 0x1f4   :  { %v2511_v13 = vrot.slane %v2510_v5, 1  ;;  %v2495_v56 = vrot.slane %v2494_v6, 2  ;;  %v1785_v41 = vadd.f32 %v4578_v45, %v4752_v59  ;;  %v2499_v14 = vsel %vm2295_vm4, %v2196_v7, -inf }
 0x1f5   :  { %v2477_v43 = vmax.f32 %v2475_v34, %v2476_v52  ;;  %v2515_v9 = vmax.f32 %v2513_v46, %v2514_v0  ;;  %v2534_v15 = vsel %vm2295_vm4, %v2201_v21, -inf  ;;  %v4830_v16 = vpop.f32.mrf.mxu1  ;;  %v2500_v20 = vrot.slane %v2499_v14, 4  ;;  %v4859_v21 = vld [vmem:[%s5414_s4] ss:$0 sm:$0xff] }
 0x1f6   :  { %v2512_v19 = vmax.f32 %v2510_v5, %v2511_v13  ;;  %v2496_v8 = vmax.f32 %v2494_v6, %v2495_v56  ;;  %v2535_v22 = vrot.slane %v2534_v15, 4  ;;  %v2199_v26 = vmax.f32 %v1785_v41, 0.0 }
 0x1f7   :  { %v3348_v23 = vsel %vm3320_vm5, %v2477_v43, %v2470_v58  ;;  %v2516_v24 = vrot.slane %v2515_v9, 2  ;;  %v1796_v27 = vadd.f32 %v4755_v32, %v4578_v45  ;;  %v4835_v59 = vpop.f32.mrf.mxu1  ;;  %v2501_v31 = vmax.f32 %v2499_v14, %v2500_v20 }
 0x1f8   :  { %v3349_v30 = vsel %vm3322_vm6, %v2484_v50, %v3348_v23  ;;  %v2497_v18 = vrot.slane %v2496_v8, 1  ;;  %v2536_v25 = vmax.f32 %v2534_v15, %v2535_v22  ;;  %v2520_v40 = vsel %vm2295_vm4, %v2199_v26, -inf }
 0x1f9   :  { %v3350_v33 = vsel %vm3324_vm7, %v2491_v63, %v3349_v30  ;;  %v2517_v38 = vmax.f32 %v2515_v9, %v2516_v24  ;;  %v2202_v53 = vmax.f32 %v1796_v27, 0.0  ;;  %v4840_v17 = vpop.f32.mrf.mxu1  ;;  %v2502_v29 = vrot.slane %v2501_v31, 2 }
 0x1fa   :  { %v2498_v44 = vmax.f32 %v2496_v8, %v2497_v18  ;;  %v2537_v47 = vrot.slane %v2536_v25, 2  ;;  %v2521_v48 = vrot.slane %v2520_v40, 4  ;;  %v1788_v50 = vadd.f32 %v4578_v45, %v4761_v2 }
 0x1fb   :  { %v2518_v32 = vrot.slane %v2517_v38, 1  ;;  %v2541_v51 = vsel %vm2295_vm4, %v2202_v53, -inf  ;;  %v1809_v37 = vadd.f32 %v4766_v12, %v4578_v45  ;;  %v4847_v42 = vpop.f32.mrf.mxu1  ;;  %v2503_v36 = vmax.f32 %v2501_v31, %v2502_v29 }
 0x1fc   :  { %v3351_v57 = vsel %vm3326_vm8, %v2498_v44, %v3350_v33  ;;  %v2538_v49 = vmax.f32 %v2536_v25, %v2537_v47  ;;  %v2522_v58 = vmax.f32 %v2520_v40, %v2521_v48  ;;  %v2542_v60 = vrot.slane %v2541_v51, 4 }
 0x1fd   :  { %v2519_v34 = vmax.f32 %v2517_v38, %v2518_v32  ;;  %v2200_v61 = vmax.f32 %v1788_v50, 0.0  ;;  %v2205_v4 = vmax.f32 %v1809_v37, 0.0  ;;  %v4850_v5 = vpop.f32.mrf.mxu1  ;;  %v2504_v6 = vrot.slane %v2503_v36, 1 }
 0x1fe   :  { %v2539_v46 = vrot.slane %v2538_v49, 1  ;;  %v2523_v52 = vrot.slane %v2522_v58, 2  ;;  %v1801_v2 = vadd.f32 %v4578_v45, %v4772_v35  ;;  %v2543_v12 = vmax.f32 %v2541_v51, %v2542_v60 }
 0x1ff   :  { %v2527_v0 = vsel %vm2295_vm4, %v2200_v61, -inf  ;;  %v2562_v7 = vsel %vm2295_vm4, %v2205_v4, -inf  ;;  %v1812_v63 = vadd.f32 %v4859_v21, %v4777_v54  ;;  %v4863_v13 = vpop.f32.mrf.mxu1  ;;  %v2505_v56 = vmax.f32 %v2503_v36, %v2504_v6 }
 0x200   :  { %v2540_v41 = vmax.f32 %v2538_v49, %v2539_v46  ;;  %v2524_v43 = vmax.f32 %v2522_v58, %v2523_v52  ;;  %v2528_v9 = vrot.slane %v2527_v0, 4  ;;  %v2544_v45 = vrot.slane %v2543_v12, 2 }
 0x201   :  { %v2563_v35 = vrot.slane %v2562_v7, 4  ;;  %v2203_v14 = vmax.f32 %v1801_v2, 0.0  ;;  %v2206_v15 = vmax.f32 %v1812_v63, 0.0  ;;  %v4865_v8 = vpop.f32.mrf.mxu1  ;;  %v3352_v20 = vsel %vm3328_vm9, %v2505_v56, %v3351_v57 }
 0x202   :  { %v2525_v22 = vrot.slane %v2524_v43, 1  ;;  %v2529_v23 = vmax.f32 %v2527_v0, %v2528_v9  ;;  %v1804_v24 = vadd.f32 %v4859_v21, %v4786_v1  ;;  %v3353_v54 = vsel %vm3330_vm10, %v2512_v19, %v3352_v20 }
 0x203   :  { %v2545_v26 = vmax.f32 %v2543_v12, %v2544_v45  ;;  %v2564_v27 = vmax.f32 %v2562_v7, %v2563_v35  ;;  %v2548_v30 = vsel %vm2295_vm4, %v2203_v14, -inf  ;;  %v4872_v18 = vpop.f32.mrf.mxu1  ;;  %v3354_v31 = vsel %vm3332_vm11, %v2519_v34, %v3353_v54 }
 0x204   :  { %v2526_v25 = vmax.f32 %v2524_v43, %v2525_v22  ;;  %v2530_v33 = vrot.slane %v2529_v23, 2  ;;  %v2549_v38 = vrot.slane %v2548_v30, 4  ;;  %3458 = vst.msk [vmem:[%s5415_s5 + $0x18] sm:$0xff] %vm2295_vm4, %v3354_v31  ;;  %v2569_v19 = vsel %vm2295_vm4, %v2206_v15, -inf }
 0x205   :  { %v2546_v40 = vrot.slane %v2545_v26, 1  ;;  %v2565_v1 = vrot.slane %v2564_v27, 2  ;;  %v2204_v53 = vmax.f32 %v1804_v24, 0.0  ;;  %v4880_v44 = vpop.f32.mrf.mxu1  ;;  %v2570_v48 = vrot.slane %v2569_v19, 4 }
 0x206   :  { %v2531_v29 = vmax.f32 %v2529_v23, %v2530_v33  ;;  %v2550_v47 = vmax.f32 %v2548_v30, %v2549_v38  ;;  %v1825_v32 = vadd.f32 %v4859_v21, %v4791_v55  ;;  %v1817_v57 = vadd.f32 %v4859_v21, %v4795_v11 }
 0x207   :  { %v2547_v51 = vmax.f32 %v2545_v26, %v2546_v40  ;;  %v2566_v50 = vmax.f32 %v2564_v27, %v2565_v1  ;;  %v2555_v37 = vsel %vm2295_vm4, %v2204_v53, -inf  ;;  %v4887_v36 = vpop.f32.mrf.mxu1  ;;  %v2571_v34 = vmax.f32 %v2569_v19, %v2570_v48 }
 0x208   :  { %v2532_v49 = vrot.slane %v2531_v29, 1  ;;  %v2551_v58 = vrot.slane %v2550_v47, 2  ;;  %v2556_v60 = vrot.slane %v2555_v37, 4  ;;  %v2209_v4 = vmax.f32 %v1825_v32, 0.0 }
 0x209   :  { %v2567_v61 = vrot.slane %v2566_v50, 1  ;;  %v2207_v6 = vmax.f32 %v1817_v57, 0.0  ;;  %v1828_v46 = vadd.f32 %v4859_v21, %v4801_v28  ;;  %v4891_v55 = vpop.f32.mrf.mxu1  ;;  %v2572_v12 = vrot.slane %v2571_v34, 2 }
 0x20a   :  { %v2533_v52 = vmax.f32 %v2531_v29, %v2532_v49  ;;  %v2552_v2 = vmax.f32 %v2550_v47, %v2551_v58  ;;  %v2557_v0 = vmax.f32 %v2555_v37, %v2556_v60  ;;  %v2590_v11 = vsel %vm2295_vm4, %v2209_v4, -inf }
 0x20b   :  { %v2568_v7 = vmax.f32 %v2566_v50, %v2567_v61  ;;  %v2576_v63 = vsel %vm2295_vm4, %v2207_v6, -inf  ;;  %v2210_v56 = vmax.f32 %v1828_v46, 0.0  ;;  %v4895_v43 = vpop.f32.mrf.mxu1  ;;  %v2573_v35 = vmax.f32 %v2571_v34, %v2572_v12 }
 0x20c   :  { %v3355_v9 = vsel %vm3320_vm5, %v2533_v52, %v2526_v25  ;;  %v2553_v45 = vrot.slane %v2552_v2, 1  ;;  %v2558_v14 = vrot.slane %v2557_v0, 2  ;;  %v2591_v15 = vrot.slane %v2590_v11, 4 }
 0x20d   :  { %v3356_v28 = vsel %vm3322_vm6, %v2540_v41, %v3355_v9  ;;  %v2577_v20 = vrot.slane %v2576_v63, 4  ;;  %v2597_v22 = vsel %vm2295_vm4, %v2210_v56, -inf  ;;  %v4900_v23 = vpop.f32.mrf.mxu1  ;;  %v2574_v26 = vrot.slane %v2573_v35, 1 }
 0x20e   :  { %v2554_v24 = vmax.f32 %v2552_v2, %v2553_v45  ;;  %v3357_v54 = vsel %vm3324_vm7, %v2547_v51, %v3356_v28  ;;  %v2559_v27 = vmax.f32 %v2557_v0, %v2558_v14  ;;  %v2592_v30 = vmax.f32 %v2590_v11, %v2591_v15 }
 0x20f   :  { %v2578_v31 = vmax.f32 %v2576_v63, %v2577_v20  ;;  %v2598_v33 = vrot.slane %v2597_v22, 4  ;;  %v1820_v25 = vadd.f32 %v4859_v21, %v4806_v3  ;;  %v4905_v38 = vpop.f32.mrf.mxu1  ;;  %v2575_v40 = vmax.f32 %v2573_v35, %v2574_v26 }
 0x210   :  { %v3358_v41 = vsel %vm3326_vm8, %v2554_v24, %v3357_v54  ;;  %v2560_v1 = vrot.slane %v2559_v27, 1  ;;  %v1841_v19 = vadd.f32 %v4859_v21, %v4811_v39  ;;  %v2593_v53 = vrot.slane %v2592_v30, 2 }
 0x211   :  { %v2579_v29 = vrot.slane %v2578_v31, 2  ;;  %v2599_v47 = vmax.f32 %v2597_v22, %v2598_v33  ;;  %v2208_v48 = vmax.f32 %v1820_v25, 0.0  ;;  %v4910_v32 = vpop.f32.mrf.mxu1  ;;  %v1833_v3 = vadd.f32 %v4859_v21, %v4821_v62 }
 0x212   :  { %v2561_v51 = vmax.f32 %v2559_v27, %v2560_v1  ;;  %v2213_v50 = vmax.f32 %v1841_v19, 0.0  ;;  %v1844_v37 = vadd.f32 %v4859_v21, %v4824_v10  ;;  %v2594_v57 = vmax.f32 %v2592_v30, %v2593_v53 }
 0x213   :  { %v2580_v49 = vmax.f32 %v2578_v31, %v2579_v29  ;;  %v2600_v58 = vrot.slane %v2599_v47, 2  ;;  %v2583_v34 = vsel %vm2295_vm4, %v2208_v48, -inf  ;;  %v4917_v39 = vpop.f32.mrf.mxu1  ;;  %v2211_v6 = vmax.f32 %v1833_v3, 0.0 }
 0x214   :  { %v3359_v60 = vsel %vm3328_vm9, %v2561_v51, %v3358_v41  ;;  %v2584_v61 = vrot.slane %v2583_v34, 4  ;;  %v2618_v4 = vsel %vm2295_vm4, %v2213_v50, -inf  ;;  %v2595_v52 = vrot.slane %v2594_v57, 1 }
 0x215   :  { %v3360_v46 = vsel %vm3330_vm10, %v2568_v7, %v3359_v60  ;;  %v2581_v62 = vrot.slane %v2580_v49, 1  ;;  %v2601_v2 = vmax.f32 %v2599_v47, %v2600_v58  ;;  %v4922_v12 = vpop.f32.mrf.mxu1  ;;  %v2619_v11 = vrot.slane %v2618_v4, 4 }
 0x216   :  { %v3361_v10 = vsel %vm3332_vm11, %v2575_v40, %v3360_v46  ;;  %v2585_v0 = vmax.f32 %v2583_v34, %v2584_v61  ;;  %v2604_v63 = vsel %vm2295_vm4, %v2211_v6, -inf  ;;  %v2596_v56 = vmax.f32 %v2594_v57, %v2595_v52 }
 0x217   :  { %3459 = vst.msk [vmem:[%s5415_s5 + $0x20] sm:$0xff] %vm2295_vm4, %v3361_v10  ;;  %v2582_v9 = vmax.f32 %v2580_v49, %v2581_v62  ;;  %v2602_v45 = vrot.slane %v2601_v2, 1  ;;  %v2605_v7 = vrot.slane %v2604_v63, 4  ;;  %v4930_v35 = vpop.f32.mrf.mxu1  ;;  %v2620_v28 = vmax.f32 %v2618_v4, %v2619_v11 }
 0x218   :  { %v2586_v14 = vrot.slane %v2585_v0, 2  ;;  %v2214_v15 = vmax.f32 %v1844_v37, 0.0  ;;  %v1836_v20 = vadd.f32 %v4859_v21, %v4830_v16  ;;  %v1857_v54 = vadd.f32 %v4859_v21, %v4835_v59 }
 0x219   :  { %v2603_v22 = vmax.f32 %v2601_v2, %v2602_v45  ;;  %v2606_v24 = vmax.f32 %v2604_v63, %v2605_v7  ;;  %v1849_v26 = vadd.f32 %v4859_v21, %v4840_v17  ;;  %v4938_v27 = vpop.f32.mrf.mxu1  ;;  %v2621_v31 = vrot.slane %v2620_v28, 2 }
 0x21a   :  { %v2587_v30 = vmax.f32 %v2585_v0, %v2586_v14  ;;  %v2625_v33 = vsel %vm2295_vm4, %v2214_v15, -inf  ;;  %v2212_v25 = vmax.f32 %v1836_v20, 0.0  ;;  %v2217_v1 = vmax.f32 %v1857_v54, 0.0 }
 0x21b   :  { %v2607_v41 = vrot.slane %v2606_v24, 2  ;;  %v2626_v40 = vrot.slane %v2625_v33, 4  ;;  %v2215_v19 = vmax.f32 %v1849_v26, 0.0  ;;  %v4941_v16 = vpop.f32.mrf.mxu1  ;;  %v2622_v29 = vmax.f32 %v2620_v28, %v2621_v31 }
 0x21c   :  { %v2588_v53 = vrot.slane %v2587_v30, 1  ;;  %v2611_v59 = vsel %vm2295_vm4, %v2212_v25, -inf  ;;  %v1860_v17 = vadd.f32 %v4859_v21, %v4847_v42  ;;  %v2646_v50 = vsel %vm2295_vm4, %v2217_v1, -inf }
 0x21d   :  { %v2608_v47 = vmax.f32 %v2606_v24, %v2607_v41  ;;  %v2627_v48 = vmax.f32 %v2625_v33, %v2626_v40  ;;  %v2612_v51 = vrot.slane %v2611_v59, 4  ;;  %v4947_v3 = vpop.f32.mrf.mxu1  ;;  %v2623_v57 = vrot.slane %v2622_v29, 1 }
 0x21e   :  { %v2589_v37 = vmax.f32 %v2587_v30, %v2588_v53  ;;  %v2647_v49 = vrot.slane %v2646_v50, 4  ;;  %v2632_v58 = vsel %vm2295_vm4, %v2215_v19, -inf  ;;  %v2218_v62 = vmax.f32 %v1860_v17, 0.0 }
 0x21f   :  { %v2609_v34 = vrot.slane %v2608_v47, 1  ;;  %v2628_v60 = vrot.slane %v2627_v48, 2  ;;  %v2613_v61 = vmax.f32 %v2611_v59, %v2612_v51  ;;  %v2633_v4 = vrot.slane %v2632_v58, 4  ;;  %v4950_v6 = vpop.f32.mrf.mxu1 }
 0x220   :  { %v3362_v42 = vsel %vm3320_vm5, %v2589_v37, %v2582_v9  ;;  %v2624_v46 = vmax.f32 %v2622_v29, %v2623_v57  ;;  %v2648_v52 = vmax.f32 %v2646_v50, %v2647_v49  ;;  %v2653_v28 = vsel %vm2295_vm4, %v2218_v62, -inf }
 0x221   :  { %v3363_v2 = vsel %vm3322_vm6, %v2596_v56, %v3362_v42  ;;  %v2610_v10 = vmax.f32 %v2608_v47, %v2609_v34  ;;  %v2629_v0 = vmax.f32 %v2627_v48, %v2628_v60  ;;  %v2614_v11 = vrot.slane %v2613_v61, 2  ;;  %v4954_v63 = vpop.f32.mrf.mxu1 }
 0x222   :  { %v3364_v45 = vsel %vm3324_vm7, %v2603_v22, %v3363_v2  ;;  %v2649_v7 = vrot.slane %v2648_v52, 2  ;;  %v2634_v14 = vmax.f32 %v2632_v58, %v2633_v4  ;;  %v2654_v24 = vrot.slane %v2653_v28, 4 }
 0x223   :  { %v3365_v15 = vsel %vm3326_vm8, %v2610_v10, %v3364_v45  ;;  %v2630_v20 = vrot.slane %v2629_v0, 1  ;;  %v2615_v9 = vmax.f32 %v2613_v61, %v2614_v11  ;;  %v4959_v54 = vpop.f32.mrf.mxu1  ;;  %v1852_v30 = vadd.f32 %v4859_v21, %v4850_v5 }
 0x224   :  { %v2650_v26 = vmax.f32 %v2648_v52, %v2649_v7  ;;  %v2635_v56 = vrot.slane %v2634_v14, 2  ;;  %v1873_v31 = vadd.f32 %v4859_v21, %v4863_v13  ;;  %v2655_v25 = vmax.f32 %v2653_v28, %v2654_v24 }
 0x225   :  { %v2631_v22 = vmax.f32 %v2629_v0, %v2630_v20  ;;  %v2616_v33 = vrot.slane %v2615_v9, 1  ;;  %v1865_v41 = vadd.f32 %v4859_v21, %v4865_v8  ;;  %v4967_v40 = vpop.f32.mrf.mxu1  ;;  %v2216_v53 = vmax.f32 %v1852_v30, 0.0 }
 0x226   :  { %v2651_v1 = vrot.slane %v2650_v26, 1  ;;  %v2636_v19 = vmax.f32 %v2634_v14, %v2635_v56  ;;  %v2221_v29 = vmax.f32 %v1873_v31, 0.0  ;;  %v2656_v17 = vrot.slane %v2655_v25, 2 }
 0x227   :  { %v2617_v59 = vmax.f32 %v2615_v9, %v2616_v33  ;;  %v2219_v47 = vmax.f32 %v1865_v41, 0.0  ;;  %v1876_v5 = vadd.f32 %v4859_v21, %v4872_v18  ;;  %v4971_v48 = vpop.f32.mrf.mxu1  ;;  %v2639_v50 = vsel %vm2295_vm4, %v2216_v53, -inf }
 0x228   :  { %v4973_v13 = vmax.f32 %v2650_v26, %v2651_v1  ;;  %v2637_v51 = vrot.slane %v2636_v19, 1  ;;  %v2674_v8 = vsel %vm2295_vm4, %v2221_v29, -inf  ;;  %v2657_v57 = vmax.f32 %v2655_v25, %v2656_v17 }
 0x229   :  { %v3366_v37 = vsel %vm3328_vm9, %v2617_v59, %v3365_v15  ;;  %v2640_v49 = vrot.slane %v2639_v50, 4  ;;  %v2675_v58 = vrot.slane %v2674_v8, 4  ;;  %v4978_v34 = vpop.f32.mrf.mxu1  ;;  %v2660_v18 = vsel %vm2295_vm4, %v2219_v47, -inf }
 0x22a   :  { %v3367_v60 = vsel %vm3330_vm10, %v2624_v46, %v3366_v37  ;;  %v2638_v61 = vmax.f32 %v2636_v19, %v2637_v51  ;;  %v2222_v4 = vmax.f32 %v1876_v5, 0.0  ;;  %v2658_v52 = vrot.slane %v2657_v57, 1 }
 0x22b   :  { %v3368_v42 = vsel %vm3332_vm11, %v2631_v22, %v3367_v60  ;;  %v2641_v62 = vmax.f32 %v2639_v50, %v2640_v49  ;;  %v2676_v2 = vmax.f32 %v2674_v8, %v2675_v58  ;;  %v4983_v10 = vpop.f32.mrf.mxu1  ;;  %v2661_v0 = vrot.slane %v2660_v18, 4 }
 0x22c   :  { %3460 = vst.msk [vmem:[%s5415_s5 + $0x28] sm:$0xff] %vm2295_vm4, %v3368_v42  ;;  %v2681_v11 = vsel %vm2295_vm4, %v2222_v4, -inf  ;;  %v1868_v46 = vadd.f32 %v4859_v21, %v4880_v44  ;;  %v1889_v45 = vadd.f32 %v4859_v21, %v4887_v36  ;;  %v2659_v7 = vmax.f32 %v2657_v57, %v2658_v52 }
 0x22d   :  { %v2642_v14 = vrot.slane %v2641_v62, 2  ;;  %v2677_v28 = vrot.slane %v2676_v2, 2  ;;  %v2682_v15 = vrot.slane %v2681_v11, 4  ;;  %v4994_v20 = vpop.f32.mrf.mxu1  ;;  %v2662_v9 = vmax.f32 %v2660_v18, %v2661_v0 }
 0x22e   :  { %v2220_v24 = vmax.f32 %v1868_v46, 0.0  ;;  %v2225_v26 = vmax.f32 %v1889_v45, 0.0  ;;  %v1881_v56 = vadd.f32 %v4859_v21, %v4891_v55  ;;  %v1892_v44 = vadd.f32 %v4859_v21, %v4895_v43 }
 0x22f   :  { %v2643_v30 = vmax.f32 %v2641_v62, %v2642_v14  ;;  %v2678_v31 = vmax.f32 %v2676_v2, %v2677_v28  ;;  %v2683_v22 = vmax.f32 %v2681_v11, %v2682_v15  ;;  %v5000_v33 = vpop.f32.mrf.mxu1  ;;  %v2663_v36 = vrot.slane %v2662_v9, 2 }
 0x230   :  { %v2667_v25 = vsel %vm2295_vm4, %v2220_v24, -inf  ;;  %v2702_v41 = vsel %vm2295_vm4, %v2225_v26, -inf  ;;  %v2223_v1 = vmax.f32 %v1881_v56, 0.0  ;;  %v2226_v51 = vmax.f32 %v1892_v44, 0.0 }
 0x231   :  { %v2644_v19 = vrot.slane %v2643_v30, 1  ;;  %v2679_v53 = vrot.slane %v2678_v31, 1  ;;  %v2684_v29 = vrot.slane %v2683_v22, 2  ;;  %v2668_v59 = vrot.slane %v2667_v25, 4  ;;  %v5004_v17 = vpop.f32.mrf.mxu1 }
 0x232   :  { %v2664_v55 = vmax.f32 %v2662_v9, %v2663_v36  ;;  %v2703_v47 = vrot.slane %v2702_v41, 4  ;;  %v2688_v5 = vsel %vm2295_vm4, %v2223_v1, -inf  ;;  %v2709_v18 = vsel %vm2295_vm4, %v2226_v51, -inf }
 0x233   :  { %v2645_v43 = vmax.f32 %v2643_v30, %v2644_v19  ;;  %v2680_v50 = vmax.f32 %v2678_v31, %v2679_v53  ;;  %v2685_v8 = vmax.f32 %v2683_v22, %v2684_v29  ;;  %v2669_v37 = vmax.f32 %v2667_v25, %v2668_v59  ;;  %v5007_v57 = vpop.f32.mrf.mxu1 }
 0x234   :  { %v2665_v49 = vrot.slane %v2664_v55, 1  ;;  %v2704_v58 = vmax.f32 %v2702_v41, %v2703_v47  ;;  %v2689_v60 = vrot.slane %v2688_v5, 4  ;;  %v2710_v62 = vrot.slane %v2709_v18, 4 }
 0x235   :  { %v3369_v4 = vsel %vm3320_vm5, %v2645_v43, %v2638_v61  ;;  %v2686_v42 = vrot.slane %v2685_v8, 1  ;;  %v2670_v52 = vrot.slane %v2669_v37, 2  ;;  %v5011_v2 = vpop.f32.mrf.mxu1  ;;  %v1884_v30 = vadd.f32 %v4859_v21, %v4900_v23 }
 0x236   :  { %v3370_v0 = vsel %vm3322_vm6, %v4973_v13, %v3369_v4  ;;  %v2666_v11 = vmax.f32 %v2664_v55, %v2665_v49  ;;  %v2705_v46 = vrot.slane %v2704_v58, 2  ;;  %v2690_v45 = vmax.f32 %v2688_v5, %v2689_v60 }
 0x237   :  { %v3371_v14 = vsel %vm3324_vm7, %v2659_v7, %v3370_v0  ;;  %v2687_v28 = vmax.f32 %v2685_v8, %v2686_v42  ;;  %v2671_v15 = vmax.f32 %v2669_v37, %v2670_v52  ;;  %v2711_v9 = vmax.f32 %v2709_v18, %v2710_v62  ;;  %v5016_v24 = vpop.f32.mrf.mxu1 }
 0x238   :  { %v3372_v61 = vsel %vm3326_vm8, %v2666_v11, %v3371_v14  ;;  %v2706_v26 = vmax.f32 %v2704_v58, %v2705_v46  ;;  %v2691_v56 = vrot.slane %v2690_v45, 2  ;;  %v1905_v13 = vadd.f32 %v4859_v21, %v4905_v38 }
 0x239   :  { %v2672_v31 = vrot.slane %v2671_v15, 1  ;;  %v2712_v22 = vrot.slane %v2711_v9, 2  ;;  %v1897_v7 = vadd.f32 %v4859_v21, %v4910_v32  ;;  %v5025_v44 = vpop.f32.mrf.mxu1  ;;  %v2224_v41 = vmax.f32 %v1884_v30, 0.0 }
 0x23a   :  { %v2707_v36 = vrot.slane %v2706_v26, 1  ;;  %v2692_v25 = vmax.f32 %v2690_v45, %v2691_v56  ;;  %v1908_v1 = vadd.f32 %v4859_v21, %v4917_v39  ;;  %v2229_v29 = vmax.f32 %v1905_v13, 0.0 }
 0x23b   :  { %v2673_v19 = vmax.f32 %v2671_v15, %v2672_v31  ;;  %v2713_v53 = vmax.f32 %v2711_v9, %v2712_v22  ;;  %v2227_v23 = vmax.f32 %v1897_v7, 0.0  ;;  %v5029_v59 = vpop.f32.mrf.mxu1  ;;  %v2695_v47 = vsel %vm2295_vm4, %v2224_v41, -inf }
 0x23c   :  { %v5031_v55 = vmax.f32 %v2706_v26, %v2707_v36  ;;  %v2693_v38 = vrot.slane %v2692_v25, 1  ;;  %v2230_v32 = vmax.f32 %v1908_v1, 0.0  ;;  %v2696_v43 = vrot.slane %v2695_v47, 4 }
 0x23d   :  { %v3373_v5 = vsel %vm3328_vm9, %v2673_v19, %v3372_v61  ;;  %v2714_v51 = vrot.slane %v2713_v53, 1  ;;  %v2730_v8 = vsel %vm2295_vm4, %v2229_v29, -inf  ;;  %v5036_v37 = vpop.f32.mrf.mxu1  ;;  %v2716_v60 = vsel %vm2295_vm4, %v2227_v23, -inf }
 0x23e   :  { %v3374_v39 = vsel %vm3330_vm10, %v2680_v50, %v3373_v5  ;;  %v2694_v49 = vmax.f32 %v2692_v25, %v2693_v38  ;;  %v2731_v58 = vrot.slane %v2730_v8, 4  ;;  %v2697_v42 = vmax.f32 %v2695_v47, %v2696_v43 }
 0x23f   :  { %v3375_v18 = vsel %vm3332_vm11, %v2687_v28, %v3374_v39  ;;  %v2715_v4 = vmax.f32 %v2713_v53, %v2714_v51  ;;  %v2717_v52 = vrot.slane %v2716_v60, 4  ;;  %v5041_v62 = vpop.f32.mrf.mxu1  ;;  %v2737_v11 = vsel %vm2295_vm4, %v2230_v32, -inf }
 0x240   :  { %3461 = vst.msk [vmem:[%s5415_s5 + $0x30] sm:$0xff] %vm2295_vm4, %v3375_v18  ;;  %v2732_v0 = vmax.f32 %v2730_v8, %v2731_v58  ;;  %v1900_v50 = vadd.f32 %v4859_v21, %v4922_v12  ;;  %v1921_v46 = vadd.f32 %v4859_v21, %v4930_v35  ;;  %v2698_v45 = vrot.slane %v2697_v42, 2 }
 0x241   :  { %v2718_v14 = vmax.f32 %v2716_v60, %v2717_v52  ;;  %v2738_v28 = vrot.slane %v2737_v11, 4  ;;  %v1913_v15 = vadd.f32 %v4859_v21, %v4938_v27  ;;  %v5054_v9 = vpop.f32.mrf.mxu1  ;;  %v1924_v30 = vadd.f32 %v4859_v21, %v4941_v16 }
 0x242   :  { %v2733_v61 = vrot.slane %v2732_v0, 2  ;;  %v2228_v26 = vmax.f32 %v1900_v50, 0.0  ;;  %v2233_v56 = vmax.f32 %v1921_v46, 0.0  ;;  %v2699_v31 = vmax.f32 %v2697_v42, %v2698_v45 }
 0x243   :  { %v2719_v22 = vrot.slane %v2718_v14, 2  ;;  %v2739_v12 = vmax.f32 %v2737_v11, %v2738_v28  ;;  %v2231_v13 = vmax.f32 %v1913_v15, 0.0  ;;  %v5058_v7 = vpop.f32.mrf.mxu1  ;;  %v2234_v27 = vmax.f32 %v1924_v30, 0.0 }
 0x244   :  { %v2734_v35 = vmax.f32 %v2732_v0, %v2733_v61  ;;  %v2723_v36 = vsel %vm2295_vm4, %v2228_v26, -inf  ;;  %v2758_v25 = vsel %vm2295_vm4, %v2233_v56, -inf  ;;  %v2700_v41 = vrot.slane %v2699_v31, 1 }
 0x245   :  { %v2720_v1 = vmax.f32 %v2718_v14, %v2719_v22  ;;  %v2740_v19 = vrot.slane %v2739_v12, 2  ;;  %v2724_v53 = vrot.slane %v2723_v36, 4  ;;  %v5062_v29 = vpop.f32.mrf.mxu1  ;;  %v2759_v16 = vrot.slane %v2758_v25, 4 }
 0x246   :  { %v2735_v23 = vrot.slane %v2734_v35, 1  ;;  %v2744_v38 = vsel %vm2295_vm4, %v2231_v13, -inf  ;;  %v2765_v47 = vsel %vm2295_vm4, %v2234_v27, -inf  ;;  %v2701_v32 = vmax.f32 %v2699_v31, %v2700_v41 }
 0x247   :  { %v2721_v5 = vrot.slane %v2720_v1, 1  ;;  %v2741_v51 = vmax.f32 %v2739_v12, %v2740_v19  ;;  %v2725_v43 = vmax.f32 %v2723_v36, %v2724_v53  ;;  %v5066_v8 = vpop.f32.mrf.mxu1  ;;  %v2760_v58 = vmax.f32 %v2758_v25, %v2759_v16 }
 0x248   :  { %v2736_v39 = vmax.f32 %v2734_v35, %v2735_v23  ;;  %v2745_v60 = vrot.slane %v2744_v38, 4  ;;  %v2766_v18 = vrot.slane %v2765_v47, 4  ;;  %v3376_v42 = vsel %vm3320_vm5, %v2701_v32, %v2694_v49 }
 0x249   :  { %v2722_v52 = vmax.f32 %v2720_v1, %v2721_v5  ;;  %v2742_v0 = vrot.slane %v2741_v51, 1  ;;  %v2726_v11 = vrot.slane %v2725_v43, 2  ;;  %v5069_v50 = vpop.f32.mrf.mxu1  ;;  %v3377_v46 = vsel %vm3322_vm6, %v5031_v55, %v3376_v42 }
 0x24a   :  { %v2761_v45 = vrot.slane %v2760_v58, 2  ;;  %v2746_v14 = vmax.f32 %v2744_v38, %v2745_v60  ;;  %v2767_v28 = vmax.f32 %v2765_v47, %v2766_v18  ;;  %v3378_v15 = vsel %vm3324_vm7, %v2715_v4, %v3377_v46 }
 0x24b   :  { %v2743_v61 = vmax.f32 %v2741_v51, %v2742_v0  ;;  %v2727_v26 = vmax.f32 %v2725_v43, %v2726_v11  ;;  %v1916_v56 = vadd.f32 %v4859_v21, %v4947_v3  ;;  %v5076_v30 = vpop.f32.mrf.mxu1  ;;  %v3379_v49 = vsel %vm3326_vm8, %v2722_v52, %v3378_v15 }
 0x24c   :  { %v2762_v31 = vmax.f32 %v2760_v58, %v2761_v45  ;;  %v2747_v22 = vrot.slane %v2746_v14, 2  ;;  %v2768_v12 = vrot.slane %v2767_v28, 2  ;;  %v1937_v55 = vadd.f32 %v4859_v21, %v4950_v6 }
 0x24d   :  { %v2728_v13 = vrot.slane %v2727_v26, 1  ;;  %v2232_v35 = vmax.f32 %v1916_v56, 0.0  ;;  %v1929_v4 = vadd.f32 %v4859_v21, %v4954_v63  ;;  %v5083_v36 = vpop.f32.mrf.mxu1  ;;  %v1940_v41 = vadd.f32 %v4859_v21, %v4959_v54 }
 0x24e   :  { %v2763_v25 = vrot.slane %v2762_v31, 1  ;;  %v2748_v27 = vmax.f32 %v2746_v14, %v2747_v22  ;;  %v2769_v3 = vmax.f32 %v2767_v28, %v2768_v12  ;;  %v2237_v53 = vmax.f32 %v1937_v55, 0.0 }
 0x24f   :  { %v2729_v1 = vmax.f32 %v2727_v26, %v2728_v13  ;;  %v2751_v19 = vsel %vm2295_vm4, %v2232_v35, -inf  ;;  %v2235_v23 = vmax.f32 %v1929_v4, 0.0  ;;  %v5088_v16 = vpop.f32.mrf.mxu1  ;;  %v2238_v43 = vmax.f32 %v1940_v41, 0.0 }
 0x250   :  { %v2764_v38 = vmax.f32 %v2762_v31, %v2763_v25  ;;  %v2749_v6 = vrot.slane %v2748_v27, 1  ;;  %v2770_v47 = vrot.slane %v2769_v3, 1  ;;  %v2752_v32 = vrot.slane %v2751_v19, 4 }
 0x251   :  { %v3380_v63 = vsel %vm3328_vm9, %v2729_v1, %v3379_v49  ;;  %v2786_v5 = vsel %vm2295_vm4, %v2237_v53, -inf  ;;  %v2772_v51 = vsel %vm2295_vm4, %v2235_v23, -inf  ;;  %v5093_v58 = vpop.f32.mrf.mxu1  ;;  %v2793_v46 = vsel %vm2295_vm4, %v2238_v43, -inf }
 0x252   :  { %v3381_v54 = vsel %vm3330_vm10, %v2736_v39, %v3380_v63  ;;  %v2750_v60 = vmax.f32 %v2748_v27, %v2749_v6  ;;  %v2771_v18 = vmax.f32 %v2769_v3, %v2770_v47  ;;  %v2753_v42 = vmax.f32 %v2751_v19, %v2752_v32 }
 0x253   :  { %v3382_v52 = vsel %vm3332_vm11, %v2743_v61, %v3381_v54  ;;  %v2787_v0 = vrot.slane %v2786_v5, 4  ;;  %v2773_v11 = vrot.slane %v2772_v51, 4  ;;  %v2794_v14 = vrot.slane %v2793_v46, 4  ;;  %v5106_v15 = vpop.f32.mrf.mxu1 }
 0x254   :  { %3462 = vst.msk [vmem:[%s5415_s5 + $0x38] sm:$0xff] %vm2295_vm4, %v3382_v52  ;;  %v2754_v45 = vrot.slane %v2753_v42, 2  ;;  %v1932_v28 = vadd.f32 %v4859_v21, %v4967_v40  ;;  %v1953_v39 = vadd.f32 %v4859_v21, %v4971_v48  ;;  %v1945_v56 = vadd.f32 %v4859_v21, %v4978_v34 }
 0x255   :  { %v2788_v61 = vmax.f32 %v2786_v5, %v2787_v0  ;;  %v2774_v26 = vmax.f32 %v2772_v51, %v2773_v11  ;;  %v1956_v49 = vadd.f32 %v4859_v21, %v4983_v10  ;;  %v2795_v22 = vmax.f32 %v2793_v46, %v2794_v14  ;;  %v5114_v41 = vpop.f32.mrf.mxu1 }
 0x256   :  { %v2755_v31 = vmax.f32 %v2753_v42, %v2754_v45  ;;  %v2236_v12 = vmax.f32 %v1932_v28, 0.0  ;;  %v2241_v13 = vmax.f32 %v1953_v39, 0.0  ;;  %v2239_v40 = vmax.f32 %v1945_v56, 0.0 }
 0x257   :  { %v2789_v35 = vrot.slane %v2788_v61, 2  ;;  %v2775_v55 = vrot.slane %v2774_v26, 2  ;;  %v2242_v4 = vmax.f32 %v1956_v49, 0.0  ;;  %v2796_v48 = vrot.slane %v2795_v22, 2  ;;  %v5119_v0 = vpop.f32.mrf.mxu1 }
 0x258   :  { %v2756_v25 = vrot.slane %v2755_v31, 1  ;;  %v2779_v27 = vsel %vm2295_vm4, %v2236_v12, -inf  ;;  %v2814_v3 = vsel %vm2295_vm4, %v2241_v13, -inf  ;;  %v2800_v6 = vsel %vm2295_vm4, %v2239_v40, -inf }
 0x259   :  { %v2790_v34 = vmax.f32 %v2788_v61, %v2789_v35  ;;  %v2776_v1 = vmax.f32 %v2774_v26, %v2775_v55  ;;  %v2780_v19 = vrot.slane %v2779_v27, 4  ;;  %v2815_v10 = vrot.slane %v2814_v3, 4  ;;  %v5130_v35 = vpop.f32.mrf.mxu1 }
 0x25a   :  { %v2757_v53 = vmax.f32 %v2755_v31, %v2756_v25  ;;  %v2797_v23 = vmax.f32 %v2795_v22, %v2796_v48  ;;  %v2821_v47 = vsel %vm2295_vm4, %v2242_v4, -inf  ;;  %v2801_v42 = vrot.slane %v2800_v6, 4 }
 0x25b   :  { %v2791_v32 = vrot.slane %v2790_v34, 1  ;;  %v2777_v63 = vrot.slane %v2776_v1, 1  ;;  %v2781_v5 = vmax.f32 %v2779_v27, %v2780_v19  ;;  %v2816_v51 = vmax.f32 %v2814_v3, %v2815_v10 }
 0x25c   :  { %v3383_v43 = vsel %vm3320_vm5, %v2757_v53, %v2750_v60  ;;  %v2798_v54 = vrot.slane %v2797_v23, 1  ;;  %v2822_v52 = vrot.slane %v2821_v47, 4  ;;  %v2802_v26 = vmax.f32 %v2800_v6, %v2801_v42 }
 0x25d   :  { %v3384_v11 = vsel %vm3322_vm6, %v2764_v38, %v3383_v43  ;;  %v2792_v46 = vmax.f32 %v2790_v34, %v2791_v32  ;;  %v2778_v45 = vmax.f32 %v2776_v1, %v2777_v63  ;;  %v2782_v14 = vrot.slane %v2781_v5, 2 }
 0x25e   :  { %v3385_v28 = vsel %vm3324_vm7, %v2771_v18, %v3384_v11  ;;  %v2799_v39 = vmax.f32 %v2797_v23, %v2798_v54  ;;  %v2817_v61 = vrot.slane %v2816_v51, 2  ;;  %v2823_v31 = vmax.f32 %v2821_v47, %v2822_v52  ;;  %v5136_v23 = vpop.f32.mrf.mxu1 }
 0x25f   :  { %v3386_v56 = vsel %vm3326_vm8, %v2778_v45, %v3385_v28  ;;  %v2783_v49 = vmax.f32 %v2781_v5, %v2782_v14  ;;  %v1948_v60 = vadd.f32 %v4859_v21, %v4994_v20  ;;  %v2803_v12 = vrot.slane %v2802_v26, 2 }
 0x260   :  { %v2818_v22 = vmax.f32 %v2816_v51, %v2817_v61  ;;  %v1969_v38 = vadd.f32 %v4859_v21, %v5000_v33  ;;  %v1961_v13 = vadd.f32 %v4859_v21, %v5004_v17  ;;  %v2824_v55 = vrot.slane %v2823_v31, 2  ;;  %v5149_v61 = vpop.f32.mrf.mxu1 }
 0x261   :  { %v2784_v18 = vrot.slane %v2783_v49, 1  ;;  %v2240_v40 = vmax.f32 %v1948_v60, 0.0  ;;  %v1972_v4 = vadd.f32 %v4859_v21, %v5007_v57  ;;  %v2804_v48 = vmax.f32 %v2802_v26, %v2803_v12 }
 0x262   :  { %v2819_v25 = vrot.slane %v2818_v22, 1  ;;  %v2245_v27 = vmax.f32 %v1969_v38, 0.0  ;;  %v2243_v20 = vmax.f32 %v1961_v13, 0.0  ;;  %v2825_v34 = vmax.f32 %v2823_v31, %v2824_v55 }
 0x263   :  { %v2785_v3 = vmax.f32 %v2783_v49, %v2784_v18  ;;  %v2807_v1 = vsel %vm2295_vm4, %v2240_v40, -inf  ;;  %v2246_v33 = vmax.f32 %v1972_v4, 0.0  ;;  %v2805_v10 = vrot.slane %v2804_v48, 1 }
 0x264   :  { %v2820_v19 = vmax.f32 %v2818_v22, %v2819_v25  ;;  %v2808_v17 = vrot.slane %v2807_v1, 4  ;;  %v2842_v53 = vsel %vm2295_vm4, %v2245_v27, -inf  ;;  %v2826_v47 = vrot.slane %v2825_v34, 1 }
 0x265   :  { %v3387_v6 = vsel %vm3328_vm9, %v2785_v3, %v3386_v56  ;;  %v2843_v57 = vrot.slane %v2842_v53, 4  ;;  %v2828_v32 = vsel %vm2295_vm4, %v2243_v20, -inf  ;;  %v2806_v5 = vmax.f32 %v2804_v48, %v2805_v10 }
 0x266   :  { %v3388_v63 = vsel %vm3330_vm10, %v2792_v46, %v3387_v6  ;;  %v2809_v51 = vmax.f32 %v2807_v1, %v2808_v17  ;;  %v2829_v43 = vrot.slane %v2828_v32, 4  ;;  %v2827_v42 = vmax.f32 %v2825_v34, %v2826_v47 }
 0x267   :  { %v3389_v54 = vsel %vm3332_vm11, %v2799_v39, %v3388_v63  ;;  %v2844_v52 = vmax.f32 %v2842_v53, %v2843_v57  ;;  %v2849_v11 = vsel %vm2295_vm4, %v2246_v33, -inf  ;;  %v1964_v46 = vadd.f32 %v4859_v21, %v5011_v2 }
 0x268   :  { %3463 = vst.msk [vmem:[%s5415_s5 + $0x40] sm:$0xff] %vm2295_vm4, %v3389_v54  ;;  %v2810_v45 = vrot.slane %v2809_v51, 2  ;;  %v2830_v14 = vmax.f32 %v2828_v32, %v2829_v43  ;;  %v2850_v28 = vrot.slane %v2849_v11, 4  ;;  %v1985_v39 = vadd.f32 %v4859_v21, %v5016_v24  ;;  %v5158_v24 = vpop.f32.mrf.mxu1 }
 0x269   :  { %v2845_v26 = vrot.slane %v2844_v52, 2  ;;  %v1977_v56 = vadd.f32 %v4859_v21, %v5025_v44  ;;  %v1988_v49 = vadd.f32 %v4859_v21, %v5029_v59  ;;  %v2244_v12 = vmax.f32 %v1964_v46, 0.0 }
 0x26a   :  { %v2811_v31 = vmax.f32 %v2809_v51, %v2810_v45  ;;  %v2831_v60 = vrot.slane %v2830_v14, 2  ;;  %v2851_v22 = vmax.f32 %v2849_v11, %v2850_v28  ;;  %v2249_v13 = vmax.f32 %v1985_v39, 0.0  ;;  %v5164_v32 = vpop.f32.mrf.mxu1 }
 0x26b   :  { %v2846_v38 = vmax.f32 %v2844_v52, %v2845_v26  ;;  %v2247_v18 = vmax.f32 %v1977_v56, 0.0  ;;  %v2250_v2 = vmax.f32 %v1988_v49, 0.0  ;;  %v2835_v25 = vsel %vm2295_vm4, %v2244_v12, -inf }
 0x26c   :  { %v2812_v55 = vrot.slane %v2811_v31, 1  ;;  %v2832_v40 = vmax.f32 %v2830_v14, %v2831_v60  ;;  %v2852_v4 = vrot.slane %v2851_v22, 2  ;;  %v2836_v44 = vrot.slane %v2835_v25, 4  ;;  %v5171_v14 = vld [vmem:[%s5414_s4] ss:$0 sm:$0xff] }
 0x26d   :  { %v2847_v48 = vrot.slane %v2846_v38, 1  ;;  %v2870_v27 = vsel %vm2295_vm4, %v2249_v13, -inf  ;;  %v2856_v21 = vsel %vm2295_vm4, %v2247_v18, -inf  ;;  %v2877_v17 = vsel %vm2295_vm4, %v2250_v2, -inf }
 0x26e   :  { %v2813_v59 = vmax.f32 %v2811_v31, %v2812_v55  ;;  %v2833_v20 = vrot.slane %v2832_v40, 1  ;;  %v2853_v3 = vmax.f32 %v2851_v22, %v2852_v4  ;;  %v2871_v34 = vrot.slane %v2870_v27, 4  ;;  %v5180_v31 = vpop.f32.mrf.mxu1 }
 0x26f   :  { %v2848_v1 = vmax.f32 %v2846_v38, %v2847_v48  ;;  %v2837_v33 = vmax.f32 %v2835_v25, %v2836_v44  ;;  %v2857_v10 = vrot.slane %v2856_v21, 4  ;;  %v2878_v54 = vrot.slane %v2877_v17, 4 }
 0x270   :  { %v3390_v53 = vsel %vm3320_vm5, %v2813_v59, %v2806_v5  ;;  %v2834_v6 = vmax.f32 %v2832_v40, %v2833_v20  ;;  %v2854_v47 = vrot.slane %v2853_v3, 1  ;;  %v2872_v57 = vmax.f32 %v2870_v27, %v2871_v34  ;;  %v5187_v27 = vpop.f32.mrf.mxu1 }
 0x271   :  { %v3391_v63 = vsel %vm3322_vm6, %v2820_v19, %v3390_v53  ;;  %v2838_v51 = vrot.slane %v2837_v33, 2  ;;  %v2858_v43 = vmax.f32 %v2856_v21, %v2857_v10  ;;  %v1980_v5 = vadd.f32 %v5171_v14, %v5036_v37 }
 0x272   :  { %v3392_v52 = vsel %vm3324_vm7, %v2827_v42, %v3391_v63  ;;  %v2855_v11 = vmax.f32 %v2853_v3, %v2854_v47  ;;  %v2873_v45 = vrot.slane %v2872_v57, 2  ;;  %v2879_v19 = vmax.f32 %v2877_v17, %v2878_v54 }
 0x273   :  { %v3393_v28 = vsel %vm3326_vm8, %v2834_v6, %v3392_v52  ;;  %v2839_v46 = vmax.f32 %v2837_v33, %v2838_v51  ;;  %v2859_v26 = vrot.slane %v2858_v43, 2  ;;  %v2248_v56 = vmax.f32 %v1980_v5, 0.0 }
 0x274   :  { %v2874_v39 = vmax.f32 %v2872_v57, %v2873_v45  ;;  %v2001_v42 = vadd.f32 %v5171_v14, %v5041_v62  ;;  %v1993_v49 = vadd.f32 %v5171_v14, %v5054_v9  ;;  %v2880_v12 = vrot.slane %v2879_v19, 2 }
 0x275   :  { %v2840_v60 = vrot.slane %v2839_v46, 1  ;;  %v2860_v22 = vmax.f32 %v2858_v43, %v2859_v26  ;;  %v2004_v37 = vadd.f32 %v5171_v14, %v5058_v7  ;;  %v2863_v13 = vsel %vm2295_vm4, %v2248_v56, -inf  ;;  %v5201_v43 = vpop.f32.mrf.mxu1 }
 0x276   :  { %v2875_v38 = vrot.slane %v2874_v39, 1  ;;  %v2253_v18 = vmax.f32 %v2001_v42, 0.0  ;;  %v2251_v2 = vmax.f32 %v1993_v49, 0.0  ;;  %v2881_v4 = vmax.f32 %v2879_v19, %v2880_v12 }
 0x277   :  { %v2841_v55 = vmax.f32 %v2839_v46, %v2840_v60  ;;  %v2861_v40 = vrot.slane %v2860_v22, 1  ;;  %v2864_v62 = vrot.slane %v2863_v13, 4  ;;  %v2254_v44 = vmax.f32 %v2004_v37, 0.0 }
 0x278   :  { %v2876_v25 = vmax.f32 %v2874_v39, %v2875_v38  ;;  %v2898_v9 = vsel %vm2295_vm4, %v2253_v18, -inf  ;;  %v2884_v48 = vsel %vm2295_vm4, %v2251_v2, -inf  ;;  %v2882_v59 = vrot.slane %v2881_v4, 1 }
 0x279   :  { %v3394_v21 = vsel %vm3328_vm9, %v2841_v55, %v3393_v28  ;;  %v2862_v7 = vmax.f32 %v2860_v22, %v2861_v40  ;;  %v2865_v20 = vmax.f32 %v2863_v13, %v2864_v62  ;;  %v2899_v34 = vrot.slane %v2898_v9, 4  ;;  %v5209_v22 = vpop.f32.mrf.mxu1 }
 0x27a   :  { %v3395_v3 = vsel %vm3330_vm10, %v2848_v1, %v3394_v21  ;;  %v2885_v33 = vrot.slane %v2884_v48, 4  ;;  %v2905_v10 = vsel %vm2295_vm4, %v2254_v44, -inf  ;;  %v2883_v53 = vmax.f32 %v2881_v4, %v2882_v59 }
 0x27b   :  { %v3396_v17 = vsel %vm3332_vm11, %v2855_v11, %v3395_v3  ;;  %v2866_v6 = vrot.slane %v2865_v20, 2  ;;  %v2906_v47 = vrot.slane %v2905_v10, 4  ;;  %v2900_v57 = vmax.f32 %v2898_v9, %v2899_v34  ;;  %v5215_v59 = vpop.f32.mrf.mxu1 }
 0x27c   :  { %3464 = vst.msk [vmem:[%s5415_s5 + $0x48] sm:$0xff] %vm2295_vm4, %v3396_v17  ;;  %v2886_v63 = vmax.f32 %v2884_v48, %v2885_v33  ;;  %v1996_v51 = vadd.f32 %v5171_v14, %v5062_v29  ;;  %v2017_v1 = vadd.f32 %v5171_v14, %v5066_v8  ;;  %v2009_v11 = vadd.f32 %v5171_v14, %v5069_v50 }
 0x27d   :  { %v2867_v54 = vmax.f32 %v2865_v20, %v2866_v6  ;;  %v2907_v52 = vmax.f32 %v2905_v10, %v2906_v47  ;;  %v2020_v45 = vadd.f32 %v5171_v14, %v5076_v30  ;;  %v2901_v5 = vrot.slane %v2900_v57, 2 }
 0x27e   :  { %v2887_v28 = vrot.slane %v2886_v63, 2  ;;  %v2252_v46 = vmax.f32 %v1996_v51, 0.0  ;;  %v2257_v26 = vmax.f32 %v2017_v1, 0.0  ;;  %v2255_v29 = vmax.f32 %v2009_v11, 0.0 }
 0x27f   :  { %v2868_v19 = vrot.slane %v2867_v54, 1  ;;  %v2908_v39 = vrot.slane %v2907_v52, 2  ;;  %v2258_v56 = vmax.f32 %v2020_v45, 0.0  ;;  %v2902_v42 = vmax.f32 %v2900_v57, %v2901_v5 }
 0x280   :  { %v2888_v8 = vmax.f32 %v2886_v63, %v2887_v28  ;;  %v2891_v49 = vsel %vm2295_vm4, %v2252_v46, -inf  ;;  %v2926_v60 = vsel %vm2295_vm4, %v2257_v26, -inf  ;;  %v2912_v18 = vsel %vm2295_vm4, %v2255_v29, -inf }
 0x281   :  { %v2869_v50 = vmax.f32 %v2867_v54, %v2868_v19  ;;  %v2909_v12 = vmax.f32 %v2907_v52, %v2908_v39  ;;  %v2892_v37 = vrot.slane %v2891_v49, 4  ;;  %v2927_v30 = vrot.slane %v2926_v60, 4  ;;  %v5227_v52 = vpop.f32.mrf.mxu1 }
 0x282   :  { %v2903_v38 = vrot.slane %v2902_v42, 1  ;;  %v2889_v13 = vrot.slane %v2888_v8, 1  ;;  %v2933_v2 = vsel %vm2295_vm4, %v2258_v56, -inf  ;;  %v2913_v21 = vrot.slane %v2912_v18, 4 }
 0x283   :  { %v3397_v55 = vsel %vm3320_vm5, %v2869_v50, %v2862_v7  ;;  %v2910_v40 = vrot.slane %v2909_v12, 1  ;;  %v2893_v4 = vmax.f32 %v2891_v49, %v2892_v37  ;;  %v2928_v62 = vmax.f32 %v2926_v60, %v2927_v30  ;;  %v5232_v49 = vpop.f32.mrf.mxu1 }
 0x284   :  { %v3398_v9 = vsel %vm3322_vm6, %v2876_v25, %v3397_v55  ;;  %v2904_v48 = vmax.f32 %v2902_v42, %v2903_v38  ;;  %v2890_v44 = vmax.f32 %v2888_v8, %v2889_v13  ;;  %v2914_v17 = vmax.f32 %v2912_v18, %v2913_v21 }
 0x285   :  { %v3399_v20 = vsel %vm3324_vm7, %v2883_v53, %v3398_v9  ;;  %v2911_v3 = vmax.f32 %v2909_v12, %v2910_v40  ;;  %v2894_v34 = vrot.slane %v2893_v4, 2  ;;  %v2929_v33 = vrot.slane %v2928_v62, 2  ;;  %v5246_v21 = vpop.f32.mrf.mxu1 }
 0x286   :  { %v3400_v10 = vsel %vm3326_vm8, %v2890_v44, %v3399_v20  ;;  %v2934_v6 = vrot.slane %v2933_v2, 4  ;;  %v2012_v7 = vadd.f32 %v5171_v14, %v5083_v36  ;;  %v2033_v25 = vadd.f32 %v5171_v14, %v5088_v16 }
 0x287   :  { %v2895_v47 = vmax.f32 %v2893_v4, %v2894_v34  ;;  %v2930_v57 = vmax.f32 %v2928_v62, %v2929_v33  ;;  %v2025_v63 = vadd.f32 %v5171_v14, %v5093_v58  ;;  %v2915_v51 = vrot.slane %v2914_v17, 2 }
 0x288   :  { %v2935_v53 = vmax.f32 %v2933_v2, %v2934_v6  ;;  %v2256_v1 = vmax.f32 %v2012_v7, 0.0  ;;  %v2036_v54 = vadd.f32 %v5171_v14, %v5106_v15  ;;  %v2261_v5 = vmax.f32 %v2033_v25, 0.0 }
 0x289   :  { %v2896_v11 = vrot.slane %v2895_v47, 1  ;;  %v2931_v45 = vrot.slane %v2930_v57, 1  ;;  %v2259_v36 = vmax.f32 %v2025_v63, 0.0  ;;  %v2916_v28 = vmax.f32 %v2914_v17, %v2915_v51 }
 0x28a   :  { %v2936_v46 = vrot.slane %v2935_v53, 2  ;;  %v2919_v26 = vsel %vm2295_vm4, %v2256_v1, -inf  ;;  %v2262_v16 = vmax.f32 %v2036_v54, 0.0  ;;  %v2954_v29 = vsel %vm2295_vm4, %v2261_v5, -inf  ;;  %v5254_v1 = vpop.f32.mrf.mxu1 }
 0x28b   :  { %v2897_v19 = vmax.f32 %v2895_v47, %v2896_v11  ;;  %v2932_v39 = vmax.f32 %v2930_v57, %v2931_v45  ;;  %v2920_v58 = vrot.slane %v2919_v26, 4  ;;  %v2917_v56 = vrot.slane %v2916_v28, 1 }
 0x28c   :  { %v2937_v42 = vmax.f32 %v2935_v53, %v2936_v46  ;;  %v2955_v8 = vrot.slane %v2954_v29, 4  ;;  %v2940_v15 = vsel %vm2295_vm4, %v2259_v36, -inf  ;;  %v2961_v37 = vsel %vm2295_vm4, %v2262_v16, -inf }
 0x28d   :  { %v3401_v60 = vsel %vm3328_vm9, %v2897_v19, %v3400_v10  ;;  %v2921_v50 = vmax.f32 %v2919_v26, %v2920_v58  ;;  %v2941_v12 = vrot.slane %v2940_v15, 4  ;;  %v2918_v38 = vmax.f32 %v2916_v28, %v2917_v56 }
 0x28e   :  { %v3402_v30 = vsel %vm3330_vm10, %v2904_v48, %v3401_v60  ;;  %v2938_v13 = vrot.slane %v2937_v42, 1  ;;  %v2956_v18 = vmax.f32 %v2954_v29, %v2955_v8  ;;  %v2962_v4 = vrot.slane %v2961_v37, 4  ;;  %v5260_v8 = vpop.f32.mrf.mxu1 }
 0x28f   :  { %v3403_v2 = vsel %vm3332_vm11, %v2911_v3, %v3402_v30  ;;  %v2922_v55 = vrot.slane %v2921_v50, 2  ;;  %v2942_v40 = vmax.f32 %v2940_v15, %v2941_v12  ;;  %v2028_v44 = vadd.f32 %v5171_v14, %v5114_v41 }
 0x290   :  { %3465 = vst.msk [vmem:[%s5415_s5 + $0x50] sm:$0xff] %vm2295_vm4, %v3403_v2  ;;  %v2939_v62 = vmax.f32 %v2937_v42, %v2938_v13  ;;  %v2957_v9 = vrot.slane %v2956_v18, 2  ;;  %v2049_v48 = vadd.f32 %v5171_v14, %v5119_v0  ;;  %v2963_v34 = vmax.f32 %v2961_v37, %v2962_v4 }
 0x291   :  { %v2923_v20 = vmax.f32 %v2921_v50, %v2922_v55  ;;  %v2943_v3 = vrot.slane %v2942_v40, 2  ;;  %v2041_v33 = vadd.f32 %v5171_v14, %v5130_v35  ;;  %v2260_v17 = vmax.f32 %v2028_v44, 0.0 }
 0x292   :  { %v2958_v10 = vmax.f32 %v2956_v18, %v2957_v9  ;;  %v2265_v6 = vmax.f32 %v2049_v48, 0.0  ;;  %v2052_v7 = vadd.f32 %v5171_v14, %v5136_v23  ;;  %v2964_v41 = vrot.slane %v2963_v34, 2 }
 0x293   :  { %v2924_v47 = vrot.slane %v2923_v20, 1  ;;  %v2944_v57 = vmax.f32 %v2942_v40, %v2943_v3  ;;  %v2263_v25 = vmax.f32 %v2041_v33, 0.0  ;;  %v2947_v0 = vsel %vm2295_vm4, %v2260_v17, -inf }
 0x294   :  { %v2959_v63 = vrot.slane %v2958_v10, 1  ;;  %v2982_v51 = vsel %vm2295_vm4, %v2265_v6, -inf  ;;  %v2266_v53 = vmax.f32 %v2052_v7, 0.0  ;;  %v2965_v11 = vmax.f32 %v2963_v34, %v2964_v41 }
 0x295   :  { %v2925_v54 = vmax.f32 %v2923_v20, %v2924_v47  ;;  %v2945_v35 = vrot.slane %v2944_v57, 1  ;;  %v2948_v45 = vrot.slane %v2947_v0, 4  ;;  %v2983_v36 = vrot.slane %v2982_v51, 4 }
 0x296   :  { %v2960_v5 = vmax.f32 %v2958_v10, %v2959_v63  ;;  %v2968_v23 = vsel %vm2295_vm4, %v2263_v25, -inf  ;;  %v2989_v28 = vsel %vm2295_vm4, %v2266_v53, -inf  ;;  %v2966_v16 = vrot.slane %v2965_v11, 1 }
 0x297   :  { %v3404_v46 = vsel %vm3320_vm5, %v2925_v54, %v2918_v38  ;;  %v2946_v26 = vmax.f32 %v2944_v57, %v2945_v35  ;;  %v2949_v19 = vmax.f32 %v2947_v0, %v2948_v45  ;;  %v2984_v29 = vmax.f32 %v2982_v51, %v2983_v36 }
 0x298   :  { %v3405_v58 = vsel %vm3322_vm6, %v2932_v39, %v3404_v46  ;;  %v2969_v56 = vrot.slane %v2968_v23, 4  ;;  %v2990_v42 = vrot.slane %v2989_v28, 4  ;;  %v2967_v60 = vmax.f32 %v2965_v11, %v2966_v16 }
 0x299   :  { %v3406_v15 = vsel %vm3324_vm7, %v2939_v62, %v3405_v58  ;;  %v2950_v50 = vrot.slane %v2949_v19, 2  ;;  %v2044_v12 = vadd.f32 %v5171_v14, %v5149_v61  ;;  %v2985_v30 = vrot.slane %v2984_v29, 2  ;;  %v5272_v61 = vpop.f32.mrf.mxu1 }
 0x29a   :  { %v3407_v37 = vsel %vm3326_vm8, %v2946_v26, %v3406_v15  ;;  %v2970_v38 = vmax.f32 %v2968_v23, %v2969_v56  ;;  %v2991_v13 = vmax.f32 %v2989_v28, %v2990_v42  ;;  %v2065_v39 = vadd.f32 %v5171_v14, %v5158_v24 }
 0x29b   :  { %v2951_v18 = vmax.f32 %v2949_v19, %v2950_v50  ;;  %v2264_v2 = vmax.f32 %v2044_v12, 0.0  ;;  %v2057_v55 = vadd.f32 %v5171_v14, %v5164_v32  ;;  %v2986_v40 = vmax.f32 %v2984_v29, %v2985_v30  ;;  %v5277_v25 = vpop.f32.mrf.mxu1 }
 0x29c   :  { %v2971_v4 = vrot.slane %v2970_v38, 2  ;;  %v2992_v62 = vrot.slane %v2991_v13, 2  ;;  %v2068_v9 = vadd.f32 %v5171_v14, %v5180_v31  ;;  %v2269_v20 = vmax.f32 %v2065_v39, 0.0 }
 0x29d   :  { %v2952_v44 = vrot.slane %v2951_v18, 1  ;;  %v2975_v48 = vsel %vm2295_vm4, %v2264_v2, -inf  ;;  %v2267_v3 = vmax.f32 %v2057_v55, 0.0  ;;  %v2987_v34 = vrot.slane %v2986_v40, 1  ;;  %v5293_v58 = vpop.f32.mrf.mxu1 }
 0x29e   :  { %v2972_v33 = vmax.f32 %v2970_v38, %v2971_v4  ;;  %v2993_v10 = vmax.f32 %v2991_v13, %v2992_v62  ;;  %v2976_v24 = vrot.slane %v2975_v48, 4  ;;  %v3010_v32 = vsel %vm2295_vm4, %v2269_v20, -inf }
 0x29f   :  { %v2953_v17 = vmax.f32 %v2951_v18, %v2952_v44  ;;  %v2996_v6 = vsel %vm2295_vm4, %v2267_v3, -inf  ;;  %v2270_v7 = vmax.f32 %v2068_v9, 0.0  ;;  %v2988_v47 = vmax.f32 %v2986_v40, %v2987_v34  ;;  %v5300_v39 = vpop.f32.mrf.mxu1 }
 0x2a0   :  { %v2973_v57 = vrot.slane %v2972_v33, 1  ;;  %v2994_v31 = vrot.slane %v2993_v10, 1  ;;  %v2977_v41 = vmax.f32 %v2975_v48, %v2976_v24  ;;  %v3011_v0 = vrot.slane %v3010_v32, 4 }
 0x2a1   :  { %v3408_v63 = vsel %vm3328_vm9, %v2953_v17, %v3407_v37  ;;  %v2997_v51 = vrot.slane %v2996_v6, 4  ;;  %v3017_v53 = vsel %vm2295_vm4, %v2270_v7, -inf  ;;  %v2060_v16 = vadd.f32 %v5171_v14, %v5187_v27 }
 0x2a2   :  { %v3409_v54 = vsel %vm3330_vm10, %v2960_v5, %v3408_v63  ;;  %v2974_v35 = vmax.f32 %v2972_v33, %v2973_v57  ;;  %v2995_v11 = vmax.f32 %v2993_v10, %v2994_v31  ;;  %v2978_v45 = vrot.slane %v2977_v41, 2 }
 0x2a3   :  { %v3410_v36 = vsel %vm3332_vm11, %v2967_v60, %v3409_v54  ;;  %v3012_v23 = vmax.f32 %v3010_v32, %v3011_v0  ;;  %v2998_v28 = vmax.f32 %v2996_v6, %v2997_v51  ;;  %v3018_v46 = vrot.slane %v3017_v53, 4  ;;  %v5306_v32 = vpop.f32.mrf.mxu1 }
 0x2a4   :  { %3466 = vst.msk [vmem:[%s5415_s5 + $0x58] sm:$0xff] %vm2295_vm4, %v3410_v36  ;;  %v2979_v26 = vmax.f32 %v2977_v41, %v2978_v45  ;;  %v2081_v5 = vadd.f32 %v5171_v14, %v5201_v43  ;;  %v2073_v19 = vadd.f32 %v5171_v14, %v5209_v22  ;;  %v2084_v15 = vadd.f32 %v5171_v14, %v5215_v59 }
 0x2a5   :  { %v3013_v29 = vrot.slane %v3012_v23, 2  ;;  %v2999_v56 = vrot.slane %v2998_v28, 2  ;;  %v3019_v42 = vmax.f32 %v3017_v53, %v3018_v46  ;;  %v2268_v50 = vmax.f32 %v2060_v16, 0.0 }
 0x2a6   :  { %v2980_v60 = vrot.slane %v2979_v26, 1  ;;  %v2273_v12 = vmax.f32 %v2081_v5, 0.0  ;;  %v2271_v37 = vmax.f32 %v2073_v19, 0.0  ;;  %v2274_v13 = vmax.f32 %v2084_v15, 0.0 }
 0x2a7   :  { %v3014_v30 = vmax.f32 %v3012_v23, %v3013_v29  ;;  %v3000_v27 = vmax.f32 %v2998_v28, %v2999_v56  ;;  %v3020_v38 = vrot.slane %v3019_v42, 2  ;;  %v3003_v18 = vsel %vm2295_vm4, %v2268_v50, -inf  ;;  %v5317_v28 = vpop.f32.mrf.mxu1 }
 0x2a8   :  { %v2981_v43 = vmax.f32 %v2979_v26, %v2980_v60  ;;  %v3038_v22 = vsel %vm2295_vm4, %v2273_v12, -inf  ;;  %v3024_v2 = vsel %vm2295_vm4, %v2271_v37, -inf  ;;  %v3004_v4 = vrot.slane %v3003_v18, 4 }
 0x2a9   :  { %v3015_v55 = vrot.slane %v3014_v30, 1  ;;  %v3001_v40 = vrot.slane %v3000_v27, 1  ;;  %v3021_v59 = vmax.f32 %v3019_v42, %v3020_v38  ;;  %v3039_v9 = vrot.slane %v3038_v22, 4  ;;  %v5323_v37 = vpop.f32.mrf.mxu1 }
 0x2aa   :  { %v3411_v62 = vsel %vm3320_vm5, %v2981_v43, %v2974_v35  ;;  %v3025_v44 = vrot.slane %v3024_v2, 4  ;;  %v3045_v48 = vsel %vm2295_vm4, %v2274_v13, -inf  ;;  %v3005_v10 = vmax.f32 %v3003_v18, %v3004_v4 }
 0x2ab   :  { %v3412_v20 = vsel %vm3322_vm6, %v2988_v47, %v3411_v62  ;;  %v3016_v3 = vmax.f32 %v3014_v30, %v3015_v55  ;;  %v3002_v34 = vmax.f32 %v3000_v27, %v3001_v40  ;;  %v3040_v24 = vmax.f32 %v3038_v22, %v3039_v9 }
 0x2ac   :  { %v3413_v33 = vsel %vm3324_vm7, %v2995_v11, %v3412_v20  ;;  %v3026_v17 = vmax.f32 %v3024_v2, %v3025_v44  ;;  %v3022_v7 = vrot.slane %v3021_v59, 1  ;;  %v3046_v57 = vrot.slane %v3045_v48, 4  ;;  %v5332_v20 = vpop.f32.mrf.mxu1 }
 0x2ad   :  { %v3414_v6 = vsel %vm3326_vm8, %v3002_v34, %v3413_v33  ;;  %v2076_v31 = vadd.f32 %v5171_v14, %v5227_v52  ;;  %v3006_v41 = vrot.slane %v3005_v10, 2  ;;  %v3041_v63 = vrot.slane %v3040_v24, 2 }
 0x2ae   :  { %v3027_v0 = vrot.slane %v3026_v17, 2  ;;  %v2097_v47 = vadd.f32 %v5171_v14, %v5232_v49  ;;  %v3047_v51 = vmax.f32 %v3045_v48, %v3046_v57  ;;  %v2089_v54 = vadd.f32 %v5171_v14, %v5246_v21 }
 0x2af   :  { %v2272_v53 = vmax.f32 %v2076_v31, 0.0  ;;  %v2100_v35 = vadd.f32 %v5171_v14, %v5254_v1  ;;  %v3007_v11 = vmax.f32 %v3005_v10, %v3006_v41  ;;  %v3042_v45 = vmax.f32 %v3040_v24, %v3041_v63 }
 0x2b0   :  { %v3028_v36 = vmax.f32 %v3026_v17, %v3027_v0  ;;  %v2277_v23 = vmax.f32 %v2097_v47, 0.0  ;;  %v3048_v52 = vrot.slane %v3047_v51, 2  ;;  %v2275_v26 = vmax.f32 %v2089_v54, 0.0 }
 0x2b1   :  { %v3031_v46 = vsel %vm2295_vm4, %v2272_v53, -inf  ;;  %v2278_v16 = vmax.f32 %v2100_v35, 0.0  ;;  %v3008_v49 = vrot.slane %v3007_v11, 1  ;;  %v3043_v5 = vrot.slane %v3042_v45, 1 }
 0x2b2   :  { %v3029_v19 = vrot.slane %v3028_v36, 1  ;;  %v3032_v29 = vrot.slane %v3031_v46, 4  ;;  %v3049_v56 = vmax.f32 %v3047_v51, %v3048_v52  ;;  %v3066_v21 = vsel %vm2295_vm4, %v2277_v23, -inf  ;;  %v4054_v51 = vpop.f32.mrf.mxu1 }
 0x2b3   :  { %v3052_v1 = vsel %vm2295_vm4, %v2275_v26, -inf  ;;  %v3073_v42 = vsel %vm2295_vm4, %v2278_v16, -inf  ;;  %v3023_v15 = vmax.f32 %v3021_v59, %v3022_v7  ;;  %v3009_v60 = vmax.f32 %v3007_v11, %v3008_v49 }
 0x2b4   :  { %v3044_v50 = vmax.f32 %v3042_v45, %v3043_v5  ;;  %v3033_v12 = vmax.f32 %v3031_v46, %v3032_v29  ;;  %v3030_v30 = vmax.f32 %v3028_v36, %v3029_v19  ;;  %v3067_v27 = vrot.slane %v3066_v21, 4  ;;  %v2136_v19 = vpop.f32.mrf.mxu1 }
 0x2b5   :  { %v3053_v38 = vrot.slane %v3052_v1, 4  ;;  %v3074_v13 = vrot.slane %v3073_v42, 4  ;;  %v3415_v43 = vsel %vm3328_vm9, %v3009_v60, %v3414_v6  ;;  %v2092_v22 = vadd.f32 %v5171_v14, %v5260_v8 }
 0x2b6   :  { %v3034_v18 = vrot.slane %v3033_v12, 2  ;;  %v2113_v2 = vadd.f32 %v5171_v14, %v5272_v61  ;;  %v3416_v55 = vsel %vm3330_vm10, %v3016_v3, %v3415_v43  ;;  %v3050_v40 = vrot.slane %v3049_v56, 1 }
 0x2b7   :  { %v3068_v59 = vmax.f32 %v3066_v21, %v3067_v27  ;;  %v3054_v4 = vmax.f32 %v3052_v1, %v3053_v38  ;;  %v3417_v62 = vsel %vm3332_vm11, %v3023_v15, %v3416_v55  ;;  %v3075_v44 = vmax.f32 %v3073_v42, %v3074_v13 }
 0x2b8   :  { %v3035_v9 = vmax.f32 %v3033_v12, %v3034_v18  ;;  %v2276_v48 = vmax.f32 %v2092_v22, 0.0  ;;  %3467 = vst.msk [vmem:[%s5415_s5 + $0x60] sm:$0xff] %vm2295_vm4, %v3417_v62  ;;  %v2281_v61 = vmax.f32 %v2113_v2, 0.0  ;;  %v2105_v3 = vadd.f32 %v5171_v14, %v5277_v25  ;;  %v4055_v2 = vpop.f32.mrf.mxu1 }
 0x2b9   :  { %v3069_v8 = vrot.slane %v3068_v59, 2  ;;  %v3055_v34 = vrot.slane %v3054_v4, 2  ;;  %v3076_v10 = vrot.slane %v3075_v44, 2  ;;  %v2116_v17 = vadd.f32 %v5171_v14, %v5293_v58 }
 0x2ba   :  { %v3036_v33 = vrot.slane %v3035_v9, 1  ;;  %v3059_v24 = vsel %vm2295_vm4, %v2276_v48, -inf  ;;  %v3094_v31 = vsel %vm2295_vm4, %v2281_v61, -inf  ;;  %v2279_v47 = vmax.f32 %v2105_v3, 0.0  ;;  %v2139_v3 = vpop.f32.mrf.mxu1 }
 0x2bb   :  { %v3070_v6 = vmax.f32 %v3068_v59, %v3069_v8  ;;  %v3056_v7 = vmax.f32 %v3054_v4, %v3055_v34  ;;  %v3060_v57 = vrot.slane %v3059_v24, 4  ;;  %v3077_v63 = vmax.f32 %v3075_v44, %v3076_v10 }
 0x2bc   :  { %v3037_v41 = vmax.f32 %v3035_v9, %v3036_v33  ;;  %v3095_v0 = vrot.slane %v3094_v31, 4  ;;  %v2282_v35 = vmax.f32 %v2116_v17, 0.0  ;;  %v3080_v58 = vsel %vm2295_vm4, %v2279_v47, -inf }
 0x2bd   :  { %v3071_v53 = vrot.slane %v3070_v6, 1  ;;  %v3057_v54 = vrot.slane %v3056_v7, 1  ;;  %v3061_v25 = vmax.f32 %v3059_v24, %v3060_v57  ;;  %v3078_v45 = vrot.slane %v3077_v63, 1 }
 0x2be   :  { %v3418_v11 = vsel %vm3320_vm5, %v3037_v41, %v3030_v30  ;;  %v3096_v36 = vmax.f32 %v3094_v31, %v3095_v0  ;;  %v3051_v23 = vmax.f32 %v3049_v56, %v3050_v40  ;;  %v3081_v5 = vrot.slane %v3080_v58, 4 }
 0x2bf   :  { %v3419_v52 = vsel %vm3322_vm6, %v3044_v50, %v3418_v11  ;;  %v3062_v46 = vrot.slane %v3061_v25, 2  ;;  %v3072_v26 = vmax.f32 %v3070_v6, %v3071_v53  ;;  %v3058_v16 = vmax.f32 %v3056_v7, %v3057_v54  ;;  %v4058_v11 = vpop.f32.mrf.mxu1 }
 0x2c0   :  { %v3097_v49 = vrot.slane %v3096_v36, 2  ;;  %v3420_v29 = vsel %vm3324_vm7, %v3051_v23, %v3419_v52  ;;  %v3101_v1 = vsel %vm2295_vm4, %v2282_v35, -inf  ;;  %v2108_v42 = vadd.f32 %v5171_v14, %v5300_v39 }
 0x2c1   :  { %v3063_v21 = vmax.f32 %v3061_v25, %v3062_v46  ;;  %v3079_v15 = vmax.f32 %v3077_v63, %v3078_v45  ;;  %v3082_v60 = vmax.f32 %v3080_v58, %v3081_v5  ;;  %v3102_v12 = vrot.slane %v3101_v1, 4 }
 0x2c2   :  { %v2129_v56 = vadd.f32 %v5171_v14, %v5306_v32  ;;  %v2280_v30 = vmax.f32 %v2108_v42, 0.0  ;;  %v2121_v27 = vadd.f32 %v5171_v14, %v5317_v28  ;;  %v2132_v38 = vadd.f32 %v5171_v14, %v5323_v37  ;;  %v2152_v42 = vpop.f32.mrf.mxu1 }
 0x2c3   :  { %v3064_v50 = vrot.slane %v3063_v21, 1  ;;  %v3098_v13 = vmax.f32 %v3096_v36, %v3097_v49  ;;  %v3083_v43 = vrot.slane %v3082_v60, 2  ;;  %v3103_v18 = vmax.f32 %v3101_v1, %v3102_v12 }
 0x2c4   :  { %v2285_v22 = vmax.f32 %v2129_v56, 0.0  ;;  %v3087_v55 = vsel %vm2295_vm4, %v2280_v30, -inf  ;;  %v2283_v40 = vmax.f32 %v2121_v27, 0.0  ;;  %v2286_v59 = vmax.f32 %v2132_v38, 0.0 }
 0x2c5   :  { %v3065_v39 = vmax.f32 %v3063_v21, %v3064_v50  ;;  %v3421_v32 = vsel %vm3326_vm8, %v3058_v16, %v3420_v29  ;;  %v3084_v4 = vmax.f32 %v3082_v60, %v3083_v43  ;;  %v3104_v62 = vrot.slane %v3103_v18, 2 }
 0x2c6   :  { %v3088_v9 = vrot.slane %v3087_v55, 4  ;;  %v3122_v44 = vsel %vm2295_vm4, %v2285_v22, -inf  ;;  %v3108_v37 = vsel %vm2295_vm4, %v2283_v40, -inf  ;;  %v3129_v48 = vsel %vm2295_vm4, %v2286_v59, -inf }
 0x2c7   :  { %v3422_v28 = vsel %vm3328_vm9, %v3065_v39, %v3421_v32  ;;  %v3099_v34 = vrot.slane %v3098_v13, 1  ;;  %v3123_v10 = vrot.slane %v3122_v44, 4  ;;  %v3109_v24 = vrot.slane %v3108_v37, 4  ;;  %v4059_v39 = vpop.f32.mrf.mxu1 }
 0x2c8   :  { %v3423_v8 = vsel %vm3330_vm10, %v3072_v26, %v3422_v28  ;;  %v3089_v61 = vmax.f32 %v3087_v55, %v3088_v9  ;;  %v3130_v17 = vrot.slane %v3129_v48, 4  ;;  %v3085_v6 = vrot.slane %v3084_v4, 1 }
 0x2c9   :  { %v3424_v33 = vsel %vm3332_vm11, %v3079_v15, %v3423_v8  ;;  %v3105_v7 = vmax.f32 %v3103_v18, %v3104_v62  ;;  %v2124_v31 = vadd.f32 %v5171_v14, %v5332_v20  ;;  %v3124_v41 = vmax.f32 %v3122_v44, %v3123_v10 }
 0x2ca   :  { %3468 = vst.msk [vmem:[%s5415_s5 + $0x68] sm:$0xff] %vm2295_vm4, %v3424_v33  ;;  %v3090_v57 = vrot.slane %v3089_v61, 2  ;;  %v3110_v63 = vmax.f32 %v3108_v37, %v3109_v24  ;;  %v3131_v0 = vmax.f32 %v3129_v48, %v3130_v17  ;;  %v2145_v47 = vadd.f32 %v5171_v14, %v4054_v51 }
 0x2cb   :  { %v3100_v53 = vmax.f32 %v3098_v13, %v3099_v34  ;;  %v2284_v25 = vmax.f32 %v2124_v31, 0.0  ;;  %v2137_v35 = vadd.f32 %v5171_v14, %v2136_v19  ;;  %v3125_v45 = vrot.slane %v3124_v41, 2 }
 0x2cc   :  { %v3091_v54 = vmax.f32 %v3089_v61, %v3090_v57  ;;  %v3111_v36 = vrot.slane %v3110_v63, 2  ;;  %v3132_v58 = vrot.slane %v3131_v0, 2  ;;  %v2289_v23 = vmax.f32 %v2145_v47, 0.0 }
 0x2cd   :  { %v3115_v46 = vsel %vm2295_vm4, %v2284_v25, -inf  ;;  %v2287_v26 = vmax.f32 %v2137_v35, 0.0  ;;  %v2148_v20 = vadd.f32 %v5171_v14, %v4055_v2  ;;  %v3086_v16 = vmax.f32 %v3084_v4, %v3085_v6 }
 0x2ce   :  { %v3092_v52 = vrot.slane %v3091_v54, 1  ;;  %v3106_v49 = vrot.slane %v3105_v7, 1  ;;  %v3112_v5 = vmax.f32 %v3110_v63, %v3111_v36  ;;  %v3116_v51 = vrot.slane %v3115_v46, 4 }
 0x2cf   :  { %v3150_v21 = vsel %vm2295_vm4, %v2289_v23, -inf  ;;  %v3136_v19 = vsel %vm2295_vm4, %v2287_v26, -inf  ;;  %v2290_v1 = vmax.f32 %v2148_v20, 0.0  ;;  %v3126_v15 = vmax.f32 %v3124_v41, %v3125_v45 }
 0x2d0   :  { %v3093_v29 = vmax.f32 %v3091_v54, %v3092_v52  ;;  %v3113_v60 = vrot.slane %v3112_v5, 1  ;;  %v3133_v12 = vmax.f32 %v3131_v0, %v3132_v58  ;;  %v3117_v56 = vmax.f32 %v3115_v46, %v3116_v51  ;;  %v2155_v54 = vpop.f32.mrf.mxu1 }
 0x2d1   :  { %v3151_v30 = vrot.slane %v3150_v21, 4  ;;  %v3137_v27 = vrot.slane %v3136_v19, 4  ;;  %v3157_v38 = vsel %vm2295_vm4, %v2290_v1, -inf  ;;  %v3107_v13 = vmax.f32 %v3105_v7, %v3106_v49 }
 0x2d2   :  { %v3425_v50 = vsel %vm3320_vm5, %v3093_v29, %v3086_v16  ;;  %v3118_v18 = vrot.slane %v3117_v56, 2  ;;  %v3127_v55 = vrot.slane %v3126_v15, 1  ;;  %v3158_v40 = vrot.slane %v3157_v38, 4 }
 0x2d3   :  { %v3426_v43 = vsel %vm3322_vm6, %v3100_v53, %v3425_v50  ;;  %v3152_v22 = vmax.f32 %v3150_v21, %v3151_v30  ;;  %v3138_v2 = vmax.f32 %v3136_v19, %v3137_v27  ;;  %v2140_v59 = vadd.f32 %v5171_v14, %v2139_v3 }
 0x2d4   :  { %v2161_v32 = vadd.f32 %v5171_v14, %v4058_v11  ;;  %v3114_v4 = vmax.f32 %v3112_v5, %v3113_v60  ;;  %v3134_v62 = vrot.slane %v3133_v12, 1  ;;  %v3119_v9 = vmax.f32 %v3117_v56, %v3118_v18 }
 0x2d5   :  { %v2153_v28 = vadd.f32 %v5171_v14, %v2152_v42  ;;  %v3427_v44 = vsel %vm3324_vm7, %v3107_v13, %v3426_v43  ;;  %v2288_v37 = vmax.f32 %v2140_v59, 0.0  ;;  %v2164_v8 = vadd.f32 %v5171_v14, %v4059_v39 }
 0x2d6   :  { %v2293_v48 = vmax.f32 %v2161_v32, 0.0  ;;  %v3120_v34 = vrot.slane %v3119_v9, 1  ;;  %v3153_v61 = vrot.slane %v3152_v22, 2  ;;  %v3139_v33 = vrot.slane %v3138_v2, 2 }
 0x2d7   :  { %v2291_v10 = vmax.f32 %v2153_v28, 0.0  ;;  %v3159_v24 = vmax.f32 %v3157_v38, %v3158_v40  ;;  %v3143_v3 = vsel %vm2295_vm4, %v2288_v37, -inf  ;;  %v2294_v6 = vmax.f32 %v2164_v8, 0.0 }
 0x2d8   :  { %v3178_v17 = vsel %vm2295_vm4, %v2293_v48, -inf  ;;  %v3128_v7 = vmax.f32 %v3126_v15, %v3127_v55  ;;  %v3135_v57 = vmax.f32 %v3133_v12, %v3134_v62  ;;  %v3121_v31 = vmax.f32 %v3119_v9, %v3120_v34 }
 0x2d9   :  { %v3144_v41 = vrot.slane %v3143_v3, 4  ;;  %v3428_v63 = vsel %vm3326_vm8, %v3114_v4, %v3427_v44  ;;  %v3179_v0 = vrot.slane %v3178_v17, 4  ;;  %v3164_v47 = vsel %vm2295_vm4, %v2291_v10, -inf }
 0x2da   :  { %v3185_v53 = vsel %vm2295_vm4, %v2294_v6, -inf  ;;  %v3429_v25 = vsel %vm3328_vm9, %v3121_v31, %v3428_v63  ;;  %v3154_v35 = vmax.f32 %v3152_v22, %v3153_v61  ;;  %v3140_v11 = vmax.f32 %v3138_v2, %v3139_v33 }
 0x2db   :  { %v3145_v45 = vmax.f32 %v3143_v3, %v3144_v41  ;;  %v3430_v36 = vsel %vm3330_vm10, %v3128_v7, %v3429_v25  ;;  %v3160_v58 = vrot.slane %v3159_v24, 2  ;;  %v3180_v23 = vmax.f32 %v3178_v17, %v3179_v0 }
 0x2dc   :  { %v3165_v52 = vrot.slane %v3164_v47, 4  ;;  %v3431_v46 = vsel %vm3332_vm11, %v3135_v57, %v3430_v36  ;;  %v3186_v20 = vrot.slane %v3185_v53, 4  ;;  %v2156_v16 = vadd.f32 %v5171_v14, %v2155_v54 }
 0x2dd   :  { %v3146_v26 = vrot.slane %v3145_v45, 2  ;;  %3469 = vst.msk [vmem:[%s5415_s5 + $0x70] sm:$0xff] %vm2295_vm4, %v3431_v46  ;;  %v3141_v5 = vrot.slane %v3140_v11, 1  ;;  %v3161_v19 = vmax.f32 %v3159_v24, %v3160_v58  ;;  %v3155_v42 = vrot.slane %v3154_v35, 1 }
 0x2de   :  { %v3166_v49 = vmax.f32 %v3164_v47, %v3165_v52  ;;  %v3187_v29 = vmax.f32 %v3185_v53, %v3186_v20  ;;  %v2292_v21 = vmax.f32 %v2156_v16, 0.0  ;;  %v3181_v60 = vrot.slane %v3180_v23, 2 }
 0x2df   :  { %v3147_v51 = vmax.f32 %v3145_v45, %v3146_v26  ;;  %v3142_v30 = vmax.f32 %v3140_v11, %v3141_v5  ;;  %v3162_v38 = vrot.slane %v3161_v19, 1  ;;  %v3156_v43 = vmax.f32 %v3154_v35, %v3155_v42 }
 0x2e0   :  { %v3167_v1 = vrot.slane %v3166_v49, 2  ;;  %v3171_v12 = vsel %vm2295_vm4, %v2292_v21, -inf  ;;  %v3188_v50 = vrot.slane %v3187_v29, 2  ;;  %v3182_v22 = vmax.f32 %v3180_v23, %v3181_v60 }
 0x2e1   :  { %v3148_v15 = vrot.slane %v3147_v51, 1  ;;  %v3172_v14 = vrot.slane %v3171_v12, 4  ;;  %v3163_v59 = vmax.f32 %v3161_v19, %v3162_v38 }
 0x2e2   :  { %v3168_v56 = vmax.f32 %v3166_v49, %v3167_v1  ;;  %v3189_v39 = vmax.f32 %v3187_v29, %v3188_v50  ;;  %v3183_v4 = vrot.slane %v3182_v22, 1 }
 0x2e3   :  { %v3149_v27 = vmax.f32 %v3147_v51, %v3148_v15  ;;  %v3173_v13 = vmax.f32 %v3171_v12, %v3172_v14 }
 0x2e4   :  { %v3169_v2 = vrot.slane %v3168_v56, 1  ;;  %v3190_v28 = vrot.slane %v3189_v39, 1  ;;  %v3184_v48 = vmax.f32 %v3182_v22, %v3183_v4 }
 0x2e5   :  { %v3432_v18 = vsel %vm3320_vm5, %v3149_v27, %v3142_v30  ;;  %v3174_v55 = vrot.slane %v3173_v13, 2 }
 0x2e6   :  { %v3433_v40 = vsel %vm3322_vm6, %v3156_v43, %v3432_v18  ;;  %v3170_v62 = vmax.f32 %v3168_v56, %v3169_v2  ;;  %v3191_v34 = vmax.f32 %v3189_v39, %v3190_v28 }
 0x2e7   :  { %v3175_v32 = vmax.f32 %v3173_v13, %v3174_v55  ;;  %v3434_v9 = vsel %vm3324_vm7, %v3163_v59, %v3433_v40 }
 0x2e8   :  { %v3435_v8 = vsel %vm3326_vm8, %v3170_v62, %v3434_v9 }
 0x2e9   :  { %v3176_v44 = vrot.slane %v3175_v32, 1 }
 0x2eb   :  { %v3177_v37 = vmax.f32 %v3175_v32, %v3176_v44 }
 0x2ed   :  { %v3436_v61 = vsel %vm3328_vm9, %v3177_v37, %v3435_v8 }
 0x2ee   :  { %v3437_v33 = vsel %vm3330_vm10, %v3184_v48, %v3436_v61 }
 0x2ef   :  { %v3438_v10 = vsel %vm3332_vm11, %v3191_v34, %v3437_v33 }
 0x2f0   :  { %3470 = vst.msk [vmem:[%s5415_s5 + $0x78] sm:$0xff] %vm2295_vm4, %v3438_v10 }

</bundles_post_ra>
